<compile_context>
chip_gen: v7x
topology: tpu7x:2x2x1
jax: 0.10.0
libtpu: 0.0.40
codegen_flags: <defaults>
</compile_context>

<pallas_src>
import jax
import jax.numpy as jnp
from jax.experimental import pallas as pl
from jax.experimental.pallas import tpu as pltpu


# --------------------------------------------------------------------------- kernel
def _mann_kernel(imgs_ref, labs_ref, wimg_ref, wlab_ref, whh1_ref, b1_ref,
                 w2_ref, b2_ref, o_ref, g1_ref):
    """Stacked-LSTM forward over one batch chunk of a whole episode.

    imgs_ref : [BT*T, 784]   labs_ref : [BT*T, N] (query-slot labels already zeroed)
    wimg     : [784, 4H]     wlab     : [N, 4H]    whh1 : [H, 4H]    b1 : [1, 4H]
    w2       : [H+N, G2p]    (= [Wih2 ; Whh2], gate cols zero-padded 4N -> G2p)
    b2       : [1, G2p]
    o_ref    : [BT, T*N]     (step t occupies lanes [t*N, (t+1)*N))
    g1_ref   : VMEM scratch [BT*T, 4H] for the hoisted layer-1 input projection.
    Gate order matches PyTorch: i, f, g, o.  Rows are batch-major: row = b*T + t.
    """
    BT = o_ref.shape[0]
    n_cls = labs_ref.shape[1]
    T = imgs_ref.shape[0] // BT
    H = whh1_ref.shape[0]
    G2 = w2_ref.shape[1]

    # ---- Hoisted layer-1 input projection: one wide MXU matmul over all BT*T rows,
    # bias folded in, written densely once (no per-batch loop, no masked stores). ----
    g1_ref[...] = (
        jnp.dot(imgs_ref[...], wimg_ref[...], preferred_element_type=jnp.float32)
        + jnp.dot(labs_ref[...], wlab_ref[...], preferred_element_type=jnp.float32)
        + b1_ref[...])

    # De-padded recurrence weights are tiny (4-5 vregs each): hoist them once.
    whh1 = whh1_ref[...]
    w2 = w2_ref[...]
    b2 = jnp.broadcast_to(b2_ref[...], (BT, G2))      # hoisted broadcast

    h1 = jnp.zeros((BT, H), jnp.float32)
    c1 = jnp.zeros((BT, H), jnp.float32)
    h2 = jnp.zeros((BT, n_cls), jnp.float32)
    c2 = jnp.zeros((BT, n_cls), jnp.float32)

    # Serial recurrence: only the small h @ W_hh / fused layer-2 work remains per
    # step.  T is small & static -> plain Python loop == full unroll.
    for t in range(T):
        if BT == 1:
            x_t = g1_ref[t:t + 1, :]                            # [1, 4H]
        else:
            x_t = g1_ref[pl.ds(t, BT, stride=T), :]             # rows b*T + t

        gates1 = x_t + jnp.dot(h1, whh1, preferred_element_type=jnp.float32)
        i1 = jax.nn.sigmoid(gates1[:, 0 * H:1 * H])             # packed gates: width H
        f1 = jax.nn.sigmoid(gates1[:, 1 * H:2 * H])
        z1 = jnp.tanh(gates1[:, 2 * H:3 * H])
        o1 = jax.nn.sigmoid(gates1[:, 3 * H:4 * H])
        c1 = f1 * c1 + i1 * z1
        h1 = o1 * jnp.tanh(c1)

        # Fused layer-2 gates: one MXU issue per step for [h1 | h2] @ [Wih2 ; Whh2].
        xh = jnp.concatenate([h1, h2], axis=-1)                 # [BT, H+N]
        gates2 = jnp.dot(xh, w2, preferred_element_type=jnp.float32) + b2
        i2 = jax.nn.sigmoid(gates2[:, 0 * n_cls:1 * n_cls])     # packed gates: width N
        f2 = jax.nn.sigmoid(gates2[:, 1 * n_cls:2 * n_cls])
        z2 = jnp.tanh(gates2[:, 2 * n_cls:3 * n_cls])
        o2 = jax.nn.sigmoid(gates2[:, 3 * n_cls:4 * n_cls])
        c2 = f2 * c2 + i2 * z2
        h2 = o2 * jnp.tanh(c2)

        # Tiny static-lane-slot store (192 B total over the whole loop).
        o_ref[:, t * n_cls:(t + 1) * n_cls] = h2


# --------------------------------------------------------------------------- params
def _round_up(x, m):
    return ((x + m - 1) // m) * m


def init_params(key, num_classes, hidden_dim):
    """Mirrors initialize_weights(): weight_ih xavier-uniform, weight_hh orthogonal,
    biases zero.  Returned in [in, 4*out] layout (x @ W form), PyTorch gate order
    i, f, g, o.  (If trained PyTorch weights are ever loaded: b = bias_ih + bias_hh.)"""
    din = 784 + num_classes
    k1, k2, k3, k4 = jax.random.split(key, 4)

    def xavier(k, shape):            # torch layout (out_features, in_features)
        fan_out, fan_in = shape
        bound = (6.0 / (fan_in + fan_out)) ** 0.5
        return jax.random.uniform(k, shape, jnp.float32, -bound, bound)

    ortho = jax.nn.initializers.orthogonal()
    wih1_t = xavier(k1, (4 * hidden_dim, din))                       # [4H, 784+N]
    whh1_t = ortho(k2, (4 * hidden_dim, hidden_dim), jnp.float32)    # [4H, H]
    wih2_t = xavier(k3, (4 * num_classes, hidden_dim))               # [4N, H]
    whh2_t = ortho(k4, (4 * num_classes, num_classes), jnp.float32)  # [4N, N]
    b1 = jnp.zeros((1, 4 * hidden_dim), jnp.float32)
    b2 = jnp.zeros((1, 4 * num_classes), jnp.float32)
    return (wih1_t.T, whh1_t.T, b1, wih2_t.T, whh2_t.T, b2)


def prepare_kernel_params(params, num_classes, hidden_dim):
    """Kernel-friendly packing (exactly semantics-preserving):
       * split W_ih1 into image / label parts (the 788-wide concat never exists),
       * keep layer-1 gates packed at width H (4H = 128 lanes for H = 32),
       * fuse layer-2 weights into [Wih2 ; Whh2] and zero-pad the gate total
         4N -> multiple of 128 (padded columns are never read back)."""
    wih1, whh1, b1, wih2, whh2, b2 = params
    N = num_classes
    g2 = 4 * N
    g2p = _round_up(g2, 128)

    w_img = wih1[:784]                                   # [784, 4H]
    w_lab = wih1[784:]                                   # [N,   4H]
    w2 = jnp.concatenate([wih2, whh2], axis=0)           # [H+N, 4N]
    w2 = jnp.pad(w2, ((0, 0), (0, g2p - g2)))            # [H+N, g2p]
    b2p = jnp.pad(b2, ((0, 0), (0, g2p - g2)))           # [1,   g2p]
    return (w_img, w_lab, whh1, b1, w2, b2p)


# --------------------------------------------------------------------------- forward
def mann_forward(input_images, input_labels, kparams, num_classes,
                 samples_per_class, batch_chunks=None):
    """Matches MANN.forward:
       input_images: [B, K+1, N, 784], input_labels: [B, K+1, N, N] -> [B, K+1, N, N]."""
    N = num_classes
    kp1 = samples_per_class
    B = input_labels.shape[0]
    T = kp1 * N

    if batch_chunks is None:
        # Two batch chunks map onto the two TensorCores of a v7x chip (megacore);
        # on v5e/v6e (1 TC) the chunks simply run back-to-back.
        batch_chunks = 2 if B % 2 == 0 else 1
    assert B % batch_chunks == 0
    BT = B // batch_chunks

    # Query-slot label zeroing (slot j == K), exactly as the reference does.
    imgs = input_images.astype(jnp.float32)
    labs = input_labels.astype(jnp.float32)
    labs = labs.at[:, kp1 - 1].set(0.0)

    # Free batch-major reshapes into per-chunk 2-D blocks (no transpose, no concat).
    imgs = imgs.reshape(batch_chunks, BT * T, 784)
    labs = labs.reshape(batch_chunks, BT * T, N)

    w_img, w_lab, whh1, b1, w2, b2 = kparams
    G1 = whh1.shape[1]                                   # 4H

    out = pl.pallas_call(
        _mann_kernel,
        out_shape=jax.ShapeDtypeStruct((batch_chunks, BT, T * N), jnp.float32),
        grid=(batch_chunks,),
        in_specs=[
            pl.BlockSpec((None, BT * T, 784), lambda b: (b, 0, 0)),   # image chunk
            pl.BlockSpec((None, BT * T, N), lambda b: (b, 0, 0)),     # label chunk
            pl.BlockSpec(w_img.shape, lambda b: (0, 0)),              # resident weights
            pl.BlockSpec(w_lab.shape, lambda b: (0, 0)),
            pl.BlockSpec(whh1.shape, lambda b: (0, 0)),
            pl.BlockSpec(b1.shape, lambda b: (0, 0)),
            pl.BlockSpec(w2.shape, lambda b: (0, 0)),
            pl.BlockSpec(b2.shape, lambda b: (0, 0)),
        ],
        out_specs=pl.BlockSpec((None, BT, T * N), lambda b: (b, 0, 0)),
        scratch_shapes=[pltpu.VMEM((BT * T, G1), jnp.float32)],
        compiler_params=pltpu.CompilerParams(
            dimension_semantics=("parallel",),
            vmem_limit_bytes=32 * 1024 * 1024),
    )(imgs, labs, w_img, w_lab, whh1, b1, w2, b2)

    # [chunks, BT, T*N] -> [B, T, N] -> [B, K+1, N, N]  (all free reshapes).
    return out.reshape(B, T, N).reshape(B, kp1, N, N)


# --------------------------------------------------------------------------- main
if __name__ == "__main__":
    num_classes = 4        # N
    samples_per_class = 3  # K+1
    hidden_dim = 32
    B = 2

    key = jax.random.PRNGKey(0)
    kimg, klab, kpar = jax.random.split(key, 3)

    input_images = jax.random.normal(
        kimg, (B, samples_per_class, num_classes, 784), jnp.float32)
    label_idx = jax.random.randint(
        klab, (B, samples_per_class, num_classes), 0, num_classes)
    input_labels = jax.nn.one_hot(label_idx, num_classes, dtype=jnp.float32)

    params = init_params(kpar, num_classes, hidden_dim)
    kparams = prepare_kernel_params(params, num_classes, hidden_dim)

    out = mann_forward(input_images, input_labels, kparams,
                       num_classes, samples_per_class)
    out = jax.block_until_ready(out)

    assert out.shape == (B, samples_per_class, num_classes, num_classes)
    assert out.dtype == jnp.float32
    assert bool(jnp.all(jnp.isfinite(out)))
    print("KERNEL_OK")
</pallas_src>

<mosaic_0001>
module attributes {stable_mosaic.version = 11 : i64} {
  func.func @_mann_kernel(%arg0: i32, %arg1: memref<1x12x784xf32, #tpu.memory_space<vmem>>, %arg2: memref<1x12x4xf32, #tpu.memory_space<vmem>>, %arg3: memref<784x128xf32, #tpu.memory_space<vmem>>, %arg4: memref<4x128xf32, #tpu.memory_space<vmem>>, %arg5: memref<32x128xf32, #tpu.memory_space<vmem>>, %arg6: memref<1x128xf32, #tpu.memory_space<vmem>>, %arg7: memref<36x128xf32, #tpu.memory_space<vmem>>, %arg8: memref<1x128xf32, #tpu.memory_space<vmem>>, %arg9: memref<1x1x48xf32, #tpu.memory_space<vmem>>, %arg10: memref<12x128xf32, #tpu.memory_space<vmem>>) attributes {dimension_semantics = [#tpu.dimension_semantics<parallel>], iteration_bounds = array<i64: 2>, scalar_prefetch = 0 : i64, scratch_operands = 1 : i64, tpu.core_type = #tpu.core_type<tc>, window_params = [{transform_indices = @transform_0, window_bounds = array<i64: 1, 12, 784>}, {transform_indices = @transform_1, window_bounds = array<i64: 1, 12, 4>}, {pipeline_mode = #tpu.pipeline_mode<synchronous>, transform_indices = @transform_2, window_bounds = array<i64: 784, 128>}, {pipeline_mode = #tpu.pipeline_mode<synchronous>, transform_indices = @transform_3, window_bounds = array<i64: 4, 128>}, {pipeline_mode = #tpu.pipeline_mode<synchronous>, transform_indices = @transform_4, window_bounds = array<i64: 32, 128>}, {pipeline_mode = #tpu.pipeline_mode<synchronous>, transform_indices = @transform_5, window_bounds = array<i64: 1, 128>}, {pipeline_mode = #tpu.pipeline_mode<synchronous>, transform_indices = @transform_6, window_bounds = array<i64: 36, 128>}, {pipeline_mode = #tpu.pipeline_mode<synchronous>, transform_indices = @transform_7, window_bounds = array<i64: 1, 128>}, {transform_indices = @transform_8, window_bounds = array<i64: 1, 1, 48>}]} {
    %c0 = arith.constant 0 : index
    %c0_0 = arith.constant 0 : index
    %c0_1 = arith.constant 0 : index
    %0 = vector.load %arg1[%c0, %c0_0, %c0_1] : memref<1x12x784xf32, #tpu.memory_space<vmem>>, vector<1x12x784xf32>
    %1 = vector.shape_cast %0 : vector<1x12x784xf32> to vector<12x784xf32>
    %c0_2 = arith.constant 0 : index
    %c0_3 = arith.constant 0 : index
    %2 = vector.load %arg3[%c0_2, %c0_3] : memref<784x128xf32, #tpu.memory_space<vmem>>, vector<784x128xf32>
    %cst = arith.constant dense<0.000000e+00> : vector<12x128xf32>
    %3 = tpu.matmul %1, %2, %cst {dimension_numbers = #tpu.dot_dimension_numbers<[1], [0], [0], [1], [0, 0, 1, 1], [], []>} : vector<12x784xf32>, vector<784x128xf32>, vector<12x128xf32> -> vector<12x128xf32>
    %c0_4 = arith.constant 0 : index
    %c0_5 = arith.constant 0 : index
    %c0_6 = arith.constant 0 : index
    %4 = vector.load %arg2[%c0_4, %c0_5, %c0_6] : memref<1x12x4xf32, #tpu.memory_space<vmem>>, vector<1x12x4xf32>
    %5 = vector.shape_cast %4 : vector<1x12x4xf32> to vector<12x4xf32>
    %c0_7 = arith.constant 0 : index
    %c0_8 = arith.constant 0 : index
    %6 = vector.load %arg4[%c0_7, %c0_8] : memref<4x128xf32, #tpu.memory_space<vmem>>, vector<4x128xf32>
    %cst_9 = arith.constant dense<0.000000e+00> : vector<12x128xf32>
    %7 = tpu.matmul %5, %6, %cst_9 {dimension_numbers = #tpu.dot_dimension_numbers<[1], [0], [0], [1], [0, 0, 1, 1], [], []>} : vector<12x4xf32>, vector<4x128xf32>, vector<12x128xf32> -> vector<12x128xf32>
    %8 = arith.addf %3, %7 : vector<12x128xf32>
    %c0_10 = arith.constant 0 : index
    %c0_11 = arith.constant 0 : index
    %9 = vector.load %arg6[%c0_10, %c0_11] : memref<1x128xf32, #tpu.memory_space<vmem>>, vector<1x128xf32>
    %10 = vector.broadcast %9 : vector<1x128xf32> to vector<12x128xf32>
    %11 = arith.addf %8, %10 : vector<12x128xf32>
    %c0_12 = arith.constant 0 : index
    %c0_13 = arith.constant 0 : index
    %12 = vector.load %arg10[%c0_12, %c0_13] : memref<12x128xf32, #tpu.memory_space<vmem>>, vector<12x128xf32>
    tpu.vector_store %arg10[%c0_12, %c0_13], %11 {strides = array<i32>} : memref<12x128xf32, #tpu.memory_space<vmem>>, vector<12x128xf32>,
    %c0_14 = arith.constant 0 : index
    %c0_15 = arith.constant 0 : index
    %13 = vector.load %arg5[%c0_14, %c0_15] : memref<32x128xf32, #tpu.memory_space<vmem>>, vector<32x128xf32>
    %c0_16 = arith.constant 0 : index
    %c0_17 = arith.constant 0 : index
    %14 = vector.load %arg7[%c0_16, %c0_17] : memref<36x128xf32, #tpu.memory_space<vmem>>, vector<36x128xf32>
    %c0_18 = arith.constant 0 : index
    %c0_19 = arith.constant 0 : index
    %15 = vector.load %arg8[%c0_18, %c0_19] : memref<1x128xf32, #tpu.memory_space<vmem>>, vector<1x128xf32>
    %cst_20 = arith.constant 0.000000e+00 : f32
    %16 = vector.broadcast %cst_20 : f32 to vector<1x32xf32>
    %cst_21 = arith.constant 0.000000e+00 : f32
    %17 = vector.broadcast %cst_21 : f32 to vector<1x32xf32>
    %cst_22 = arith.constant 0.000000e+00 : f32
    %18 = vector.broadcast %cst_22 : f32 to vector<1x4xf32>
    %cst_23 = arith.constant 0.000000e+00 : f32
    %19 = vector.broadcast %cst_23 : f32 to vector<1x4xf32>
    %c0_24 = arith.constant 0 : index
    %c0_25 = arith.constant 0 : index
    %20 = vector.load %arg10[%c0_24, %c0_25] : memref<12x128xf32, #tpu.memory_space<vmem>>, vector<1x128xf32>
    %cst_26 = arith.constant dense<0.000000e+00> : vector<1x128xf32>
    %21 = tpu.matmul %16, %13, %cst_26 {dimension_numbers = #tpu.dot_dimension_numbers<[1], [0], [0], [1], [0, 0, 1, 1], [], []>} : vector<1x32xf32>, vector<32x128xf32>, vector<1x128xf32> -> vector<1x128xf32>
    %22 = arith.addf %20, %21 : vector<1x128xf32>
    %23 = vector.extract_strided_slice %22 {offsets = [0, 0], sizes = [1, 32], strides = [1, 1]} : vector<1x128xf32> to vector<1x32xf32>
    %24 = arith.negf %23 : vector<1x32xf32>
    %25 = math.exp %24 : vector<1x32xf32>
    %cst_27 = arith.constant 1.000000e+00 : f32
    %26 = vector.broadcast %cst_27 : f32 to vector<1x32xf32>
    %27 = arith.addf %26, %25 : vector<1x32xf32>
    %28 = arith.divf %26, %27 : vector<1x32xf32>
    %29 = vector.extract_strided_slice %22 {offsets = [0, 32], sizes = [1, 32], strides = [1, 1]} : vector<1x128xf32> to vector<1x32xf32>
    %30 = arith.negf %29 : vector<1x32xf32>
    %31 = math.exp %30 : vector<1x32xf32>
    %cst_28 = arith.constant 1.000000e+00 : f32
    %32 = vector.broadcast %cst_28 : f32 to vector<1x32xf32>
    %33 = arith.addf %32, %31 : vector<1x32xf32>
    %34 = arith.divf %32, %33 : vector<1x32xf32>
    %35 = vector.extract_strided_slice %22 {offsets = [0, 64], sizes = [1, 32], strides = [1, 1]} : vector<1x128xf32> to vector<1x32xf32>
    %36 = math.tanh %35 : vector<1x32xf32>
    %37 = vector.extract_strided_slice %22 {offsets = [0, 96], sizes = [1, 32], strides = [1, 1]} : vector<1x128xf32> to vector<1x32xf32>
    %38 = arith.negf %37 : vector<1x32xf32>
    %39 = math.exp %38 : vector<1x32xf32>
    %cst_29 = arith.constant 1.000000e+00 : f32
    %40 = vector.broadcast %cst_29 : f32 to vector<1x32xf32>
    %41 = arith.addf %40, %39 : vector<1x32xf32>
    %42 = arith.divf %40, %41 : vector<1x32xf32>
    %43 = arith.mulf %34, %17 : vector<1x32xf32>
    %44 = arith.mulf %28, %36 : vector<1x32xf32>
    %45 = arith.addf %43, %44 : vector<1x32xf32>
    %46 = math.tanh %45 : vector<1x32xf32>
    %47 = arith.mulf %42, %46 : vector<1x32xf32>
    %48 = tpu.concatenate %47, %18 in 1 : vector<1x32xf32>, vector<1x4xf32> -> vector<1x36xf32>
    %cst_30 = arith.constant dense<0.000000e+00> : vector<1x128xf32>
    %49 = tpu.matmul %48, %14, %cst_30 {dimension_numbers = #tpu.dot_dimension_numbers<[1], [0], [0], [1], [0, 0, 1, 1], [], []>} : vector<1x36xf32>, vector<36x128xf32>, vector<1x128xf32> -> vector<1x128xf32>
    %50 = arith.addf %49, %15 : vector<1x128xf32>
    %51 = vector.extract_strided_slice %50 {offsets = [0, 0], sizes = [1, 4], strides = [1, 1]} : vector<1x128xf32> to vector<1x4xf32>
    %52 = arith.negf %51 : vector<1x4xf32>
    %53 = math.exp %52 : vector<1x4xf32>
    %cst_31 = arith.constant 1.000000e+00 : f32
    %54 = vector.broadcast %cst_31 : f32 to vector<1x4xf32>
    %55 = arith.addf %54, %53 : vector<1x4xf32>
    %56 = arith.divf %54, %55 : vector<1x4xf32>
    %57 = vector.extract_strided_slice %50 {offsets = [0, 4], sizes = [1, 4], strides = [1, 1]} : vector<1x128xf32> to vector<1x4xf32>
    %58 = arith.negf %57 : vector<1x4xf32>
    %59 = math.exp %58 : vector<1x4xf32>
    %cst_32 = arith.constant 1.000000e+00 : f32
    %60 = vector.broadcast %cst_32 : f32 to vector<1x4xf32>
    %61 = arith.addf %60, %59 : vector<1x4xf32>
    %62 = arith.divf %60, %61 : vector<1x4xf32>
    %63 = vector.extract_strided_slice %50 {offsets = [0, 8], sizes = [1, 4], strides = [1, 1]} : vector<1x128xf32> to vector<1x4xf32>
    %64 = math.tanh %63 : vector<1x4xf32>
    %65 = vector.extract_strided_slice %50 {offsets = [0, 12], sizes = [1, 4], strides = [1, 1]} : vector<1x128xf32> to vector<1x4xf32>
    %66 = arith.negf %65 : vector<1x4xf32>
    %67 = math.exp %66 : vector<1x4xf32>
    %cst_33 = arith.constant 1.000000e+00 : f32
    %68 = vector.broadcast %cst_33 : f32 to vector<1x4xf32>
    %69 = arith.addf %68, %67 : vector<1x4xf32>
    %70 = arith.divf %68, %69 : vector<1x4xf32>
    %71 = arith.mulf %62, %19 : vector<1x4xf32>
    %72 = arith.mulf %56, %64 : vector<1x4xf32>
    %73 = arith.addf %71, %72 : vector<1x4xf32>
    %74 = math.tanh %73 : vector<1x4xf32>
    %75 = arith.mulf %70, %74 : vector<1x4xf32>
    %c0_34 = arith.constant 0 : index
    %c0_35 = arith.constant 0 : index
    %c0_36 = arith.constant 0 : index
    %76 = vector.load %arg9[%c0_34, %c0_35, %c0_36] : memref<1x1x48xf32, #tpu.memory_space<vmem>>, vector<1x1x4xf32>
    %77 = vector.shape_cast %76 : vector<1x1x4xf32> to vector<1x4xf32>
    %78 = vector.shape_cast %75 : vector<1x4xf32> to vector<1x1x4xf32>
    tpu.vector_store %arg9[%c0_34, %c0_35, %c0_36], %78 {strides = array<i32>} : memref<1x1x48xf32, #tpu.memory_space<vmem>>, vector<1x1x4xf32>,
    %c1 = arith.constant 1 : index
    %c0_37 = arith.constant 0 : index
    %79 = vector.load %arg10[%c1, %c0_37] : memref<12x128xf32, #tpu.memory_space<vmem>>, vector<1x128xf32>
    %cst_38 = arith.constant dense<0.000000e+00> : vector<1x128xf32>
    %80 = tpu.matmul %47, %13, %cst_38 {dimension_numbers = #tpu.dot_dimension_numbers<[1], [0], [0], [1], [0, 0, 1, 1], [], []>} : vector<1x32xf32>, vector<32x128xf32>, vector<1x128xf32> -> vector<1x128xf32>
    %81 = arith.addf %79, %80 : vector<1x128xf32>
    %82 = vector.extract_strided_slice %81 {offsets = [0, 0], sizes = [1, 32], strides = [1, 1]} : vector<1x128xf32> to vector<1x32xf32>
    %83 = arith.negf %82 : vector<1x32xf32>
    %84 = math.exp %83 : vector<1x32xf32>
    %cst_39 = arith.constant 1.000000e+00 : f32
    %85 = vector.broadcast %cst_39 : f32 to vector<1x32xf32>
    %86 = arith.addf %85, %84 : vector<1x32xf32>
    %87 = arith.divf %85, %86 : vector<1x32xf32>
    %88 = vector.extract_strided_slice %81 {offsets = [0, 32], sizes = [1, 32], strides = [1, 1]} : vector<1x128xf32> to vector<1x32xf32>
    %89 = arith.negf %88 : vector<1x32xf32>
    %90 = math.exp %89 : vector<1x32xf32>
    %cst_40 = arith.constant 1.000000e+00 : f32
    %91 = vector.broadcast %cst_40 : f32 to vector<1x32xf32>
    %92 = arith.addf %91, %90 : vector<1x32xf32>
    %93 = arith.divf %91, %92 : vector<1x32xf32>
    %94 = vector.extract_strided_slice %81 {offsets = [0, 64], sizes = [1, 32], strides = [1, 1]} : vector<1x128xf32> to vector<1x32xf32>
    %95 = math.tanh %94 : vector<1x32xf32>
    %96 = vector.extract_strided_slice %81 {offsets = [0, 96], sizes = [1, 32], strides = [1, 1]} : vector<1x128xf32> to vector<1x32xf32>
    %97 = arith.negf %96 : vector<1x32xf32>
    %98 = math.exp %97 : vector<1x32xf32>
    %cst_41 = arith.constant 1.000000e+00 : f32
    %99 = vector.broadcast %cst_41 : f32 to vector<1x32xf32>
    %100 = arith.addf %99, %98 : vector<1x32xf32>
    %101 = arith.divf %99, %100 : vector<1x32xf32>
    %102 = arith.mulf %93, %45 : vector<1x32xf32>
    %103 = arith.mulf %87, %95 : vector<1x32xf32>
    %104 = arith.addf %102, %103 : vector<1x32xf32>
    %105 = math.tanh %104 : vector<1x32xf32>
    %106 = arith.mulf %101, %105 : vector<1x32xf32>
    %107 = tpu.concatenate %106, %75 in 1 : vector<1x32xf32>, vector<1x4xf32> -> vector<1x36xf32>
    %cst_42 = arith.constant dense<0.000000e+00> : vector<1x128xf32>
    %108 = tpu.matmul %107, %14, %cst_42 {dimension_numbers = #tpu.dot_dimension_numbers<[1], [0], [0], [1], [0, 0, 1, 1], [], []>} : vector<1x36xf32>, vector<36x128xf32>, vector<1x128xf32> -> vector<1x128xf32>
    %109 = arith.addf %108, %15 : vector<1x128xf32>
    %110 = vector.extract_strided_slice %109 {offsets = [0, 0], sizes = [1, 4], strides = [1, 1]} : vector<1x128xf32> to vector<1x4xf32>
    %111 = arith.negf %110 : vector<1x4xf32>
    %112 = math.exp %111 : vector<1x4xf32>
    %cst_43 = arith.constant 1.000000e+00 : f32
    %113 = vector.broadcast %cst_43 : f32 to vector<1x4xf32>
    %114 = arith.addf %113, %112 : vector<1x4xf32>
    %115 = arith.divf %113, %114 : vector<1x4xf32>
    %116 = vector.extract_strided_slice %109 {offsets = [0, 4], sizes = [1, 4], strides = [1, 1]} : vector<1x128xf32> to vector<1x4xf32>
    %117 = arith.negf %116 : vector<1x4xf32>
    %118 = math.exp %117 : vector<1x4xf32>
    %cst_44 = arith.constant 1.000000e+00 : f32
    %119 = vector.broadcast %cst_44 : f32 to vector<1x4xf32>
    %120 = arith.addf %119, %118 : vector<1x4xf32>
    %121 = arith.divf %119, %120 : vector<1x4xf32>
    %122 = vector.extract_strided_slice %109 {offsets = [0, 8], sizes = [1, 4], strides = [1, 1]} : vector<1x128xf32> to vector<1x4xf32>
    %123 = math.tanh %122 : vector<1x4xf32>
    %124 = vector.extract_strided_slice %109 {offsets = [0, 12], sizes = [1, 4], strides = [1, 1]} : vector<1x128xf32> to vector<1x4xf32>
    %125 = arith.negf %124 : vector<1x4xf32>
    %126 = math.exp %125 : vector<1x4xf32>
    %cst_45 = arith.constant 1.000000e+00 : f32
    %127 = vector.broadcast %cst_45 : f32 to vector<1x4xf32>
    %128 = arith.addf %127, %126 : vector<1x4xf32>
    %129 = arith.divf %127, %128 : vector<1x4xf32>
    %130 = arith.mulf %121, %73 : vector<1x4xf32>
    %131 = arith.mulf %115, %123 : vector<1x4xf32>
    %132 = arith.addf %130, %131 : vector<1x4xf32>
    %133 = math.tanh %132 : vector<1x4xf32>
    %134 = arith.mulf %129, %133 : vector<1x4xf32>
    %c0_46 = arith.constant 0 : index
    %c0_47 = arith.constant 0 : index
    %c4 = arith.constant 4 : index
    %135 = vector.load %arg9[%c0_46, %c0_47, %c4] : memref<1x1x48xf32, #tpu.memory_space<vmem>>, vector<1x1x4xf32>
    %136 = vector.shape_cast %135 : vector<1x1x4xf32> to vector<1x4xf32>
    %137 = vector.shape_cast %134 : vector<1x4xf32> to vector<1x1x4xf32>
    tpu.vector_store %arg9[%c0_46, %c0_47, %c4], %137 {strides = array<i32>} : memref<1x1x48xf32, #tpu.memory_space<vmem>>, vector<1x1x4xf32>,
    %c2 = arith.constant 2 : index
    %c0_48 = arith.constant 0 : index
    %138 = vector.load %arg10[%c2, %c0_48] : memref<12x128xf32, #tpu.memory_space<vmem>>, vector<1x128xf32>
    %cst_49 = arith.constant dense<0.000000e+00> : vector<1x128xf32>
    %139 = tpu.matmul %106, %13, %cst_49 {dimension_numbers = #tpu.dot_dimension_numbers<[1], [0], [0], [1], [0, 0, 1, 1], [], []>} : vector<1x32xf32>, vector<32x128xf32>, vector<1x128xf32> -> vector<1x128xf32>
    %140 = arith.addf %138, %139 : vector<1x128xf32>
    %141 = vector.extract_strided_slice %140 {offsets = [0, 0], sizes = [1, 32], strides = [1, 1]} : vector<1x128xf32> to vector<1x32xf32>
    %142 = arith.negf %141 : vector<1x32xf32>
    %143 = math.exp %142 : vector<1x32xf32>
    %cst_50 = arith.constant 1.000000e+00 : f32
    %144 = vector.broadcast %cst_50 : f32 to vector<1x32xf32>
    %145 = arith.addf %144, %143 : vector<1x32xf32>
    %146 = arith.divf %144, %145 : vector<1x32xf32>
    %147 = vector.extract_strided_slice %140 {offsets = [0, 32], sizes = [1, 32], strides = [1, 1]} : vector<1x128xf32> to vector<1x32xf32>
    %148 = arith.negf %147 : vector<1x32xf32>
    %149 = math.exp %148 : vector<1x32xf32>
    %cst_51 = arith.constant 1.000000e+00 : f32
    %150 = vector.broadcast %cst_51 : f32 to vector<1x32xf32>
    %151 = arith.addf %150, %149 : vector<1x32xf32>
    %152 = arith.divf %150, %151 : vector<1x32xf32>
    %153 = vector.extract_strided_slice %140 {offsets = [0, 64], sizes = [1, 32], strides = [1, 1]} : vector<1x128xf32> to vector<1x32xf32>
    %154 = math.tanh %153 : vector<1x32xf32>
    %155 = vector.extract_strided_slice %140 {offsets = [0, 96], sizes = [1, 32], strides = [1, 1]} : vector<1x128xf32> to vector<1x32xf32>
    %156 = arith.negf %155 : vector<1x32xf32>
    %157 = math.exp %156 : vector<1x32xf32>
    %cst_52 = arith.constant 1.000000e+00 : f32
    %158 = vector.broadcast %cst_52 : f32 to vector<1x32xf32>
    %159 = arith.addf %158, %157 : vector<1x32xf32>
    %160 = arith.divf %158, %159 : vector<1x32xf32>
    %161 = arith.mulf %152, %104 : vector<1x32xf32>
    %162 = arith.mulf %146, %154 : vector<1x32xf32>
    %163 = arith.addf %161, %162 : vector<1x32xf32>
    %164 = math.tanh %163 : vector<1x32xf32>
    %165 = arith.mulf %160, %164 : vector<1x32xf32>
    %166 = tpu.concatenate %165, %134 in 1 : vector<1x32xf32>, vector<1x4xf32> -> vector<1x36xf32>
    %cst_53 = arith.constant dense<0.000000e+00> : vector<1x128xf32>
    %167 = tpu.matmul %166, %14, %cst_53 {dimension_numbers = #tpu.dot_dimension_numbers<[1], [0], [0], [1], [0, 0, 1, 1], [], []>} : vector<1x36xf32>, vector<36x128xf32>, vector<1x128xf32> -> vector<1x128xf32>
    %168 = arith.addf %167, %15 : vector<1x128xf32>
    %169 = vector.extract_strided_slice %168 {offsets = [0, 0], sizes = [1, 4], strides = [1, 1]} : vector<1x128xf32> to vector<1x4xf32>
    %170 = arith.negf %169 : vector<1x4xf32>
    %171 = math.exp %170 : vector<1x4xf32>
    %cst_54 = arith.constant 1.000000e+00 : f32
    %172 = vector.broadcast %cst_54 : f32 to vector<1x4xf32>
    %173 = arith.addf %172, %171 : vector<1x4xf32>
    %174 = arith.divf %172, %173 : vector<1x4xf32>
    %175 = vector.extract_strided_slice %168 {offsets = [0, 4], sizes = [1, 4], strides = [1, 1]} : vector<1x128xf32> to vector<1x4xf32>
    %176 = arith.negf %175 : vector<1x4xf32>
    %177 = math.exp %176 : vector<1x4xf32>
    %cst_55 = arith.constant 1.000000e+00 : f32
    %178 = vector.broadcast %cst_55 : f32 to vector<1x4xf32>
    %179 = arith.addf %178, %177 : vector<1x4xf32>
    %180 = arith.divf %178, %179 : vector<1x4xf32>
    %181 = vector.extract_strided_slice %168 {offsets = [0, 8], sizes = [1, 4], strides = [1, 1]} : vector<1x128xf32> to vector<1x4xf32>
    %182 = math.tanh %181 : vector<1x4xf32>
    %183 = vector.extract_strided_slice %168 {offsets = [0, 12], sizes = [1, 4], strides = [1, 1]} : vector<1x128xf32> to vector<1x4xf32>
    %184 = arith.negf %183 : vector<1x4xf32>
    %185 = math.exp %184 : vector<1x4xf32>
    %cst_56 = arith.constant 1.000000e+00 : f32
    %186 = vector.broadcast %cst_56 : f32 to vector<1x4xf32>
    %187 = arith.addf %186, %185 : vector<1x4xf32>
    %188 = arith.divf %186, %187 : vector<1x4xf32>
    %189 = arith.mulf %180, %132 : vector<1x4xf32>
    %190 = arith.mulf %174, %182 : vector<1x4xf32>
    %191 = arith.addf %189, %190 : vector<1x4xf32>
    %192 = math.tanh %191 : vector<1x4xf32>
    %193 = arith.mulf %188, %192 : vector<1x4xf32>
    %c0_57 = arith.constant 0 : index
    %c0_58 = arith.constant 0 : index
    %c8 = arith.constant 8 : index
    %194 = vector.load %arg9[%c0_57, %c0_58, %c8] : memref<1x1x48xf32, #tpu.memory_space<vmem>>, vector<1x1x4xf32>
    %195 = vector.shape_cast %194 : vector<1x1x4xf32> to vector<1x4xf32>
    %196 = vector.shape_cast %193 : vector<1x4xf32> to vector<1x1x4xf32>
    tpu.vector_store %arg9[%c0_57, %c0_58, %c8], %196 {strides = array<i32>} : memref<1x1x48xf32, #tpu.memory_space<vmem>>, vector<1x1x4xf32>,
    %c3 = arith.constant 3 : index
    %c0_59 = arith.constant 0 : index
    %197 = vector.load %arg10[%c3, %c0_59] : memref<12x128xf32, #tpu.memory_space<vmem>>, vector<1x128xf32>
    %cst_60 = arith.constant dense<0.000000e+00> : vector<1x128xf32>
    %198 = tpu.matmul %165, %13, %cst_60 {dimension_numbers = #tpu.dot_dimension_numbers<[1], [0], [0], [1], [0, 0, 1, 1], [], []>} : vector<1x32xf32>, vector<32x128xf32>, vector<1x128xf32> -> vector<1x128xf32>
    %199 = arith.addf %197, %198 : vector<1x128xf32>
    %200 = vector.extract_strided_slice %199 {offsets = [0, 0], sizes = [1, 32], strides = [1, 1]} : vector<1x128xf32> to vector<1x32xf32>
    %201 = arith.negf %200 : vector<1x32xf32>
    %202 = math.exp %201 : vector<1x32xf32>
    %cst_61 = arith.constant 1.000000e+00 : f32
    %203 = vector.broadcast %cst_61 : f32 to vector<1x32xf32>
    %204 = arith.addf %203, %202 : vector<1x32xf32>
    %205 = arith.divf %203, %204 : vector<1x32xf32>
    %206 = vector.extract_strided_slice %199 {offsets = [0, 32], sizes = [1, 32], strides = [1, 1]} : vector<1x128xf32> to vector<1x32xf32>
    %207 = arith.negf %206 : vector<1x32xf32>
    %208 = math.exp %207 : vector<1x32xf32>
    %cst_62 = arith.constant 1.000000e+00 : f32
    %209 = vector.broadcast %cst_62 : f32 to vector<1x32xf32>
    %210 = arith.addf %209, %208 : vector<1x32xf32>
    %211 = arith.divf %209, %210 : vector<1x32xf32>
    %212 = vector.extract_strided_slice %199 {offsets = [0, 64], sizes = [1, 32], strides = [1, 1]} : vector<1x128xf32> to vector<1x32xf32>
    %213 = math.tanh %212 : vector<1x32xf32>
    %214 = vector.extract_strided_slice %199 {offsets = [0, 96], sizes = [1, 32], strides = [1, 1]} : vector<1x128xf32> to vector<1x32xf32>
    %215 = arith.negf %214 : vector<1x32xf32>
    %216 = math.exp %215 : vector<1x32xf32>
    %cst_63 = arith.constant 1.000000e+00 : f32
    %217 = vector.broadcast %cst_63 : f32 to vector<1x32xf32>
    %218 = arith.addf %217, %216 : vector<1x32xf32>
    %219 = arith.divf %217, %218 : vector<1x32xf32>
    %220 = arith.mulf %211, %163 : vector<1x32xf32>
    %221 = arith.mulf %205, %213 : vector<1x32xf32>
    %222 = arith.addf %220, %221 : vector<1x32xf32>
    %223 = math.tanh %222 : vector<1x32xf32>
    %224 = arith.mulf %219, %223 : vector<1x32xf32>
    %225 = tpu.concatenate %224, %193 in 1 : vector<1x32xf32>, vector<1x4xf32> -> vector<1x36xf32>
    %cst_64 = arith.constant dense<0.000000e+00> : vector<1x128xf32>
    %226 = tpu.matmul %225, %14, %cst_64 {dimension_numbers = #tpu.dot_dimension_numbers<[1], [0], [0], [1], [0, 0, 1, 1], [], []>} : vector<1x36xf32>, vector<36x128xf32>, vector<1x128xf32> -> vector<1x128xf32>
    %227 = arith.addf %226, %15 : vector<1x128xf32>
    %228 = vector.extract_strided_slice %227 {offsets = [0, 0], sizes = [1, 4], strides = [1, 1]} : vector<1x128xf32> to vector<1x4xf32>
    %229 = arith.negf %228 : vector<1x4xf32>
    %230 = math.exp %229 : vector<1x4xf32>
    %cst_65 = arith.constant 1.000000e+00 : f32
    %231 = vector.broadcast %cst_65 : f32 to vector<1x4xf32>
    %232 = arith.addf %231, %230 : vector<1x4xf32>
    %233 = arith.divf %231, %232 : vector<1x4xf32>
    %234 = vector.extract_strided_slice %227 {offsets = [0, 4], sizes = [1, 4], strides = [1, 1]} : vector<1x128xf32> to vector<1x4xf32>
    %235 = arith.negf %234 : vector<1x4xf32>
    %236 = math.exp %235 : vector<1x4xf32>
    %cst_66 = arith.constant 1.000000e+00 : f32
    %237 = vector.broadcast %cst_66 : f32 to vector<1x4xf32>
    %238 = arith.addf %237, %236 : vector<1x4xf32>
    %239 = arith.divf %237, %238 : vector<1x4xf32>
    %240 = vector.extract_strided_slice %227 {offsets = [0, 8], sizes = [1, 4], strides = [1, 1]} : vector<1x128xf32> to vector<1x4xf32>
    %241 = math.tanh %240 : vector<1x4xf32>
    %242 = vector.extract_strided_slice %227 {offsets = [0, 12], sizes = [1, 4], strides = [1, 1]} : vector<1x128xf32> to vector<1x4xf32>
    %243 = arith.negf %242 : vector<1x4xf32>
    %244 = math.exp %243 : vector<1x4xf32>
    %cst_67 = arith.constant 1.000000e+00 : f32
    %245 = vector.broadcast %cst_67 : f32 to vector<1x4xf32>
    %246 = arith.addf %245, %244 : vector<1x4xf32>
    %247 = arith.divf %245, %246 : vector<1x4xf32>
    %248 = arith.mulf %239, %191 : vector<1x4xf32>
    %249 = arith.mulf %233, %241 : vector<1x4xf32>
    %250 = arith.addf %248, %249 : vector<1x4xf32>
    %251 = math.tanh %250 : vector<1x4xf32>
    %252 = arith.mulf %247, %251 : vector<1x4xf32>
    %c0_68 = arith.constant 0 : index
    %c0_69 = arith.constant 0 : index
    %c12 = arith.constant 12 : index
    %253 = vector.load %arg9[%c0_68, %c0_69, %c12] : memref<1x1x48xf32, #tpu.memory_space<vmem>>, vector<1x1x4xf32>
    %254 = vector.shape_cast %253 : vector<1x1x4xf32> to vector<1x4xf32>
    %255 = vector.shape_cast %252 : vector<1x4xf32> to vector<1x1x4xf32>
    tpu.vector_store %arg9[%c0_68, %c0_69, %c12], %255 {strides = array<i32>} : memref<1x1x48xf32, #tpu.memory_space<vmem>>, vector<1x1x4xf32>,
    %c4_70 = arith.constant 4 : index
    %c0_71 = arith.constant 0 : index
    %256 = vector.load %arg10[%c4_70, %c0_71] : memref<12x128xf32, #tpu.memory_space<vmem>>, vector<1x128xf32>
    %cst_72 = arith.constant dense<0.000000e+00> : vector<1x128xf32>
    %257 = tpu.matmul %224, %13, %cst_72 {dimension_numbers = #tpu.dot_dimension_numbers<[1], [0], [0], [1], [0, 0, 1, 1], [], []>} : vector<1x32xf32>, vector<32x128xf32>, vector<1x128xf32> -> vector<1x128xf32>
    %258 = arith.addf %256, %257 : vector<1x128xf32>
    %259 = vector.extract_strided_slice %258 {offsets = [0, 0], sizes = [1, 32], strides = [1, 1]} : vector<1x128xf32> to vector<1x32xf32>
    %260 = arith.negf %259 : vector<1x32xf32>
    %261 = math.exp %260 : vector<1x32xf32>
    %cst_73 = arith.constant 1.000000e+00 : f32
    %262 = vector.broadcast %cst_73 : f32 to vector<1x32xf32>
    %263 = arith.addf %262, %261 : vector<1x32xf32>
    %264 = arith.divf %262, %263 : vector<1x32xf32>
    %265 = vector.extract_strided_slice %258 {offsets = [0, 32], sizes = [1, 32], strides = [1, 1]} : vector<1x128xf32> to vector<1x32xf32>
    %266 = arith.negf %265 : vector<1x32xf32>
    %267 = math.exp %266 : vector<1x32xf32>
    %cst_74 = arith.constant 1.000000e+00 : f32
    %268 = vector.broadcast %cst_74 : f32 to vector<1x32xf32>
    %269 = arith.addf %268, %267 : vector<1x32xf32>
    %270 = arith.divf %268, %269 : vector<1x32xf32>
    %271 = vector.extract_strided_slice %258 {offsets = [0, 64], sizes = [1, 32], strides = [1, 1]} : vector<1x128xf32> to vector<1x32xf32>
    %272 = math.tanh %271 : vector<1x32xf32>
    %273 = vector.extract_strided_slice %258 {offsets = [0, 96], sizes = [1, 32], strides = [1, 1]} : vector<1x128xf32> to vector<1x32xf32>
    %274 = arith.negf %273 : vector<1x32xf32>
    %275 = math.exp %274 : vector<1x32xf32>
    %cst_75 = arith.constant 1.000000e+00 : f32
    %276 = vector.broadcast %cst_75 : f32 to vector<1x32xf32>
    %277 = arith.addf %276, %275 : vector<1x32xf32>
    %278 = arith.divf %276, %277 : vector<1x32xf32>
    %279 = arith.mulf %270, %222 : vector<1x32xf32>
    %280 = arith.mulf %264, %272 : vector<1x32xf32>
    %281 = arith.addf %279, %280 : vector<1x32xf32>
    %282 = math.tanh %281 : vector<1x32xf32>
    %283 = arith.mulf %278, %282 : vector<1x32xf32>
    %284 = tpu.concatenate %283, %252 in 1 : vector<1x32xf32>, vector<1x4xf32> -> vector<1x36xf32>
    %cst_76 = arith.constant dense<0.000000e+00> : vector<1x128xf32>
    %285 = tpu.matmul %284, %14, %cst_76 {dimension_numbers = #tpu.dot_dimension_numbers<[1], [0], [0], [1], [0, 0, 1, 1], [], []>} : vector<1x36xf32>, vector<36x128xf32>, vector<1x128xf32> -> vector<1x128xf32>
    %286 = arith.addf %285, %15 : vector<1x128xf32>
    %287 = vector.extract_strided_slice %286 {offsets = [0, 0], sizes = [1, 4], strides = [1, 1]} : vector<1x128xf32> to vector<1x4xf32>
    %288 = arith.negf %287 : vector<1x4xf32>
    %289 = math.exp %288 : vector<1x4xf32>
    %cst_77 = arith.constant 1.000000e+00 : f32
    %290 = vector.broadcast %cst_77 : f32 to vector<1x4xf32>
    %291 = arith.addf %290, %289 : vector<1x4xf32>
    %292 = arith.divf %290, %291 : vector<1x4xf32>
    %293 = vector.extract_strided_slice %286 {offsets = [0, 4], sizes = [1, 4], strides = [1, 1]} : vector<1x128xf32> to vector<1x4xf32>
    %294 = arith.negf %293 : vector<1x4xf32>
    %295 = math.exp %294 : vector<1x4xf32>
    %cst_78 = arith.constant 1.000000e+00 : f32
    %296 = vector.broadcast %cst_78 : f32 to vector<1x4xf32>
    %297 = arith.addf %296, %295 : vector<1x4xf32>
    %298 = arith.divf %296, %297 : vector<1x4xf32>
    %299 = vector.extract_strided_slice %286 {offsets = [0, 8], sizes = [1, 4], strides = [1, 1]} : vector<1x128xf32> to vector<1x4xf32>
    %300 = math.tanh %299 : vector<1x4xf32>
    %301 = vector.extract_strided_slice %286 {offsets = [0, 12], sizes = [1, 4], strides = [1, 1]} : vector<1x128xf32> to vector<1x4xf32>
    %302 = arith.negf %301 : vector<1x4xf32>
    %303 = math.exp %302 : vector<1x4xf32>
    %cst_79 = arith.constant 1.000000e+00 : f32
    %304 = vector.broadcast %cst_79 : f32 to vector<1x4xf32>
    %305 = arith.addf %304, %303 : vector<1x4xf32>
    %306 = arith.divf %304, %305 : vector<1x4xf32>
    %307 = arith.mulf %298, %250 : vector<1x4xf32>
    %308 = arith.mulf %292, %300 : vector<1x4xf32>
    %309 = arith.addf %307, %308 : vector<1x4xf32>
    %310 = math.tanh %309 : vector<1x4xf32>
    %311 = arith.mulf %306, %310 : vector<1x4xf32>
    %c0_80 = arith.constant 0 : index
    %c0_81 = arith.constant 0 : index
    %c16 = arith.constant 16 : index
    %312 = vector.load %arg9[%c0_80, %c0_81, %c16] : memref<1x1x48xf32, #tpu.memory_space<vmem>>, vector<1x1x4xf32>
    %313 = vector.shape_cast %312 : vector<1x1x4xf32> to vector<1x4xf32>
    %314 = vector.shape_cast %311 : vector<1x4xf32> to vector<1x1x4xf32>
    tpu.vector_store %arg9[%c0_80, %c0_81, %c16], %314 {strides = array<i32>} : memref<1x1x48xf32, #tpu.memory_space<vmem>>, vector<1x1x4xf32>,
    %c5 = arith.constant 5 : index
    %c0_82 = arith.constant 0 : index
    %315 = vector.load %arg10[%c5, %c0_82] : memref<12x128xf32, #tpu.memory_space<vmem>>, vector<1x128xf32>
    %cst_83 = arith.constant dense<0.000000e+00> : vector<1x128xf32>
    %316 = tpu.matmul %283, %13, %cst_83 {dimension_numbers = #tpu.dot_dimension_numbers<[1], [0], [0], [1], [0, 0, 1, 1], [], []>} : vector<1x32xf32>, vector<32x128xf32>, vector<1x128xf32> -> vector<1x128xf32>
    %317 = arith.addf %315, %316 : vector<1x128xf32>
    %318 = vector.extract_strided_slice %317 {offsets = [0, 0], sizes = [1, 32], strides = [1, 1]} : vector<1x128xf32> to vector<1x32xf32>
    %319 = arith.negf %318 : vector<1x32xf32>
    %320 = math.exp %319 : vector<1x32xf32>
    %cst_84 = arith.constant 1.000000e+00 : f32
    %321 = vector.broadcast %cst_84 : f32 to vector<1x32xf32>
    %322 = arith.addf %321, %320 : vector<1x32xf32>
    %323 = arith.divf %321, %322 : vector<1x32xf32>
    %324 = vector.extract_strided_slice %317 {offsets = [0, 32], sizes = [1, 32], strides = [1, 1]} : vector<1x128xf32> to vector<1x32xf32>
    %325 = arith.negf %324 : vector<1x32xf32>
    %326 = math.exp %325 : vector<1x32xf32>
    %cst_85 = arith.constant 1.000000e+00 : f32
    %327 = vector.broadcast %cst_85 : f32 to vector<1x32xf32>
    %328 = arith.addf %327, %326 : vector<1x32xf32>
    %329 = arith.divf %327, %328 : vector<1x32xf32>
    %330 = vector.extract_strided_slice %317 {offsets = [0, 64], sizes = [1, 32], strides = [1, 1]} : vector<1x128xf32> to vector<1x32xf32>
    %331 = math.tanh %330 : vector<1x32xf32>
    %332 = vector.extract_strided_slice %317 {offsets = [0, 96], sizes = [1, 32], strides = [1, 1]} : vector<1x128xf32> to vector<1x32xf32>
    %333 = arith.negf %332 : vector<1x32xf32>
    %334 = math.exp %333 : vector<1x32xf32>
    %cst_86 = arith.constant 1.000000e+00 : f32
    %335 = vector.broadcast %cst_86 : f32 to vector<1x32xf32>
    %336 = arith.addf %335, %334 : vector<1x32xf32>
    %337 = arith.divf %335, %336 : vector<1x32xf32>
    %338 = arith.mulf %329, %281 : vector<1x32xf32>
    %339 = arith.mulf %323, %331 : vector<1x32xf32>
    %340 = arith.addf %338, %339 : vector<1x32xf32>
    %341 = math.tanh %340 : vector<1x32xf32>
    %342 = arith.mulf %337, %341 : vector<1x32xf32>
    %343 = tpu.concatenate %342, %311 in 1 : vector<1x32xf32>, vector<1x4xf32> -> vector<1x36xf32>
    %cst_87 = arith.constant dense<0.000000e+00> : vector<1x128xf32>
    %344 = tpu.matmul %343, %14, %cst_87 {dimension_numbers = #tpu.dot_dimension_numbers<[1], [0], [0], [1], [0, 0, 1, 1], [], []>} : vector<1x36xf32>, vector<36x128xf32>, vector<1x128xf32> -> vector<1x128xf32>
    %345 = arith.addf %344, %15 : vector<1x128xf32>
    %346 = vector.extract_strided_slice %345 {offsets = [0, 0], sizes = [1, 4], strides = [1, 1]} : vector<1x128xf32> to vector<1x4xf32>
    %347 = arith.negf %346 : vector<1x4xf32>
    %348 = math.exp %347 : vector<1x4xf32>
    %cst_88 = arith.constant 1.000000e+00 : f32
    %349 = vector.broadcast %cst_88 : f32 to vector<1x4xf32>
    %350 = arith.addf %349, %348 : vector<1x4xf32>
    %351 = arith.divf %349, %350 : vector<1x4xf32>
    %352 = vector.extract_strided_slice %345 {offsets = [0, 4], sizes = [1, 4], strides = [1, 1]} : vector<1x128xf32> to vector<1x4xf32>
    %353 = arith.negf %352 : vector<1x4xf32>
    %354 = math.exp %353 : vector<1x4xf32>
    %cst_89 = arith.constant 1.000000e+00 : f32
    %355 = vector.broadcast %cst_89 : f32 to vector<1x4xf32>
    %356 = arith.addf %355, %354 : vector<1x4xf32>
    %357 = arith.divf %355, %356 : vector<1x4xf32>
    %358 = vector.extract_strided_slice %345 {offsets = [0, 8], sizes = [1, 4], strides = [1, 1]} : vector<1x128xf32> to vector<1x4xf32>
    %359 = math.tanh %358 : vector<1x4xf32>
    %360 = vector.extract_strided_slice %345 {offsets = [0, 12], sizes = [1, 4], strides = [1, 1]} : vector<1x128xf32> to vector<1x4xf32>
    %361 = arith.negf %360 : vector<1x4xf32>
    %362 = math.exp %361 : vector<1x4xf32>
    %cst_90 = arith.constant 1.000000e+00 : f32
    %363 = vector.broadcast %cst_90 : f32 to vector<1x4xf32>
    %364 = arith.addf %363, %362 : vector<1x4xf32>
    %365 = arith.divf %363, %364 : vector<1x4xf32>
    %366 = arith.mulf %357, %309 : vector<1x4xf32>
    %367 = arith.mulf %351, %359 : vector<1x4xf32>
    %368 = arith.addf %366, %367 : vector<1x4xf32>
    %369 = math.tanh %368 : vector<1x4xf32>
    %370 = arith.mulf %365, %369 : vector<1x4xf32>
    %c0_91 = arith.constant 0 : index
    %c0_92 = arith.constant 0 : index
    %c20 = arith.constant 20 : index
    %371 = vector.load %arg9[%c0_91, %c0_92, %c20] : memref<1x1x48xf32, #tpu.memory_space<vmem>>, vector<1x1x4xf32>
    %372 = vector.shape_cast %371 : vector<1x1x4xf32> to vector<1x4xf32>
    %373 = vector.shape_cast %370 : vector<1x4xf32> to vector<1x1x4xf32>
    tpu.vector_store %arg9[%c0_91, %c0_92, %c20], %373 {strides = array<i32>} : memref<1x1x48xf32, #tpu.memory_space<vmem>>, vector<1x1x4xf32>,
    %c6 = arith.constant 6 : index
    %c0_93 = arith.constant 0 : index
    %374 = vector.load %arg10[%c6, %c0_93] : memref<12x128xf32, #tpu.memory_space<vmem>>, vector<1x128xf32>
    %cst_94 = arith.constant dense<0.000000e+00> : vector<1x128xf32>
    %375 = tpu.matmul %342, %13, %cst_94 {dimension_numbers = #tpu.dot_dimension_numbers<[1], [0], [0], [1], [0, 0, 1, 1], [], []>} : vector<1x32xf32>, vector<32x128xf32>, vector<1x128xf32> -> vector<1x128xf32>
    %376 = arith.addf %374, %375 : vector<1x128xf32>
    %377 = vector.extract_strided_slice %376 {offsets = [0, 0], sizes = [1, 32], strides = [1, 1]} : vector<1x128xf32> to vector<1x32xf32>
    %378 = arith.negf %377 : vector<1x32xf32>
    %379 = math.exp %378 : vector<1x32xf32>
    %cst_95 = arith.constant 1.000000e+00 : f32
    %380 = vector.broadcast %cst_95 : f32 to vector<1x32xf32>
    %381 = arith.addf %380, %379 : vector<1x32xf32>
    %382 = arith.divf %380, %381 : vector<1x32xf32>
    %383 = vector.extract_strided_slice %376 {offsets = [0, 32], sizes = [1, 32], strides = [1, 1]} : vector<1x128xf32> to vector<1x32xf32>
    %384 = arith.negf %383 : vector<1x32xf32>
    %385 = math.exp %384 : vector<1x32xf32>
    %cst_96 = arith.constant 1.000000e+00 : f32
    %386 = vector.broadcast %cst_96 : f32 to vector<1x32xf32>
    %387 = arith.addf %386, %385 : vector<1x32xf32>
    %388 = arith.divf %386, %387 : vector<1x32xf32>
    %389 = vector.extract_strided_slice %376 {offsets = [0, 64], sizes = [1, 32], strides = [1, 1]} : vector<1x128xf32> to vector<1x32xf32>
    %390 = math.tanh %389 : vector<1x32xf32>
    %391 = vector.extract_strided_slice %376 {offsets = [0, 96], sizes = [1, 32], strides = [1, 1]} : vector<1x128xf32> to vector<1x32xf32>
    %392 = arith.negf %391 : vector<1x32xf32>
    %393 = math.exp %392 : vector<1x32xf32>
    %cst_97 = arith.constant 1.000000e+00 : f32
    %394 = vector.broadcast %cst_97 : f32 to vector<1x32xf32>
    %395 = arith.addf %394, %393 : vector<1x32xf32>
    %396 = arith.divf %394, %395 : vector<1x32xf32>
    %397 = arith.mulf %388, %340 : vector<1x32xf32>
    %398 = arith.mulf %382, %390 : vector<1x32xf32>
    %399 = arith.addf %397, %398 : vector<1x32xf32>
    %400 = math.tanh %399 : vector<1x32xf32>
    %401 = arith.mulf %396, %400 : vector<1x32xf32>
    %402 = tpu.concatenate %401, %370 in 1 : vector<1x32xf32>, vector<1x4xf32> -> vector<1x36xf32>
    %cst_98 = arith.constant dense<0.000000e+00> : vector<1x128xf32>
    %403 = tpu.matmul %402, %14, %cst_98 {dimension_numbers = #tpu.dot_dimension_numbers<[1], [0], [0], [1], [0, 0, 1, 1], [], []>} : vector<1x36xf32>, vector<36x128xf32>, vector<1x128xf32> -> vector<1x128xf32>
    %404 = arith.addf %403, %15 : vector<1x128xf32>
    %405 = vector.extract_strided_slice %404 {offsets = [0, 0], sizes = [1, 4], strides = [1, 1]} : vector<1x128xf32> to vector<1x4xf32>
    %406 = arith.negf %405 : vector<1x4xf32>
    %407 = math.exp %406 : vector<1x4xf32>
    %cst_99 = arith.constant 1.000000e+00 : f32
    %408 = vector.broadcast %cst_99 : f32 to vector<1x4xf32>
    %409 = arith.addf %408, %407 : vector<1x4xf32>
    %410 = arith.divf %408, %409 : vector<1x4xf32>
    %411 = vector.extract_strided_slice %404 {offsets = [0, 4], sizes = [1, 4], strides = [1, 1]} : vector<1x128xf32> to vector<1x4xf32>
    %412 = arith.negf %411 : vector<1x4xf32>
    %413 = math.exp %412 : vector<1x4xf32>
    %cst_100 = arith.constant 1.000000e+00 : f32
    %414 = vector.broadcast %cst_100 : f32 to vector<1x4xf32>
    %415 = arith.addf %414, %413 : vector<1x4xf32>
    %416 = arith.divf %414, %415 : vector<1x4xf32>
    %417 = vector.extract_strided_slice %404 {offsets = [0, 8], sizes = [1, 4], strides = [1, 1]} : vector<1x128xf32> to vector<1x4xf32>
    %418 = math.tanh %417 : vector<1x4xf32>
    %419 = vector.extract_strided_slice %404 {offsets = [0, 12], sizes = [1, 4], strides = [1, 1]} : vector<1x128xf32> to vector<1x4xf32>
    %420 = arith.negf %419 : vector<1x4xf32>
    %421 = math.exp %420 : vector<1x4xf32>
    %cst_101 = arith.constant 1.000000e+00 : f32
    %422 = vector.broadcast %cst_101 : f32 to vector<1x4xf32>
    %423 = arith.addf %422, %421 : vector<1x4xf32>
    %424 = arith.divf %422, %423 : vector<1x4xf32>
    %425 = arith.mulf %416, %368 : vector<1x4xf32>
    %426 = arith.mulf %410, %418 : vector<1x4xf32>
    %427 = arith.addf %425, %426 : vector<1x4xf32>
    %428 = math.tanh %427 : vector<1x4xf32>
    %429 = arith.mulf %424, %428 : vector<1x4xf32>
    %c0_102 = arith.constant 0 : index
    %c0_103 = arith.constant 0 : index
    %c24 = arith.constant 24 : index
    %430 = vector.load %arg9[%c0_102, %c0_103, %c24] : memref<1x1x48xf32, #tpu.memory_space<vmem>>, vector<1x1x4xf32>
    %431 = vector.shape_cast %430 : vector<1x1x4xf32> to vector<1x4xf32>
    %432 = vector.shape_cast %429 : vector<1x4xf32> to vector<1x1x4xf32>
    tpu.vector_store %arg9[%c0_102, %c0_103, %c24], %432 {strides = array<i32>} : memref<1x1x48xf32, #tpu.memory_space<vmem>>, vector<1x1x4xf32>,
    %c7 = arith.constant 7 : index
    %c0_104 = arith.constant 0 : index
    %433 = vector.load %arg10[%c7, %c0_104] : memref<12x128xf32, #tpu.memory_space<vmem>>, vector<1x128xf32>
    %cst_105 = arith.constant dense<0.000000e+00> : vector<1x128xf32>
    %434 = tpu.matmul %401, %13, %cst_105 {dimension_numbers = #tpu.dot_dimension_numbers<[1], [0], [0], [1], [0, 0, 1, 1], [], []>} : vector<1x32xf32>, vector<32x128xf32>, vector<1x128xf32> -> vector<1x128xf32>
    %435 = arith.addf %433, %434 : vector<1x128xf32>
    %436 = vector.extract_strided_slice %435 {offsets = [0, 0], sizes = [1, 32], strides = [1, 1]} : vector<1x128xf32> to vector<1x32xf32>
    %437 = arith.negf %436 : vector<1x32xf32>
    %438 = math.exp %437 : vector<1x32xf32>
    %cst_106 = arith.constant 1.000000e+00 : f32
    %439 = vector.broadcast %cst_106 : f32 to vector<1x32xf32>
    %440 = arith.addf %439, %438 : vector<1x32xf32>
    %441 = arith.divf %439, %440 : vector<1x32xf32>
    %442 = vector.extract_strided_slice %435 {offsets = [0, 32], sizes = [1, 32], strides = [1, 1]} : vector<1x128xf32> to vector<1x32xf32>
    %443 = arith.negf %442 : vector<1x32xf32>
    %444 = math.exp %443 : vector<1x32xf32>
    %cst_107 = arith.constant 1.000000e+00 : f32
    %445 = vector.broadcast %cst_107 : f32 to vector<1x32xf32>
    %446 = arith.addf %445, %444 : vector<1x32xf32>
    %447 = arith.divf %445, %446 : vector<1x32xf32>
    %448 = vector.extract_strided_slice %435 {offsets = [0, 64], sizes = [1, 32], strides = [1, 1]} : vector<1x128xf32> to vector<1x32xf32>
    %449 = math.tanh %448 : vector<1x32xf32>
    %450 = vector.extract_strided_slice %435 {offsets = [0, 96], sizes = [1, 32], strides = [1, 1]} : vector<1x128xf32> to vector<1x32xf32>
    %451 = arith.negf %450 : vector<1x32xf32>
    %452 = math.exp %451 : vector<1x32xf32>
    %cst_108 = arith.constant 1.000000e+00 : f32
    %453 = vector.broadcast %cst_108 : f32 to vector<1x32xf32>
    %454 = arith.addf %453, %452 : vector<1x32xf32>
    %455 = arith.divf %453, %454 : vector<1x32xf32>
    %456 = arith.mulf %447, %399 : vector<1x32xf32>
    %457 = arith.mulf %441, %449 : vector<1x32xf32>
    %458 = arith.addf %456, %457 : vector<1x32xf32>
    %459 = math.tanh %458 : vector<1x32xf32>
    %460 = arith.mulf %455, %459 : vector<1x32xf32>
    %461 = tpu.concatenate %460, %429 in 1 : vector<1x32xf32>, vector<1x4xf32> -> vector<1x36xf32>
    %cst_109 = arith.constant dense<0.000000e+00> : vector<1x128xf32>
    %462 = tpu.matmul %461, %14, %cst_109 {dimension_numbers = #tpu.dot_dimension_numbers<[1], [0], [0], [1], [0, 0, 1, 1], [], []>} : vector<1x36xf32>, vector<36x128xf32>, vector<1x128xf32> -> vector<1x128xf32>
    %463 = arith.addf %462, %15 : vector<1x128xf32>
    %464 = vector.extract_strided_slice %463 {offsets = [0, 0], sizes = [1, 4], strides = [1, 1]} : vector<1x128xf32> to vector<1x4xf32>
    %465 = arith.negf %464 : vector<1x4xf32>
    %466 = math.exp %465 : vector<1x4xf32>
    %cst_110 = arith.constant 1.000000e+00 : f32
    %467 = vector.broadcast %cst_110 : f32 to vector<1x4xf32>
    %468 = arith.addf %467, %466 : vector<1x4xf32>
    %469 = arith.divf %467, %468 : vector<1x4xf32>
    %470 = vector.extract_strided_slice %463 {offsets = [0, 4], sizes = [1, 4], strides = [1, 1]} : vector<1x128xf32> to vector<1x4xf32>
    %471 = arith.negf %470 : vector<1x4xf32>
    %472 = math.exp %471 : vector<1x4xf32>
    %cst_111 = arith.constant 1.000000e+00 : f32
    %473 = vector.broadcast %cst_111 : f32 to vector<1x4xf32>
    %474 = arith.addf %473, %472 : vector<1x4xf32>
    %475 = arith.divf %473, %474 : vector<1x4xf32>
    %476 = vector.extract_strided_slice %463 {offsets = [0, 8], sizes = [1, 4], strides = [1, 1]} : vector<1x128xf32> to vector<1x4xf32>
    %477 = math.tanh %476 : vector<1x4xf32>
    %478 = vector.extract_strided_slice %463 {offsets = [0, 12], sizes = [1, 4], strides = [1, 1]} : vector<1x128xf32> to vector<1x4xf32>
    %479 = arith.negf %478 : vector<1x4xf32>
    %480 = math.exp %479 : vector<1x4xf32>
    %cst_112 = arith.constant 1.000000e+00 : f32
    %481 = vector.broadcast %cst_112 : f32 to vector<1x4xf32>
    %482 = arith.addf %481, %480 : vector<1x4xf32>
    %483 = arith.divf %481, %482 : vector<1x4xf32>
    %484 = arith.mulf %475, %427 : vector<1x4xf32>
    %485 = arith.mulf %469, %477 : vector<1x4xf32>
    %486 = arith.addf %484, %485 : vector<1x4xf32>
    %487 = math.tanh %486 : vector<1x4xf32>
    %488 = arith.mulf %483, %487 : vector<1x4xf32>
    %c0_113 = arith.constant 0 : index
    %c0_114 = arith.constant 0 : index
    %c28 = arith.constant 28 : index
    %489 = vector.load %arg9[%c0_113, %c0_114, %c28] : memref<1x1x48xf32, #tpu.memory_space<vmem>>, vector<1x1x4xf32>
    %490 = vector.shape_cast %489 : vector<1x1x4xf32> to vector<1x4xf32>
    %491 = vector.shape_cast %488 : vector<1x4xf32> to vector<1x1x4xf32>
    tpu.vector_store %arg9[%c0_113, %c0_114, %c28], %491 {strides = array<i32>} : memref<1x1x48xf32, #tpu.memory_space<vmem>>, vector<1x1x4xf32>,
    %c8_115 = arith.constant 8 : index
    %c0_116 = arith.constant 0 : index
    %492 = vector.load %arg10[%c8_115, %c0_116] : memref<12x128xf32, #tpu.memory_space<vmem>>, vector<1x128xf32>
    %cst_117 = arith.constant dense<0.000000e+00> : vector<1x128xf32>
    %493 = tpu.matmul %460, %13, %cst_117 {dimension_numbers = #tpu.dot_dimension_numbers<[1], [0], [0], [1], [0, 0, 1, 1], [], []>} : vector<1x32xf32>, vector<32x128xf32>, vector<1x128xf32> -> vector<1x128xf32>
    %494 = arith.addf %492, %493 : vector<1x128xf32>
    %495 = vector.extract_strided_slice %494 {offsets = [0, 0], sizes = [1, 32], strides = [1, 1]} : vector<1x128xf32> to vector<1x32xf32>
    %496 = arith.negf %495 : vector<1x32xf32>
    %497 = math.exp %496 : vector<1x32xf32>
    %cst_118 = arith.constant 1.000000e+00 : f32
    %498 = vector.broadcast %cst_118 : f32 to vector<1x32xf32>
    %499 = arith.addf %498, %497 : vector<1x32xf32>
    %500 = arith.divf %498, %499 : vector<1x32xf32>
    %501 = vector.extract_strided_slice %494 {offsets = [0, 32], sizes = [1, 32], strides = [1, 1]} : vector<1x128xf32> to vector<1x32xf32>
    %502 = arith.negf %501 : vector<1x32xf32>
    %503 = math.exp %502 : vector<1x32xf32>
    %cst_119 = arith.constant 1.000000e+00 : f32
    %504 = vector.broadcast %cst_119 : f32 to vector<1x32xf32>
    %505 = arith.addf %504, %503 : vector<1x32xf32>
    %506 = arith.divf %504, %505 : vector<1x32xf32>
    %507 = vector.extract_strided_slice %494 {offsets = [0, 64], sizes = [1, 32], strides = [1, 1]} : vector<1x128xf32> to vector<1x32xf32>
    %508 = math.tanh %507 : vector<1x32xf32>
    %509 = vector.extract_strided_slice %494 {offsets = [0, 96], sizes = [1, 32], strides = [1, 1]} : vector<1x128xf32> to vector<1x32xf32>
    %510 = arith.negf %509 : vector<1x32xf32>
    %511 = math.exp %510 : vector<1x32xf32>
    %cst_120 = arith.constant 1.000000e+00 : f32
    %512 = vector.broadcast %cst_120 : f32 to vector<1x32xf32>
    %513 = arith.addf %512, %511 : vector<1x32xf32>
    %514 = arith.divf %512, %513 : vector<1x32xf32>
    %515 = arith.mulf %506, %458 : vector<1x32xf32>
    %516 = arith.mulf %500, %508 : vector<1x32xf32>
    %517 = arith.addf %515, %516 : vector<1x32xf32>
    %518 = math.tanh %517 : vector<1x32xf32>
    %519 = arith.mulf %514, %518 : vector<1x32xf32>
    %520 = tpu.concatenate %519, %488 in 1 : vector<1x32xf32>, vector<1x4xf32> -> vector<1x36xf32>
    %cst_121 = arith.constant dense<0.000000e+00> : vector<1x128xf32>
    %521 = tpu.matmul %520, %14, %cst_121 {dimension_numbers = #tpu.dot_dimension_numbers<[1], [0], [0], [1], [0, 0, 1, 1], [], []>} : vector<1x36xf32>, vector<36x128xf32>, vector<1x128xf32> -> vector<1x128xf32>
    %522 = arith.addf %521, %15 : vector<1x128xf32>
    %523 = vector.extract_strided_slice %522 {offsets = [0, 0], sizes = [1, 4], strides = [1, 1]} : vector<1x128xf32> to vector<1x4xf32>
    %524 = arith.negf %523 : vector<1x4xf32>
    %525 = math.exp %524 : vector<1x4xf32>
    %cst_122 = arith.constant 1.000000e+00 : f32
    %526 = vector.broadcast %cst_122 : f32 to vector<1x4xf32>
    %527 = arith.addf %526, %525 : vector<1x4xf32>
    %528 = arith.divf %526, %527 : vector<1x4xf32>
    %529 = vector.extract_strided_slice %522 {offsets = [0, 4], sizes = [1, 4], strides = [1, 1]} : vector<1x128xf32> to vector<1x4xf32>
    %530 = arith.negf %529 : vector<1x4xf32>
    %531 = math.exp %530 : vector<1x4xf32>
    %cst_123 = arith.constant 1.000000e+00 : f32
    %532 = vector.broadcast %cst_123 : f32 to vector<1x4xf32>
    %533 = arith.addf %532, %531 : vector<1x4xf32>
    %534 = arith.divf %532, %533 : vector<1x4xf32>
    %535 = vector.extract_strided_slice %522 {offsets = [0, 8], sizes = [1, 4], strides = [1, 1]} : vector<1x128xf32> to vector<1x4xf32>
    %536 = math.tanh %535 : vector<1x4xf32>
    %537 = vector.extract_strided_slice %522 {offsets = [0, 12], sizes = [1, 4], strides = [1, 1]} : vector<1x128xf32> to vector<1x4xf32>
    %538 = arith.negf %537 : vector<1x4xf32>
    %539 = math.exp %538 : vector<1x4xf32>
    %cst_124 = arith.constant 1.000000e+00 : f32
    %540 = vector.broadcast %cst_124 : f32 to vector<1x4xf32>
    %541 = arith.addf %540, %539 : vector<1x4xf32>
    %542 = arith.divf %540, %541 : vector<1x4xf32>
    %543 = arith.mulf %534, %486 : vector<1x4xf32>
    %544 = arith.mulf %528, %536 : vector<1x4xf32>
    %545 = arith.addf %543, %544 : vector<1x4xf32>
    %546 = math.tanh %545 : vector<1x4xf32>
    %547 = arith.mulf %542, %546 : vector<1x4xf32>
    %c0_125 = arith.constant 0 : index
    %c0_126 = arith.constant 0 : index
    %c32 = arith.constant 32 : index
    %548 = vector.load %arg9[%c0_125, %c0_126, %c32] : memref<1x1x48xf32, #tpu.memory_space<vmem>>, vector<1x1x4xf32>
    %549 = vector.shape_cast %548 : vector<1x1x4xf32> to vector<1x4xf32>
    %550 = vector.shape_cast %547 : vector<1x4xf32> to vector<1x1x4xf32>
    tpu.vector_store %arg9[%c0_125, %c0_126, %c32], %550 {strides = array<i32>} : memref<1x1x48xf32, #tpu.memory_space<vmem>>, vector<1x1x4xf32>,
    %c9 = arith.constant 9 : index
    %c0_127 = arith.constant 0 : index
    %551 = vector.load %arg10[%c9, %c0_127] : memref<12x128xf32, #tpu.memory_space<vmem>>, vector<1x128xf32>
    %cst_128 = arith.constant dense<0.000000e+00> : vector<1x128xf32>
    %552 = tpu.matmul %519, %13, %cst_128 {dimension_numbers = #tpu.dot_dimension_numbers<[1], [0], [0], [1], [0, 0, 1, 1], [], []>} : vector<1x32xf32>, vector<32x128xf32>, vector<1x128xf32> -> vector<1x128xf32>
    %553 = arith.addf %551, %552 : vector<1x128xf32>
    %554 = vector.extract_strided_slice %553 {offsets = [0, 0], sizes = [1, 32], strides = [1, 1]} : vector<1x128xf32> to vector<1x32xf32>
    %555 = arith.negf %554 : vector<1x32xf32>
    %556 = math.exp %555 : vector<1x32xf32>
    %cst_129 = arith.constant 1.000000e+00 : f32
    %557 = vector.broadcast %cst_129 : f32 to vector<1x32xf32>
    %558 = arith.addf %557, %556 : vector<1x32xf32>
    %559 = arith.divf %557, %558 : vector<1x32xf32>
    %560 = vector.extract_strided_slice %553 {offsets = [0, 32], sizes = [1, 32], strides = [1, 1]} : vector<1x128xf32> to vector<1x32xf32>
    %561 = arith.negf %560 : vector<1x32xf32>
    %562 = math.exp %561 : vector<1x32xf32>
    %cst_130 = arith.constant 1.000000e+00 : f32
    %563 = vector.broadcast %cst_130 : f32 to vector<1x32xf32>
    %564 = arith.addf %563, %562 : vector<1x32xf32>
    %565 = arith.divf %563, %564 : vector<1x32xf32>
    %566 = vector.extract_strided_slice %553 {offsets = [0, 64], sizes = [1, 32], strides = [1, 1]} : vector<1x128xf32> to vector<1x32xf32>
    %567 = math.tanh %566 : vector<1x32xf32>
    %568 = vector.extract_strided_slice %553 {offsets = [0, 96], sizes = [1, 32], strides = [1, 1]} : vector<1x128xf32> to vector<1x32xf32>
    %569 = arith.negf %568 : vector<1x32xf32>
    %570 = math.exp %569 : vector<1x32xf32>
    %cst_131 = arith.constant 1.000000e+00 : f32
    %571 = vector.broadcast %cst_131 : f32 to vector<1x32xf32>
    %572 = arith.addf %571, %570 : vector<1x32xf32>
    %573 = arith.divf %571, %572 : vector<1x32xf32>
    %574 = arith.mulf %565, %517 : vector<1x32xf32>
    %575 = arith.mulf %559, %567 : vector<1x32xf32>
    %576 = arith.addf %574, %575 : vector<1x32xf32>
    %577 = math.tanh %576 : vector<1x32xf32>
    %578 = arith.mulf %573, %577 : vector<1x32xf32>
    %579 = tpu.concatenate %578, %547 in 1 : vector<1x32xf32>, vector<1x4xf32> -> vector<1x36xf32>
    %cst_132 = arith.constant dense<0.000000e+00> : vector<1x128xf32>
    %580 = tpu.matmul %579, %14, %cst_132 {dimension_numbers = #tpu.dot_dimension_numbers<[1], [0], [0], [1], [0, 0, 1, 1], [], []>} : vector<1x36xf32>, vector<36x128xf32>, vector<1x128xf32> -> vector<1x128xf32>
    %581 = arith.addf %580, %15 : vector<1x128xf32>
    %582 = vector.extract_strided_slice %581 {offsets = [0, 0], sizes = [1, 4], strides = [1, 1]} : vector<1x128xf32> to vector<1x4xf32>
    %583 = arith.negf %582 : vector<1x4xf32>
    %584 = math.exp %583 : vector<1x4xf32>
    %cst_133 = arith.constant 1.000000e+00 : f32
    %585 = vector.broadcast %cst_133 : f32 to vector<1x4xf32>
    %586 = arith.addf %585, %584 : vector<1x4xf32>
    %587 = arith.divf %585, %586 : vector<1x4xf32>
    %588 = vector.extract_strided_slice %581 {offsets = [0, 4], sizes = [1, 4], strides = [1, 1]} : vector<1x128xf32> to vector<1x4xf32>
    %589 = arith.negf %588 : vector<1x4xf32>
    %590 = math.exp %589 : vector<1x4xf32>
    %cst_134 = arith.constant 1.000000e+00 : f32
    %591 = vector.broadcast %cst_134 : f32 to vector<1x4xf32>
    %592 = arith.addf %591, %590 : vector<1x4xf32>
    %593 = arith.divf %591, %592 : vector<1x4xf32>
    %594 = vector.extract_strided_slice %581 {offsets = [0, 8], sizes = [1, 4], strides = [1, 1]} : vector<1x128xf32> to vector<1x4xf32>
    %595 = math.tanh %594 : vector<1x4xf32>
    %596 = vector.extract_strided_slice %581 {offsets = [0, 12], sizes = [1, 4], strides = [1, 1]} : vector<1x128xf32> to vector<1x4xf32>
    %597 = arith.negf %596 : vector<1x4xf32>
    %598 = math.exp %597 : vector<1x4xf32>
    %cst_135 = arith.constant 1.000000e+00 : f32
    %599 = vector.broadcast %cst_135 : f32 to vector<1x4xf32>
    %600 = arith.addf %599, %598 : vector<1x4xf32>
    %601 = arith.divf %599, %600 : vector<1x4xf32>
    %602 = arith.mulf %593, %545 : vector<1x4xf32>
    %603 = arith.mulf %587, %595 : vector<1x4xf32>
    %604 = arith.addf %602, %603 : vector<1x4xf32>
    %605 = math.tanh %604 : vector<1x4xf32>
    %606 = arith.mulf %601, %605 : vector<1x4xf32>
    %c0_136 = arith.constant 0 : index
    %c0_137 = arith.constant 0 : index
    %c36 = arith.constant 36 : index
    %607 = vector.load %arg9[%c0_136, %c0_137, %c36] : memref<1x1x48xf32, #tpu.memory_space<vmem>>, vector<1x1x4xf32>
    %608 = vector.shape_cast %607 : vector<1x1x4xf32> to vector<1x4xf32>
    %609 = vector.shape_cast %606 : vector<1x4xf32> to vector<1x1x4xf32>
    tpu.vector_store %arg9[%c0_136, %c0_137, %c36], %609 {strides = array<i32>} : memref<1x1x48xf32, #tpu.memory_space<vmem>>, vector<1x1x4xf32>,
    %c10 = arith.constant 10 : index
    %c0_138 = arith.constant 0 : index
    %610 = vector.load %arg10[%c10, %c0_138] : memref<12x128xf32, #tpu.memory_space<vmem>>, vector<1x128xf32>
    %cst_139 = arith.constant dense<0.000000e+00> : vector<1x128xf32>
    %611 = tpu.matmul %578, %13, %cst_139 {dimension_numbers = #tpu.dot_dimension_numbers<[1], [0], [0], [1], [0, 0, 1, 1], [], []>} : vector<1x32xf32>, vector<32x128xf32>, vector<1x128xf32> -> vector<1x128xf32>
    %612 = arith.addf %610, %611 : vector<1x128xf32>
    %613 = vector.extract_strided_slice %612 {offsets = [0, 0], sizes = [1, 32], strides = [1, 1]} : vector<1x128xf32> to vector<1x32xf32>
    %614 = arith.negf %613 : vector<1x32xf32>
    %615 = math.exp %614 : vector<1x32xf32>
    %cst_140 = arith.constant 1.000000e+00 : f32
    %616 = vector.broadcast %cst_140 : f32 to vector<1x32xf32>
    %617 = arith.addf %616, %615 : vector<1x32xf32>
    %618 = arith.divf %616, %617 : vector<1x32xf32>
    %619 = vector.extract_strided_slice %612 {offsets = [0, 32], sizes = [1, 32], strides = [1, 1]} : vector<1x128xf32> to vector<1x32xf32>
    %620 = arith.negf %619 : vector<1x32xf32>
    %621 = math.exp %620 : vector<1x32xf32>
    %cst_141 = arith.constant 1.000000e+00 : f32
    %622 = vector.broadcast %cst_141 : f32 to vector<1x32xf32>
    %623 = arith.addf %622, %621 : vector<1x32xf32>
    %624 = arith.divf %622, %623 : vector<1x32xf32>
    %625 = vector.extract_strided_slice %612 {offsets = [0, 64], sizes = [1, 32], strides = [1, 1]} : vector<1x128xf32> to vector<1x32xf32>
    %626 = math.tanh %625 : vector<1x32xf32>
    %627 = vector.extract_strided_slice %612 {offsets = [0, 96], sizes = [1, 32], strides = [1, 1]} : vector<1x128xf32> to vector<1x32xf32>
    %628 = arith.negf %627 : vector<1x32xf32>
    %629 = math.exp %628 : vector<1x32xf32>
    %cst_142 = arith.constant 1.000000e+00 : f32
    %630 = vector.broadcast %cst_142 : f32 to vector<1x32xf32>
    %631 = arith.addf %630, %629 : vector<1x32xf32>
    %632 = arith.divf %630, %631 : vector<1x32xf32>
    %633 = arith.mulf %624, %576 : vector<1x32xf32>
    %634 = arith.mulf %618, %626 : vector<1x32xf32>
    %635 = arith.addf %633, %634 : vector<1x32xf32>
    %636 = math.tanh %635 : vector<1x32xf32>
    %637 = arith.mulf %632, %636 : vector<1x32xf32>
    %638 = tpu.concatenate %637, %606 in 1 : vector<1x32xf32>, vector<1x4xf32> -> vector<1x36xf32>
    %cst_143 = arith.constant dense<0.000000e+00> : vector<1x128xf32>
    %639 = tpu.matmul %638, %14, %cst_143 {dimension_numbers = #tpu.dot_dimension_numbers<[1], [0], [0], [1], [0, 0, 1, 1], [], []>} : vector<1x36xf32>, vector<36x128xf32>, vector<1x128xf32> -> vector<1x128xf32>
    %640 = arith.addf %639, %15 : vector<1x128xf32>
    %641 = vector.extract_strided_slice %640 {offsets = [0, 0], sizes = [1, 4], strides = [1, 1]} : vector<1x128xf32> to vector<1x4xf32>
    %642 = arith.negf %641 : vector<1x4xf32>
    %643 = math.exp %642 : vector<1x4xf32>
    %cst_144 = arith.constant 1.000000e+00 : f32
    %644 = vector.broadcast %cst_144 : f32 to vector<1x4xf32>
    %645 = arith.addf %644, %643 : vector<1x4xf32>
    %646 = arith.divf %644, %645 : vector<1x4xf32>
    %647 = vector.extract_strided_slice %640 {offsets = [0, 4], sizes = [1, 4], strides = [1, 1]} : vector<1x128xf32> to vector<1x4xf32>
    %648 = arith.negf %647 : vector<1x4xf32>
    %649 = math.exp %648 : vector<1x4xf32>
    %cst_145 = arith.constant 1.000000e+00 : f32
    %650 = vector.broadcast %cst_145 : f32 to vector<1x4xf32>
    %651 = arith.addf %650, %649 : vector<1x4xf32>
    %652 = arith.divf %650, %651 : vector<1x4xf32>
    %653 = vector.extract_strided_slice %640 {offsets = [0, 8], sizes = [1, 4], strides = [1, 1]} : vector<1x128xf32> to vector<1x4xf32>
    %654 = math.tanh %653 : vector<1x4xf32>
    %655 = vector.extract_strided_slice %640 {offsets = [0, 12], sizes = [1, 4], strides = [1, 1]} : vector<1x128xf32> to vector<1x4xf32>
    %656 = arith.negf %655 : vector<1x4xf32>
    %657 = math.exp %656 : vector<1x4xf32>
    %cst_146 = arith.constant 1.000000e+00 : f32
    %658 = vector.broadcast %cst_146 : f32 to vector<1x4xf32>
    %659 = arith.addf %658, %657 : vector<1x4xf32>
    %660 = arith.divf %658, %659 : vector<1x4xf32>
    %661 = arith.mulf %652, %604 : vector<1x4xf32>
    %662 = arith.mulf %646, %654 : vector<1x4xf32>
    %663 = arith.addf %661, %662 : vector<1x4xf32>
    %664 = math.tanh %663 : vector<1x4xf32>
    %665 = arith.mulf %660, %664 : vector<1x4xf32>
    %c0_147 = arith.constant 0 : index
    %c0_148 = arith.constant 0 : index
    %c40 = arith.constant 40 : index
    %666 = vector.load %arg9[%c0_147, %c0_148, %c40] : memref<1x1x48xf32, #tpu.memory_space<vmem>>, vector<1x1x4xf32>
    %667 = vector.shape_cast %666 : vector<1x1x4xf32> to vector<1x4xf32>
    %668 = vector.shape_cast %665 : vector<1x4xf32> to vector<1x1x4xf32>
    tpu.vector_store %arg9[%c0_147, %c0_148, %c40], %668 {strides = array<i32>} : memref<1x1x48xf32, #tpu.memory_space<vmem>>, vector<1x1x4xf32>,
    %c11 = arith.constant 11 : index
    %c0_149 = arith.constant 0 : index
    %669 = vector.load %arg10[%c11, %c0_149] : memref<12x128xf32, #tpu.memory_space<vmem>>, vector<1x128xf32>
    %cst_150 = arith.constant dense<0.000000e+00> : vector<1x128xf32>
    %670 = tpu.matmul %637, %13, %cst_150 {dimension_numbers = #tpu.dot_dimension_numbers<[1], [0], [0], [1], [0, 0, 1, 1], [], []>} : vector<1x32xf32>, vector<32x128xf32>, vector<1x128xf32> -> vector<1x128xf32>
    %671 = arith.addf %669, %670 : vector<1x128xf32>
    %672 = vector.extract_strided_slice %671 {offsets = [0, 0], sizes = [1, 32], strides = [1, 1]} : vector<1x128xf32> to vector<1x32xf32>
    %673 = arith.negf %672 : vector<1x32xf32>
    %674 = math.exp %673 : vector<1x32xf32>
    %cst_151 = arith.constant 1.000000e+00 : f32
    %675 = vector.broadcast %cst_151 : f32 to vector<1x32xf32>
    %676 = arith.addf %675, %674 : vector<1x32xf32>
    %677 = arith.divf %675, %676 : vector<1x32xf32>
    %678 = vector.extract_strided_slice %671 {offsets = [0, 32], sizes = [1, 32], strides = [1, 1]} : vector<1x128xf32> to vector<1x32xf32>
    %679 = arith.negf %678 : vector<1x32xf32>
    %680 = math.exp %679 : vector<1x32xf32>
    %cst_152 = arith.constant 1.000000e+00 : f32
    %681 = vector.broadcast %cst_152 : f32 to vector<1x32xf32>
    %682 = arith.addf %681, %680 : vector<1x32xf32>
    %683 = arith.divf %681, %682 : vector<1x32xf32>
    %684 = vector.extract_strided_slice %671 {offsets = [0, 64], sizes = [1, 32], strides = [1, 1]} : vector<1x128xf32> to vector<1x32xf32>
    %685 = math.tanh %684 : vector<1x32xf32>
    %686 = vector.extract_strided_slice %671 {offsets = [0, 96], sizes = [1, 32], strides = [1, 1]} : vector<1x128xf32> to vector<1x32xf32>
    %687 = arith.negf %686 : vector<1x32xf32>
    %688 = math.exp %687 : vector<1x32xf32>
    %cst_153 = arith.constant 1.000000e+00 : f32
    %689 = vector.broadcast %cst_153 : f32 to vector<1x32xf32>
    %690 = arith.addf %689, %688 : vector<1x32xf32>
    %691 = arith.divf %689, %690 : vector<1x32xf32>
    %692 = arith.mulf %683, %635 : vector<1x32xf32>
    %693 = arith.mulf %677, %685 : vector<1x32xf32>
    %694 = arith.addf %692, %693 : vector<1x32xf32>
    %695 = math.tanh %694 : vector<1x32xf32>
    %696 = arith.mulf %691, %695 : vector<1x32xf32>
    %697 = tpu.concatenate %696, %665 in 1 : vector<1x32xf32>, vector<1x4xf32> -> vector<1x36xf32>
    %cst_154 = arith.constant dense<0.000000e+00> : vector<1x128xf32>
    %698 = tpu.matmul %697, %14, %cst_154 {dimension_numbers = #tpu.dot_dimension_numbers<[1], [0], [0], [1], [0, 0, 1, 1], [], []>} : vector<1x36xf32>, vector<36x128xf32>, vector<1x128xf32> -> vector<1x128xf32>
    %699 = arith.addf %698, %15 : vector<1x128xf32>
    %700 = vector.extract_strided_slice %699 {offsets = [0, 0], sizes = [1, 4], strides = [1, 1]} : vector<1x128xf32> to vector<1x4xf32>
    %701 = arith.negf %700 : vector<1x4xf32>
    %702 = math.exp %701 : vector<1x4xf32>
    %cst_155 = arith.constant 1.000000e+00 : f32
    %703 = vector.broadcast %cst_155 : f32 to vector<1x4xf32>
    %704 = arith.addf %703, %702 : vector<1x4xf32>
    %705 = arith.divf %703, %704 : vector<1x4xf32>
    %706 = vector.extract_strided_slice %699 {offsets = [0, 4], sizes = [1, 4], strides = [1, 1]} : vector<1x128xf32> to vector<1x4xf32>
    %707 = arith.negf %706 : vector<1x4xf32>
    %708 = math.exp %707 : vector<1x4xf32>
    %cst_156 = arith.constant 1.000000e+00 : f32
    %709 = vector.broadcast %cst_156 : f32 to vector<1x4xf32>
    %710 = arith.addf %709, %708 : vector<1x4xf32>
    %711 = arith.divf %709, %710 : vector<1x4xf32>
    %712 = vector.extract_strided_slice %699 {offsets = [0, 8], sizes = [1, 4], strides = [1, 1]} : vector<1x128xf32> to vector<1x4xf32>
    %713 = math.tanh %712 : vector<1x4xf32>
    %714 = vector.extract_strided_slice %699 {offsets = [0, 12], sizes = [1, 4], strides = [1, 1]} : vector<1x128xf32> to vector<1x4xf32>
    %715 = arith.negf %714 : vector<1x4xf32>
    %716 = math.exp %715 : vector<1x4xf32>
    %cst_157 = arith.constant 1.000000e+00 : f32
    %717 = vector.broadcast %cst_157 : f32 to vector<1x4xf32>
    %718 = arith.addf %717, %716 : vector<1x4xf32>
    %719 = arith.divf %717, %718 : vector<1x4xf32>
    %720 = arith.mulf %711, %663 : vector<1x4xf32>
    %721 = arith.mulf %705, %713 : vector<1x4xf32>
    %722 = arith.addf %720, %721 : vector<1x4xf32>
    %723 = math.tanh %722 : vector<1x4xf32>
    %724 = arith.mulf %719, %723 : vector<1x4xf32>
    %c0_158 = arith.constant 0 : index
    %c0_159 = arith.constant 0 : index
    %c44 = arith.constant 44 : index
    %725 = vector.load %arg9[%c0_158, %c0_159, %c44] : memref<1x1x48xf32, #tpu.memory_space<vmem>>, vector<1x1x4xf32>
    %726 = vector.shape_cast %725 : vector<1x1x4xf32> to vector<1x4xf32>
    %727 = vector.shape_cast %724 : vector<1x4xf32> to vector<1x1x4xf32>
    tpu.vector_store %arg9[%c0_158, %c0_159, %c44], %727 {strides = array<i32>} : memref<1x1x48xf32, #tpu.memory_space<vmem>>, vector<1x1x4xf32>,
    return
  }
  func.func @transform_0(%arg0: i32) -> (i32, i32, i32) {
    %c0_i32 = arith.constant 0 : i32
    %c0_i32_0 = arith.constant 0 : i32
    %c0_i32_1 = arith.constant 0 : i32
    return %arg0, %c0_i32, %c0_i32_0 : i32, i32, i32
  }
  func.func @transform_1(%arg0: i32) -> (i32, i32, i32) {
    %c0_i32 = arith.constant 0 : i32
    %c0_i32_0 = arith.constant 0 : i32
    %c0_i32_1 = arith.constant 0 : i32
    return %arg0, %c0_i32, %c0_i32_0 : i32, i32, i32
  }
  func.func @transform_2(%arg0: i32) -> (i32, i32) {
    %c0_i32 = arith.constant 0 : i32
    %c0_i32_0 = arith.constant 0 : i32
    %c0_i32_1 = arith.constant 0 : i32
    return %c0_i32, %c0_i32_0 : i32, i32
  }
  func.func @transform_3(%arg0: i32) -> (i32, i32) {
    %c0_i32 = arith.constant 0 : i32
    %c0_i32_0 = arith.constant 0 : i32
    %c0_i32_1 = arith.constant 0 : i32
    return %c0_i32, %c0_i32_0 : i32, i32
  }
  func.func @transform_4(%arg0: i32) -> (i32, i32) {
    %c0_i32 = arith.constant 0 : i32
    %c0_i32_0 = arith.constant 0 : i32
    %c0_i32_1 = arith.constant 0 : i32
    return %c0_i32, %c0_i32_0 : i32, i32
  }
  func.func @transform_5(%arg0: i32) -> (i32, i32) {
    %c0_i32 = arith.constant 0 : i32
    %c0_i32_0 = arith.constant 0 : i32
    %c0_i32_1 = arith.constant 0 : i32
    return %c0_i32, %c0_i32_0 : i32, i32
  }
  func.func @transform_6(%arg0: i32) -> (i32, i32) {
    %c0_i32 = arith.constant 0 : i32
    %c0_i32_0 = arith.constant 0 : i32
    %c0_i32_1 = arith.constant 0 : i32
    return %c0_i32, %c0_i32_0 : i32, i32
  }
  func.func @transform_7(%arg0: i32) -> (i32, i32) {
    %c0_i32 = arith.constant 0 : i32
    %c0_i32_0 = arith.constant 0 : i32
    %c0_i32_1 = arith.constant 0 : i32
    return %c0_i32, %c0_i32_0 : i32, i32
  }
  func.func @transform_8(%arg0: i32) -> (i32, i32, i32) {
    %c0_i32 = arith.constant 0 : i32
    %c0_i32_0 = arith.constant 0 : i32
    %c0_i32_1 = arith.constant 0 : i32
    return %arg0, %c0_i32, %c0_i32_0 : i32, i32, i32
  }
}

</mosaic_0001>

<bundles_post_ra>
// kernel: tpu_custom_call.1
= control target key start
LH: loop header
LB: loop body
LE: loop exit
PB: predicated region body
PF: predicated region fallthrough
CT: control target
= control target key end

     0   :  { %13 = vsyncpa [#allocation4], 0  ;;  %s5447_s0 = inlined_call_operand.vmem [shape: f32[2,12,784], index: 0, kind: input, shape index: {}]   ;;  %s5448_s1 = inlined_call_operand.vmem [shape: f32[2,12,4], index: 1, kind: input, shape index: {}]   ;;  %s5449_s2 = inlined_call_operand.hbm [shape: f32[784,128], index: 2, kind: input, shape index: {}]   ;;  %s5450_s3 = inlined_call_operand.vmem [shape: f32[4,128], index: 3, kind: input, shape index: {}]   ;;  %s5451_s4 = inlined_call_operand.vmem [shape: f32[32,128], index: 4, kind: input, shape index: {}]   ;;  %s5452_s5 = inlined_call_operand.vmem [shape: f32[1,128], index: 5, kind: input, shape index: {}]   ;;  %s5453_s6 = inlined_call_operand.vmem [shape: f32[36,128], index: 6, kind: input, shape index: {}]   ;;  %s5454_s7 = inlined_call_operand.vmem [shape: f32[1,128], index: 7, kind: input, shape index: {}]   ;;  %s5455_s8 = inlined_call_operand.hbm [shape: f32[2,1,48], index: 8, kind: output, shape index: {}]  }
   0x1   :  { %14 = vsyncpa [#allocation5], 0 }
   0x2   :  { %16 = vsyncpa [#allocation5 + $0x1], 0  ;;  %s4769_s27 = smov 0   ;;  %s4771_s28 = smov 0  }
   0x3   :  { %s4773_s29 = smov 0   ;;  %s4775_s30 = smov 0  }
   0x4 LB: > { %s4790_s9 = sadd.s32 4294967295, %s4703_s30   ;;  %s3464_s10 = sadd.s32 4294967294, %s4703_s30   ;;  %s4703_s30 = sphi %s4775_s30, %s5471_s30   ;;  %s4699_s29 = sphi %s4773_s29, %s5470_s29   ;;  %s4695_s28 = sphi %s4771_s28, %s5469_s28   ;;  %s4691_s27 = sphi %s4769_s27, %s5468_s27  }
   0x5   : > { %s4794_s11 = sadd.s32 1, %s4703_s30   ;;  %s207_s12 = sadd.s32 1, %s4699_s29 }
   0x6   : > { %s204_s13 = ssub.s32 %s4703_s30, %s4794_s11  ;;  %p217_p0 = scmp.ne.s32.totalorder %s4699_s29, %s4695_s28 }
   0x7   : > { %p205_p1 = scmp.eq.s32.totalorder %s204_s13, 0  ;;  %p218_p2 = scmp.eq.s32.totalorder %s4790_s9, 1 }
   0x8   : > { %p223_p3 = scmp.ne.s32.totalorder %s4695_s28, %s4691_s27  ;;  %p224_p4 = scmp.eq.s32.totalorder %s3464_s10, 1 }
   0x9   : > { %s4805_s14 = scalar_select %p205_p1, %s4699_s29, %s207_s12  }
   0xa   : > { %p4807_p5 = por %p218_p2, %p217_p0  ;;  %p4811_p6 = por %p224_p4, %p223_p3 }
   0xb   : > { %p3465_p7 = scmp.ge.s32.totalorder %s4703_s30, 1  ;;  %p231_p8 = scmp.lt.s32.totalorder %s4703_s30, 3 }
   0xc   : > { %s5459_s15 = scalar_select %p4807_p5, 1, 0 }
   0xd   : > { %s5460_s16 = scalar_select %p4811_p6, 1, 0 }
   0xe   : > { %p5456_p9 = scmp.eq.s32.totalorder %s4790_s9, 0  ;;  %p4818_p10 = pnand %p3465_p7, %p231_p8 }
   0xf   : > { %s4705_s18 = smov [#allocation3]   ;;  %s4609_s23 = scalar_lea.hbm %s5449_s2, 12544 }
  0x10   : > { %s5461_s17 = scalar_select %p4818_p10, 1, 0 }
  0x11   : > { %s243_s19 = sshll.u32 %s4705_s18, 4  ;;  %p4354_p11 = pneg %p4818_p10  ;;  %s244_s19 = int_to_ptr.vmem [resolvable:$true] %s243_s19 }
  0x12   : > { %p4610_p13 = scmp.ne.s32.totalorder %s5449_s2, %s4609_s23  ;;  %p4616_p3 = scmp.lt.u32.totalorder %s4609_s23, %s5449_s2 }
  0x13   : > { %p4826_p12 = pnand %p5456_p9, %p4354_p11 }
  0x15   : > { %p4611_p0 = pneg %p4826_p12 }
  0x17   : > { %p4612_p1 = pnand %p4611_p0, %p4610_p13 }
  0x19   : > { %p4613_p2 = pneg %p4612_p1 }
  0x1b   : > { %p4618_p4 = pnand %p4616_p3, %p4613_p2 }
  0x1d   : > { %4621 = shalt.err (!%p4618_p4)
}
  0x1e   : > { %s4622_s12 = scalar_lea.vmem %s244_s19, 12544  ;;  %p4630_p9 = scmp.lt.s32.totalorder %s244_s19, %s244_s19 }
  0x1f   : > { %p4623_p7 = scmp.ne.s32.totalorder %s244_s19, %s4622_s12  ;;  %p4631_p6 = scmp.lt.s32.totalorder %s4622_s12, %s4622_s12 }
  0x21   : > { %p4625_p8 = pnand %p4623_p7, %p4611_p0  ;;  %p4632_p5 = por %p4631_p6, %p4630_p9 }
  0x23   : > { %p4626_p11 = pneg %p4625_p8 }
  0x25   : > { %p4633_p10 = pnand %p4632_p5, %p4626_p11 }
  0x27   : > { %4636 = shalt.err (!%p4633_p10)
}
  0x28   : > { %s4706_s13 = smov 128   ;;  %s4707_s18 = smov 8  }
  0x29   : > { %4357 = dma.hbm_to_vmem [thread:$0]  (!%p4826_p12), %s5449_s2, 12544, %s244_s19, [#allocation4], %s4706_s13, %s4706_s13, %s4707_s18  }
  0x2a   : > { %p5463_p13 = scmp.ne.s32.totalorder %s5461_s17, 0 }
  0x2b   : > { %p5464_p1 = scmp.eq.s32.totalorder (!%p5463_p13), %s4790_s9, 0 }
  0x2c   : > { %290 = sbr.rel (%p5463_p13) target bundleno = 9301 (0x2455), region = 52 }
  0x33   : > { %4682 = dma.done.wait (%p5464_p1), [#allocation4], 12544   ;;  %p5465_p0 = pmov %p5464_p1 }
  0x34   : > { %p328_p5 = scmp.lt.s32.totalorder %s4790_s9, 1  ;;  %vm460_vm0 = vcmask 1043456   ;;  %vm453_vm1 = vcmask 31744   ;;  %v452_v0 = vld [vmem:[%s5450_s3] sm:$0xf]  ;;  %v368_v3 = vld [vmem:[#allocation3 + $0x80] sm:$0xff] }
  0x35   : > { %4684 = vsyncadd (%p5465_p0), [#allocation4], 4294954752  ;;  %3795 = vmatprep.subr.msk.mxu1 %vm460_vm0, %v452_v0  ;;  %v369_v4 = vld [vmem:[#allocation3 + $0x88] sm:$0xff]  ;;  %v352_v5 = vld [vmem:[#allocation3] sm:$0xff]  ;;  %vm539_vm2 = vcmask 130048   ;;  %vm4709_vm3 = vmmov 0  }
  0x36   : > { %s4854_s23 = scalar_select %p328_p5, %s4790_s9, 1  ;;  %3796 = vmatpush3.msk.msra.mxu1 %vm460_vm0, %v452_v0  ;;  %v4095_v6 = vpack.c.bf16 %v369_v4, %v368_v3  ;;  %v353_v7 = vld [vmem:[#allocation3 + $0x8] sm:$0xff]  ;;  %v400_v8 = vld [vmem:[#allocation3 + $0x180] sm:$0xff]  ;;  %v370_v14 = vld [vmem:[#allocation3 + $0x90] sm:$0xff]  ;;  %vm868_vm4 = vcmask 261120   ;;  %vm972_vm5 = vcmask 293888  }
  0x37   : > { %v401_v9 = vld [vmem:[#allocation3 + $0x188] sm:$0xff]  ;;  %v4097_v10 = vpack.c.bf16 %v353_v7, %v352_v5  ;;  %v384_v12 = vld [vmem:[#allocation3 + $0x100] sm:$0xff]  ;;  %v371_v16 = vld [vmem:[#allocation3 + $0x98] sm:$0xff]  ;;  %s4711_s12 = smov 64   ;;  %s4712_s13 = smov 32   ;;  %vm1077_vm6 = vcmask 24576  }
  0x38   : > { %s3541_s20 = sshll.u32 %s4854_s23, 4  ;;  %v4127_v11 = vpack.c.bf16 %v401_v9, %v400_v8  ;;  %v385_v13 = vld [vmem:[#allocation3 + $0x108] sm:$0xff]  ;;  %4096 = vmatprep.subr.bf16.mxu1 %v4095_v6  ;;  %v354_v17 = vld [vmem:[#allocation3 + $0x10] sm:$0xff]  ;;  %v355_v18 = vld [vmem:[#allocation3 + $0x18] sm:$0xff]  ;;  %v4099_v19 = vpack.c.bf16 %v371_v16, %v370_v14  ;;  %s4347_s10 = smul.u32 112, %s4854_s23  ;;  %vm1286_vm7 = vcmask 57376  }
  0x39   : > { %s337_s19 = scalar_lea.vmem %s5448_s1, %s3541_s20  ;;  %v4129_v15 = vpack.c.bf16 %v385_v13, %v384_v12  ;;  %v4101_v20 = vpack.c.bf16 %v355_v18, %v354_v17  ;;  %v402_v21 = vld [vmem:[#allocation3 + $0x190] sm:$0xff]  ;;  %v403_v22 = vld [vmem:[#allocation3 + $0x198] sm:$0xff]  ;;  %v372_v26 = vld [vmem:[#allocation3 + $0xa0] sm:$0xff]  ;;  %s4713_s21 = smov 120   ;;  %vm1495_vm8 = vcmask 90176   ;;  %vm1700_vm9 = vcmask 122976  }
  0x3a   : > { %v450_v1 = vld [vmem:[%s337_s19] sm:$0xff]  ;;  %v451_v2 = vld [vmem:[%s337_s19 + $0x8] sm:$0xf]  ;;  %4128 = vmatprep.subr.bf16.mxu0 %v4127_v11  ;;  %v4131_v24 = vpack.c.bf16 %v403_v22, %v402_v21  ;;  %v373_v27 = vld [vmem:[#allocation3 + $0xa8] sm:$0xff]  ;;  %s4869_s18 = scalar_lea.vmem %s5447_s0, %s4347_s10  ;;  %s4714_s22 = smov 4   ;;  %vm1910_vm10 = vcmask 155776  }
  0x3b   : > { %3797 = vmatprep.mubr.msk.f32.mxu1 %vm453_vm1, %v450_v1  ;;  %v386_v23 = vld [vmem:[#allocation3 + $0x110] sm:$0xff]  ;;  %4130 = vmatpush3.bf16.msra.mxu0 %v4129_v15  ;;  %v387_v25 = vld [vmem:[#allocation3 + $0x118] sm:$0xff]  ;;  %v4103_v29 = vpack.c.bf16 %v373_v27, %v372_v26  ;;  %v356_v30 = vld [vmem:[#allocation3 + $0x20] sm:$0xff]  ;;  %s4715_s23 = smov 8   ;;  %s4716_s20 = smov 20   ;;  %vm2119_vm11 = vcmask 188576  }
  0x3c   : > { %3798 = vmatmul.mubr.msk.f32.vlgmr.msra.gmra.mrb[0].mxu1 %vm453_vm1, %v451_v2  ;;  %v4133_v28 = vpack.c.bf16 %v387_v25, %v386_v23  ;;  %v357_v31 = vld [vmem:[#allocation3 + $0x28] sm:$0xff]  ;;  %v404_v32 = vld [vmem:[#allocation3 + $0x1a0] sm:$0xff]  ;;  %4132 = vmatprep.subr.bf16.mxu0 %v4131_v24  ;;  %v374_v38 = vld [vmem:[#allocation3 + $0xb0] sm:$0xff]  ;;  %s4718_s26 = smov 124   ;;  %s4719_s10 = smov 16   ;;  %vm2328_vm12 = vcmask 221376  }
  0x3d   : > { %4098 = vmatpush3.bf16.msra.mxu1 %v4097_v10  ;;  %v405_v33 = vld [vmem:[#allocation3 + $0x1a8] sm:$0xff]  ;;  %v388_v34 = vld [vmem:[#allocation3 + $0x120] sm:$0xff]  ;;  %v4105_v36 = vpack.c.bf16 %v357_v31, %v356_v30  ;;  %v375_v39 = vld [vmem:[#allocation3 + $0xb8] sm:$0xff]  ;;  %s4721_s25 = smov 12   ;;  %s4722_s19 = smov 24   ;;  %vm2537_vm13 = vcmask 254176  }
  0x3e   : > { %4100 = vmatprep.subr.bf16.mxu1 %v4099_v19  ;;  %v389_v35 = vld [vmem:[#allocation3 + $0x128] sm:$0xff]  ;;  %v4135_v37 = vpack.c.bf16 %v405_v33, %v404_v32  ;;  %v358_v40 = vld [vmem:[#allocation3 + $0x30] sm:$0xff]  ;;  %v4107_v42 = vpack.c.bf16 %v375_v39, %v374_v38  ;;  %v359_v43 = vld [vmem:[#allocation3 + $0x38] sm:$0xff]  ;;  %vm2746_vm14 = vcmask 286976   ;;  %vm2952_vm15 = vcmask 319776   ;;  %p5466_p9 = scmp.ne.s32.totalorder %s5459_s15, 0 }
  0x3f   : > { %4134 = vmatpush3.bf16.msra.mxu0 %v4133_v28  ;;  %v4137_v41 = vpack.c.bf16 %v389_v35, %v388_v34  ;;  %v406_v44 = vld [vmem:[#allocation3 + $0x1b0] sm:$0xff]  ;;  %v407_v45 = vld [vmem:[#allocation3 + $0x1b8] sm:$0xff]  ;;  %v376_v49 = vld [vmem:[#allocation3 + $0xc0] sm:$0xff]  ;;  %v4109_v51 = vpack.c.bf16 %v359_v43, %v358_v40  ;;  %vm3370_vm1 = vcmask 385376  }
  0x40   : > { %4136 = vmatprep.subr.bf16.mxu0 %v4135_v37  ;;  %v4139_v46 = vpack.c.bf16 %v407_v45, %v406_v44  ;;  %v390_v47 = vld [vmem:[#allocation3 + $0x130] sm:$0xff]  ;;  %v391_v48 = vld [vmem:[#allocation3 + $0x138] sm:$0xff]  ;;  %v377_v50 = vld [vmem:[#allocation3 + $0xc8] sm:$0xff] }
  0x41   : > { %4102 = vmatpush3.bf16.msra.mxu1 %v4101_v20  ;;  %v408_v52 = vld [vmem:[#allocation3 + $0x1c0] sm:$0xff]  ;;  %v409_v53 = vld [vmem:[#allocation3 + $0x1c8] sm:$0xff]  ;;  %v4141_v54 = vpack.c.bf16 %v391_v48, %v390_v47  ;;  %v4111_v55 = vpack.c.bf16 %v377_v50, %v376_v49  ;;  %v378_v61 = vld [vmem:[#allocation3 + $0xd0] sm:$0xff] }
  0x42   : > { %4104 = vmatprep.subr.bf16.mxu1 %v4103_v29  ;;  %v360_v56 = vld [vmem:[#allocation3 + $0x40] sm:$0xff]  ;;  %v361_v57 = vld [vmem:[#allocation3 + $0x48] sm:$0xff]  ;;  %v4143_v59 = vpack.c.bf16 %v409_v53, %v408_v52  ;;  %v379_v62 = vld [vmem:[#allocation3 + $0xd8] sm:$0xff] }
  0x43   : > { %4138 = vmatpush3.bf16.msra.mxu0 %v4137_v41  ;;  %v392_v58 = vld [vmem:[#allocation3 + $0x140] sm:$0xff]  ;;  %v393_v60 = vld [vmem:[#allocation3 + $0x148] sm:$0xff]  ;;  %v410_v63 = vld [vmem:[#allocation3 + $0x1d0] sm:$0xff]  ;;  %v4113_v1 = vpack.c.bf16 %v361_v57, %v360_v56  ;;  %v4115_v3 = vpack.c.bf16 %v379_v62, %v378_v61 }
  0x44   : > { %4140 = vmatprep.subr.bf16.mxu0 %v4139_v46  ;;  %v411_v0 = vld [vmem:[#allocation3 + $0x1d8] sm:$0xff]  ;;  %v4145_v2 = vpack.c.bf16 %v393_v60, %v392_v58  ;;  %v362_v4 = vld [vmem:[#allocation3 + $0x50] sm:$0xff]  ;;  %v380_v9 = vld [vmem:[#allocation3 + $0xe0] sm:$0xff] }
  0x45   : > { %4106 = vmatpush3.bf16.msra.mxu1 %v4105_v36  ;;  %v363_v5 = vld [vmem:[#allocation3 + $0x58] sm:$0xff]  ;;  %v394_v6 = vld [vmem:[#allocation3 + $0x150] sm:$0xff]  ;;  %v4147_v7 = vpack.c.bf16 %v411_v0, %v410_v63  ;;  %v381_v10 = vld [vmem:[#allocation3 + $0xe8] sm:$0xff] }
  0x46   : > { %4108 = vmatprep.subr.bf16.mxu1 %v4107_v42  ;;  %v395_v8 = vld [vmem:[#allocation3 + $0x158] sm:$0xff]  ;;  %v412_v11 = vld [vmem:[#allocation3 + $0x1e0] sm:$0xff]  ;;  %v413_v12 = vld [vmem:[#allocation3 + $0x1e8] sm:$0xff]  ;;  %v4117_v13 = vpack.c.bf16 %v363_v5, %v362_v4  ;;  %v4119_v17 = vpack.c.bf16 %v381_v10, %v380_v9 }
  0x47   : > { %4142 = vmatpush3.bf16.msra.mxu0 %v4141_v54  ;;  %v364_v14 = vld [vmem:[#allocation3 + $0x60] sm:$0xff]  ;;  %v339_v15 = vld [vmem:[%s4869_s18 + $0x8] sm:$0xff]  ;;  %v4149_v16 = vpack.c.bf16 %v395_v8, %v394_v6  ;;  %v365_v18 = vld [vmem:[#allocation3 + $0x68] sm:$0xff]  ;;  %v4151_v21 = vpack.c.bf16 %v413_v12, %v412_v11 }
  0x48   : > { %4144 = vmatprep.subr.bf16.mxu0 %v4143_v59  ;;  %v396_v19 = vld [vmem:[#allocation3 + $0x160] sm:$0xff]  ;;  %v397_v20 = vld [vmem:[#allocation3 + $0x168] sm:$0xff]  ;;  %v382_v22 = vld [vmem:[#allocation3 + $0xf0] sm:$0xff]  ;;  %610 = vmatprep.mubr.f32.mxu1 %v339_v15  ;;  %v4121_v27 = vpack.c.bf16 %v365_v18, %v364_v14 }
  0x49   : > { %4110 = vmatpush3.bf16.msra.mxu1 %v4109_v51  ;;  %v383_v23 = vld [vmem:[#allocation3 + $0xf8] sm:$0xff]  ;;  %v341_v24 = vld [vmem:[%s4869_s18 + $0x18] sm:$0xff]  ;;  %v414_v25 = vld [vmem:[#allocation3 + $0x1f0] sm:$0xff]  ;;  %v4153_v28 = vpack.c.bf16 %v397_v20, %v396_v19 }
  0x4a   : > { %4112 = vmatprep.subr.bf16.mxu1 %v4111_v55  ;;  %v415_v26 = vld [vmem:[#allocation3 + $0x1f8] sm:$0xff]  ;;  %685 = vmatprep.mubr.f32.mxu0 %v341_v24  ;;  %v4123_v29 = vpack.c.bf16 %v383_v23, %v382_v22  ;;  %v366_v30 = vld [vmem:[#allocation3 + $0x70] sm:$0xff]  ;;  %v432_v35 = vld [vmem:[#allocation3 + $0x280] sm:$0xff]  ;;  %v4710_v23 = vmov 0.0  }
  0x4b   : > { %4146 = vmatpush3.bf16.msra.mxu0 %v4145_v2  ;;  %v367_v31 = vld [vmem:[#allocation3 + $0x78] sm:$0xff]  ;;  %v398_v32 = vld [vmem:[#allocation3 + $0x170] sm:$0xff]  ;;  %v4155_v33 = vpack.c.bf16 %v415_v26, %v414_v25  ;;  %v433_v36 = vld [vmem:[#allocation3 + $0x288] sm:$0xff] }
  0x4c   : > { %4148 = vmatprep.subr.bf16.mxu0 %v4147_v7  ;;  %v399_v34 = vld [vmem:[#allocation3 + $0x178] sm:$0xff]  ;;  %v4125_v37 = vpack.c.bf16 %v367_v31, %v366_v30  ;;  %v4159_v39 = vpack.c.bf16 %v433_v36, %v432_v35  ;;  %v416_v40 = vld [vmem:[#allocation3 + $0x200] sm:$0xff]  ;;  %v417_v41 = vld [vmem:[#allocation3 + $0x208] sm:$0xff] }
  0x4d   : > { %4114 = vmatpush3.bf16.msra.mxu1 %v4113_v1  ;;  %v4157_v38 = vpack.c.bf16 %v399_v34, %v398_v32  ;;  %v434_v42 = vld [vmem:[#allocation3 + $0x290] sm:$0xff]  ;;  %v435_v43 = vld [vmem:[#allocation3 + $0x298] sm:$0xff]  ;;  %v4161_v45 = vpack.c.bf16 %v417_v41, %v416_v40  ;;  %v340_v46 = vld [vmem:[%s4869_s18 + $0x10] sm:$0xff] }
  0x4e   : > { %4116 = vmatprep.subr.bf16.mxu1 %v4115_v3  ;;  %v338_v44 = vld [vmem:[%s4869_s18] sm:$0xff]  ;;  %v4163_v48 = vpack.c.bf16 %v435_v43, %v434_v42  ;;  %v419_v49 = vld [vmem:[#allocation3 + $0x218] sm:$0xff]  ;;  %v448_v50 = vld [vmem:[#allocation3 + $0x300] sm:$0xff] }
  0x4f   : > { %4150 = vmatpush3.bf16.msra.mxu0 %v4149_v16  ;;  %v418_v47 = vld [vmem:[#allocation3 + $0x210] sm:$0xff]  ;;  %v449_v51 = vld [vmem:[#allocation3 + $0x308] sm:$0xff]  ;;  %v436_v53 = vld [vmem:[#allocation3 + $0x2a0] sm:$0xff] }
  0x50   : > { %4152 = vmatprep.subr.bf16.mxu0 %v4151_v21  ;;  %v346_v52 = vld [vmem:[%s4869_s18 + $0x40] sm:$0xf]  ;;  %v437_v54 = vld [vmem:[#allocation3 + $0x2a8] sm:$0xff]  ;;  %v4191_v55 = vpack.c.bf16 %v449_v51, %v448_v50  ;;  %v348_v56 = vld [vmem:[%s4869_s18 + $0x50] sm:$0xf]  ;;  %v4165_v58 = vpack.c.bf16 %v419_v49, %v418_v47 }
  0x51   : > { %4118 = vmatpush3.bf16.msra.mxu1 %v4117_v13  ;;  %v345_v57 = vld [vmem:[%s4869_s18 + $0x38] sm:$0xf]  ;;  %v347_v59 = vld [vmem:[%s4869_s18 + $0x48] sm:$0xf]  ;;  %v420_v60 = vld [vmem:[#allocation3 + $0x220] sm:$0xff]  ;;  %v4167_v61 = vpack.c.bf16 %v437_v54, %v436_v53  ;;  %v4708_v13 = vmov 0.0|0.0  }
  0x52   : > { %4120 = vmatprep.subr.bf16.mxu1 %v4119_v17  ;;  %v421_v62 = vld [vmem:[#allocation3 + $0x228] sm:$0xff]  ;;  %v438_v63 = vld [vmem:[#allocation3 + $0x2b0] sm:$0xff]  ;;  %v439_v0 = vld [vmem:[#allocation3 + $0x2b8] sm:$0xff] }
  0x53   : > { %4154 = vmatpush3.bf16.msra.mxu0 %v4153_v28  ;;  %v343_v1 = vld [vmem:[%s4869_s18 + $0x28] sm:$0xff]  ;;  %v857_v2 = vld [vmem:[%s5451_s4] sm:$0xff]  ;;  %v344_v4 = vld [vmem:[%s4869_s18 + $0x30] sm:$0xff]  ;;  %v4169_v5 = vpack.c.bf16 %v421_v62, %v420_v60  ;;  %v4171_v7 = vpack.c.bf16 %v439_v0, %v438_v63 }
  0x54   : > { %4156 = vmatprep.subr.bf16.mxu0 %v4155_v33  ;;  %v858_v3 = vld [vmem:[%s5451_s4 + $0x8] sm:$0xff]  ;;  %v422_v6 = vld [vmem:[#allocation3 + $0x230] sm:$0xff]  ;;  %v440_v9 = vld [vmem:[#allocation3 + $0x2c0] sm:$0xff] }
  0x55   : > { %4122 = vmatpush3.bf16.msra.mxu1 %v4121_v27  ;;  %v423_v8 = vld [vmem:[#allocation3 + $0x238] sm:$0xff]  ;;  %v4888_v11 = vpack.c.bf16 %v858_v3, %v857_v2  ;;  %v441_v12 = vld [vmem:[#allocation3 + $0x2c8] sm:$0xff]  ;;  %v859_v14 = vld [vmem:[%s5451_s4 + $0x10] sm:$0xff] }
  0x56   : > { %4124 = vmatprep.subr.bf16.mxu1 %v4123_v29  ;;  %v351_v10 = vld [vmem:[%s4869_s18 + $0x68] sm:$0xf]  ;;  %v860_v15 = vld [vmem:[%s5451_s4 + $0x18] sm:$0xff]  ;;  %v4173_v16 = vpack.c.bf16 %v423_v8, %v422_v6  ;;  %v4175_v17 = vpack.c.bf16 %v441_v12, %v440_v9  ;;  %v424_v18 = vld [vmem:[#allocation3 + $0x240] sm:$0xff] }
  0x57   : > { %4158 = vmatpush3.bf16.msra.mxu0 %v4157_v38  ;;  %v425_v19 = vld [vmem:[#allocation3 + $0x248] sm:$0xff]  ;;  %v4900_v20 = vpack.c.bf16 %v860_v15, %v859_v14  ;;  %v442_v21 = vld [vmem:[#allocation3 + $0x2d0] sm:$0xff]  ;;  %v443_v22 = vld [vmem:[#allocation3 + $0x2d8] sm:$0xff] }
  0x58   : > { %4192 = vmatprep.subr.bf16.mxu0 %v4191_v55  ;;  %v4177_v24 = vpack.c.bf16 %v425_v19, %v424_v18  ;;  %v4179_v25 = vpack.c.bf16 %v443_v22, %v442_v21  ;;  %v426_v26 = vld [vmem:[#allocation3 + $0x250] sm:$0xff]  ;;  %v427_v27 = vld [vmem:[#allocation3 + $0x258] sm:$0xff]  ;;  %v444_v28 = vld [vmem:[#allocation3 + $0x2e0] sm:$0xff] }
  0x59   : > { %4126 = vmatpush3.bf16.msra.mxu1 %v4125_v37  ;;  %v445_v29 = vld [vmem:[#allocation3 + $0x2e8] sm:$0xff]  ;;  %v4181_v30 = vpack.c.bf16 %v427_v27, %v426_v26  ;;  %v428_v32 = vld [vmem:[#allocation3 + $0x260] sm:$0xff]  ;;  %v446_v34 = vld [vmem:[#allocation3 + $0x2f0] sm:$0xff] }
  0x5a   : > { %4160 = vmatprep.subr.bf16.mxu1 %v4159_v39  ;;  %686 = vmatmul.mubr.f32.vlgmr.msra.gmra.mrb[0].mxu0 %v340_v46  ;;  %v4183_v31 = vpack.c.bf16 %v445_v29, %v444_v28  ;;  %v429_v33 = vld [vmem:[#allocation3 + $0x268] sm:$0xff]  ;;  %v447_v35 = vld [vmem:[#allocation3 + $0x2f8] sm:$0xff]  ;;  %v430_v38 = vld [vmem:[#allocation3 + $0x270] sm:$0xff] }
  0x5b   : > { %690 = vmatprep.mubr.f32.mxu0 %v348_v56  ;;  %4194 = vmatpush3.bf16.msra.mxu0 %v4191_v55  ;;  %v4185_v36 = vpack.c.bf16 %v429_v33, %v428_v32  ;;  %v4187_v37 = vpack.c.bf16 %v447_v35, %v446_v34  ;;  %v431_v39 = vld [vmem:[#allocation3 + $0x278] sm:$0xff]  ;;  %v342_v41 = vld [vmem:[%s4869_s18 + $0x20] sm:$0xff]  ;;  %v349_v43 = vld [vmem:[%s4869_s18 + $0x58] sm:$0xf] }
  0x5c   : > { %611 = vmatmul.mubr.f32.vlgmr.msra.gmra.mrb[2].mxu1 %v338_v44  ;;  %4195 = vmatprep.subr.bf16.mxu0 %v4708_v13  ;;  %v4189_v40 = vpack.c.bf16 %v431_v39, %v430_v38  ;;  %v350_v42 = vld [vmem:[%s4869_s18 + $0x60] sm:$0xf]  ;;  %v862_v32 = vld [vmem:[%s5453_s6 + $0x8] sm:$0xff]  ;;  %v863_v33 = vld [vmem:[%s5453_s6 + $0x10] sm:$0xff]  ;;  %s4720_s18 = smov 28  }
  0x5d   : > { %4162 = vmatpush3.bf16.msra.mxu1 %v4161_v45  ;;  %615 = vmatprep.mubr.f32.mxu1 %v346_v52  ;;  %v864_v35 = vld [vmem:[%s5453_s6 + $0x18] sm:$0xff] }
  0x5e   : > { %4164 = vmatprep.subr.bf16.mxu1 %v4163_v48  ;;  %691 = vmatmul.mubr.f32.gmra.mrb[2].mxu0 %v347_v59 }
  0x5f   : > { %3804 = vmatprep.mubr.msk.f32.mxu0 %vm539_vm2, %v344_v4 }
  0x60   : > { %616 = vmatmul.mubr.f32.gmra.mrb[4].mxu1 %v345_v57 }
  0x61   : > { %4166 = vmatpush3.bf16.msra.mxu1 %v4165_v58  ;;  %760 = vmatprep.mubr.f32.mxu1 %v343_v1 }
  0x62   : > { %4168 = vmatprep.subr.bf16.mxu1 %v4167_v61  ;;  %3805 = vmatmul.mubr.msk.f32.vlgmr.msra.gmra.mrb[4].mxu0 %vm539_vm2, %v351_v10 }
  0x63   : > { %4197 = vmatpush3.bf16.msra.mxu0 %v4888_v11  ;;  %3815 = vmatprep.mubr.msk.f32.mxu0 %vm4709_vm3, %v4710_v23 }
  0x64   : > { %4198 = vmatprep.subr.bf16.mxu0 %v4708_v13 }
  0x65   : > { %4170 = vmatpush3.bf16.msra.mxu1 %v4169_v5 }
  0x66   : > { %4172 = vmatprep.subr.bf16.mxu1 %v4171_v7  ;;  %v3478_v7 = vld [vmem:[%s5452_s5] ss:$0 sm:$0xff] }
  0x67   : > { %4200 = vmatpush3.bf16.msra.mxu0 %v4900_v20 }
  0x68   : > { %4201 = vmatprep.subr.bf16.mxu0 %v4708_v13 }
  0x69   : > { %4174 = vmatpush3.bf16.msra.mxu1 %v4173_v16 }
  0x6a   : > { %4176 = vmatprep.subr.bf16.mxu1 %v4175_v17  ;;  %3816 = vmatmul.mubr.f32.vlgmr.msra.gmra.mrb[6].mxu0 %v4710_v23 }
  0x6b   : > { %3828 = vmatprep.mubr.msk.f32.mxu0 %vm4709_vm3, %v4710_v23 }
  0x6d   : > { %4178 = vmatpush3.bf16.msra.mxu1 %v4177_v24 }
  0x6e   : > { %4180 = vmatprep.subr.bf16.mxu1 %v4179_v25 }
  0x71   : > { %4182 = vmatpush3.bf16.msra.mxu1 %v4181_v30 }
  0x72   : > { %4184 = vmatprep.subr.bf16.mxu1 %v4183_v31  ;;  %v861_v31 = vld [vmem:[%s5453_s6] sm:$0xff] }
  0x73   : > { %v4933_v34 = vpack.c.bf16 %v862_v32, %v861_v31 }
  0x75   : > { %4186 = vmatpush3.bf16.msra.mxu1 %v4185_v36  ;;  %4203 = vmatpush3.bf16.msra.mxu0 %v4933_v34  ;;  %v4939_v36 = vpack.c.bf16 %v864_v35, %v863_v33 }
  0x76   : > { %4188 = vmatprep.subr.bf16.mxu1 %v4187_v37  ;;  %4204 = vmatprep.subr.bf16.mxu0 %v4708_v13  ;;  %v4950_v37 = vld [vmem:[%s5453_s6 + $0x20] sm:$0xf] }
  0x79   : > { %4190 = vmatpush3.bf16.msra.mxu1 %v4189_v40  ;;  %4206 = vmatpush3.bf16.msra.mxu0 %v4939_v36 }
  0x7a   : > { %4213 = vmatprep.subr.bf16.mxu1 %v4708_v13  ;;  %3826 = vmatprep.subr.mxu0 %v4710_v23 }
  0x7c   : > { %761 = vmatmul.mubr.f32.vlgmr.msra.gmra.mrb[6].mxu1 %v342_v41 }
  0x7d   : > { %765 = vmatprep.mubr.f32.mxu1 %v350_v42  ;;  %4215 = vmatpush3.bf16.msra.mxu1 %v4933_v34 }
  0x7e   : > { %4216 = vmatprep.subr.bf16.mxu1 %v4708_v13  ;;  %3827 = vmatpush3.msk.msra.mxu0 %vm460_vm0, %v4950_v37 }
  0x7f   : > { %4207 = vmatprep.subr.bf16.mxu0 %v4708_v13 }
  0x80   : > { %766 = vmatmul.mubr.f32.gmra.mrb[8].mxu1 %v349_v43  ;;  %v4979_v43 = vld [vmem:[%s5454_s7] sm:$0x1] }
  0x81   : > { %3852 = vmatprep.mubr.msk.f32.mxu1 %vm4709_vm3, %v4710_v23  ;;  %4218 = vmatpush3.bf16.msra.mxu1 %v4939_v36 }
  0x82   : > { %3850 = vmatprep.subr.mxu1 %v4710_v23 }
  0x85   : > { %3851 = vmatpush3.msk.msra.mxu1 %vm460_vm0, %v4950_v37 }
  0x86   : > { %4225 = vmatprep.subr.bf16.mxu1 %v4708_v13 }
 0x10f   : > { %v3799_v44 = vpop.f32.mrb[0].mxu1 }
 0x110   : > { %v530_v45 = vpop.f32.mrb[1].mxu1 }
 0x12d   : > { %v3615_v48 = vpop.f32.mrb[0].mxu0 }
 0x12e   : > { %v3616_v50 = vpop.f32.mrb[1].mxu0 }
 0x12f   : > { %v3577_v46 = vpop.f32.mrb[2].mxu1  ;;  %v3617_v51 = vadd.f32 %v3616_v50, %v3615_v48 }
 0x130   : > { %v3578_v47 = vpop.f32.mrb[3].mxu1 }
 0x131   : > { %v3579_v49 = vadd.f32 %v3578_v47, %v3577_v46  ;;  %v3618_v55 = vpop.f32.mrb[2].mxu0 }
 0x132   : > { %v3619_v58 = vpop.f32.mrb[3].mxu0 }
 0x133   : > { %v613_v52 = vadd.f32 %v3579_v49, %v530_v45  ;;  %v3580_v53 = vpop.f32.mrb[4].mxu1  ;;  %v3620_v59 = vadd.f32 %v3619_v58, %v3618_v55 }
 0x134   : > { %v3581_v54 = vpop.f32.mrb[5].mxu1 }
 0x135   : > { %v688_v56 = vadd.f32 %v3617_v51, %v613_v52  ;;  %v3582_v57 = vadd.f32 %v3581_v54, %v3580_v53  ;;  %v3806_v61 = vpop.f32.mrb[4].mxu0 }
 0x136   : > { %v837_v63 = vpop.f32.mrb[5].mxu0 }
 0x137   : > { %v618_v60 = vadd.f32 %v3799_v44, %v3582_v57 }
 0x139   : > { %v693_v62 = vadd.f32 %v3620_v59, %v618_v60 }
 0x13d   : > { %v938_v0 = vpop.f32.mrb[6].mxu0 }
 0x13e   : > { %v3817_v1 = vpop.f32.mrb[7].mxu0 }
 0x14f   : > { %v3653_v2 = vpop.f32.mrb[6].mxu1 }
 0x150   : > { %v3654_v3 = vpop.f32.mrb[7].mxu1 }
 0x151   : > { %v3655_v4 = vadd.f32 %v3654_v3, %v3653_v2 }
 0x153   : > { %v3656_v5 = vpop.f32.mrb[8].mxu1  ;;  %v763_v6 = vadd.f32 %v3655_v4, %v688_v56 }
 0x154   : > { %v3657_v8 = vpop.f32.mrb[9].mxu1 }
 0x155   : > { %v838_v9 = vadd.f32 %v837_v63, %v763_v6  ;;  %v3658_v10 = vadd.f32 %v3657_v8, %v3656_v5 }
 0x157   : > { %v853_v12 = vadd.f32 %v3478_v7, %v838_v9  ;;  %v768_v14 = vadd.f32 %v3658_v10, %v693_v62 }
 0x159   : > { %855 = vst [vmem:[#allocation2] sm:$0xff] %v853_v12  ;;  %v843_v15 = vadd.f32 %v3806_v61, %v768_v14 }
 0x15b   : > { %v854_v16 = vadd.f32 %v3478_v7, %v843_v15 }
 0x15d   : > { %856 = vst [vmem:[#allocation2 + $0x8] sm:$0xf] %v854_v16 }
 0x160   : > { %v867_v17 = vld [vmem:[#allocation2] sm:$0x1]  ;;  %v1079_v47 = vld [vmem:[#allocation2 + $0x1] sm:$0x1] }
 0x161   : > { %v942_v18 = vadd.f32 %v938_v0, %v867_v17 }
 0x163   : > { %4415 = vtanh.f32 %v942_v18  ;;  %v3479_v21 = vmul.f32 -1.442695, %v942_v18  ;;  %v1288_v18 = vld [vmem:[#allocation2 + $0x2] sm:$0x1] }
 0x165   : > { %4417 = vpow2.f32 %v3479_v21 }
 0x16d   : > { %v4416_v19 = vpop.eup %4415 }
 0x16e   : > { %952 = vrot.lane.b32.xlu0 %v4416_v19, %s4711_s12 }
 0x16f   : > { %v4418_v22 = vpop.eup %4417 }
 0x170   : > { %v946_v24 = vadd.f32 1.0, %v4418_v22 }
 0x172   : > { %4419 = vrcp.f32 %v946_v24 }
 0x17c   : > { %v4420_v25 = vpop.eup %4419 }
 0x17d   : > { %v950_v28 = vmul.f32 0.0, %v4420_v25 }
 0x1e0   : > { %v953_v26 = vpop.permute.xlu0 %952 }
 0x1e1   : > { %v955_v27 = vmul.f32 %v4420_v25, %v953_v26 }
 0x1e3   : > { %957 = vrot.lane.b32.xlu0 %v955_v27, %s4712_s13 }
 0x255   : > { %v958_v29 = vpop.permute.xlu0 %957 }
 0x256   : > { %v4921_v30 = vadd.f32 %v958_v29, %v950_v28 }
 0x258   : > { %4421 = vtanh.f32 %v4921_v30 }
 0x262   : > { %v4422_v38 = vpop.eup %4421 }
 0x263   : > { %963 = vrot.lane.b32.xlu1 %v4422_v38, %s4711_s12 }
 0x2d5   : > { %v964_v39 = vpop.permute.xlu1 %963 }
 0x2d6   : > { %v966_v40 = vmul.f32 %v4420_v25, %v964_v39 }
 0x2d8   : > { %968 = vrot.lane.b32.xlu1 %v966_v40, %s4712_s13 }
 0x34a   : > { %v969_v41 = vpop.permute.xlu1 %968 }
 0x34b   : > { %v971_v42 = vsel %vm868_vm4, %v969_v41, 0.0 }
 0x34c   : > { %3829 = vmatmul.mubr.msk.f32.vlgmr.msra.gmra.mrb[8].mxu0 %vm972_vm5, %v971_v42 }
 0x34d   : > { %4209 = vmatpush3.bf16.msra.mxu0 %v4888_v11  ;;  %3839 = vmatprep.mubr.msk.f32.mxu0 %vm4709_vm3, %v4710_v23 }
 0x34e   : > { %4210 = vmatprep.subr.bf16.mxu0 %v4708_v13 }
 0x351   : > { %4212 = vmatpush3.bf16.msra.mxu0 %v4900_v20 }
 0x352   : > { %4219 = vmatprep.subr.bf16.mxu0 %v4708_v13 }
 0x354   : > { %3840 = vmatmul.mubr.msk.f32.vlgmr.msra.gmra.mrb[10].mxu0 %vm868_vm4, %v969_v41 }
 0x355   : > { %4221 = vmatpush3.bf16.msra.mxu0 %v4888_v11  ;;  %3863 = vmatprep.mubr.msk.f32.mxu0 %vm4709_vm3, %v4710_v23 }
 0x356   : > { %4222 = vmatprep.subr.bf16.mxu0 %v4708_v13 }
 0x359   : > { %4224 = vmatpush3.bf16.msra.mxu0 %v4900_v20 }
 0x35a   : > { %4231 = vmatprep.subr.bf16.mxu0 %v4708_v13 }
 0x41f   : > { %v1045_v44 = vpop.f32.mrb[8].mxu0 }
 0x420   : > { %v1046_v45 = vadd.f32 %v1045_v44, %v4979_v43  ;;  %v3830_v46 = vpop.f32.mrb[9].mxu0 }
 0x422   : > { %4423 = vtanh.f32 %v1046_v45  ;;  %v3482_v53 = vmul.f32 -1.442695, %v1046_v45 }
 0x427   : > { %v1148_v48 = vpop.f32.mrb[10].mxu0 }
 0x428   : > { %v1152_v49 = vadd.f32 %v1148_v48, %v1079_v47  ;;  %v3841_v50 = vpop.f32.mrb[11].mxu0 }
 0x42a   : > { %4425 = vtanh.f32 %v1152_v49  ;;  %v3484_v54 = vmul.f32 -1.442695, %v1152_v49 }
 0x42b   : > { %4427 = vpow2.f32 %v3482_v53 }
 0x42c   : > { %v4424_v51 = vpop.eup %4423  ;;  %4429 = vpow2.f32 %v3484_v54 }
 0x42d   : > { %1058 = vrot.lane.b32.xlu0 %v4424_v51, %s4713_s21 }
 0x434   : > { %v4426_v52 = vpop.eup %4425 }
 0x435   : > { %1162 = vrot.lane.b32.xlu1 %v4426_v52, %s4711_s12  ;;  %v4428_v55 = vpop.eup %4427 }
 0x436   : > { %v1052_v56 = vadd.f32 1.0, %v4428_v55  ;;  %v4430_v57 = vpop.eup %4429 }
 0x437   : > { %v1156_v58 = vadd.f32 1.0, %v4430_v57 }
 0x438   : > { %4431 = vrcp.f32 %v1052_v56 }
 0x439   : > { %4433 = vrcp.f32 %v1156_v58 }
 0x442   : > { %v4432_v59 = vpop.eup %4431 }
 0x443   : > { %v4434_v62 = vpop.eup %4433  ;;  %v1056_v1 = vmul.f32 0.0, %v4432_v59 }
 0x444   : > { %v1160_v4 = vmul.f32 %v4434_v62, %v4921_v30 }
 0x49f   : > { %v1059_v60 = vpop.permute.xlu0 %1058 }
 0x4a0   : > { %v1061_v61 = vmul.f32 %v4432_v59, %v1059_v60  ;;  %v1497_v60 = vld [vmem:[#allocation2 + $0x3] sm:$0x1] }
 0x4a2   : > { %1063 = vrot.lane.b32.xlu0 %v1061_v61, %s4714_s22 }
 0x4a7   : > { %v1163_v63 = vpop.permute.xlu1 %1162 }
 0x4a8   : > { %v1165_v0 = vmul.f32 %v4434_v62, %v1163_v63 }
 0x4aa   : > { %1167 = vrot.lane.b32.xlu1 %v1165_v0, %s4712_s13 }
 0x514   : > { %v1064_v2 = vpop.permute.xlu0 %1063 }
 0x515   : > { %v4986_v3 = vadd.f32 %v1064_v2, %v1056_v1 }
 0x517   : > { %4435 = vtanh.f32 %v4986_v3 }
 0x51c   : > { %v1168_v5 = vpop.permute.xlu1 %1167 }
 0x51d   : > { %v1170_v6 = vadd.f32 %v1168_v5, %v1160_v4 }
 0x51f   : > { %4437 = vtanh.f32 %v1170_v6 }
 0x521   : > { %v4436_v7 = vpop.eup %4435 }
 0x522   : > { %1069 = vrot.lane.b32.xlu0 %v4436_v7, %s4715_s23 }
 0x529   : > { %v4438_v8 = vpop.eup %4437 }
 0x52a   : > { %1173 = vrot.lane.b32.xlu1 %v4438_v8, %s4711_s12 }
 0x594   : > { %v1070_v9 = vpop.permute.xlu0 %1069 }
 0x595   : > { %v4992_v10 = vmul.f32 %v4432_v59, %v1070_v9 }
 0x597   : > { %1181 = vrot.lane.b32.xlu1 %v4992_v10, %s4716_s20 }
 0x59c   : > { %v1174_v12 = vpop.permute.xlu1 %1173 }
 0x59d   : > { %v1176_v14 = vmul.f32 %v4434_v62, %v1174_v12 }
 0x59f   : > { %1178 = vrot.lane.b32.xlu0 %v1176_v14, %s4712_s13 }
 0x609   : > { %v1182_v15 = vpop.permute.xlu1 %1181 }
 0x611   : > { %v1179_v16 = vpop.permute.xlu0 %1178 }
 0x612   : > { %v1184_v17 = vsel %vm868_vm4, %v1179_v16, %v1182_v15  ;;  %3864 = vmatmul.mubr.msk.f32.vlgmr.msra.gmra.mrb[12].mxu0 %vm868_vm4, %v1179_v16 }
 0x613   : > { %3853 = vmatmul.mubr.msk.f32.vlgmr.msra.gmra.mrb[10].mxu1 %vm972_vm5, %v1184_v17  ;;  %4233 = vmatpush3.bf16.msra.mxu0 %v4888_v11 }
 0x614   : > { %4227 = vmatpush3.bf16.msra.mxu1 %v4933_v34  ;;  %4234 = vmatprep.subr.bf16.mxu0 %v4708_v13 }
 0x615   : > { %4228 = vmatprep.subr.bf16.mxu1 %v4708_v13  ;;  %3887 = vmatprep.mubr.msk.f32.mxu0 %vm4709_vm3, %v4710_v23 }
 0x616   : > { %3876 = vmatprep.mubr.msk.f32.mxu1 %vm4709_vm3, %v4710_v23 }
 0x617   : > { %4236 = vmatpush3.bf16.msra.mxu0 %v4900_v20 }
 0x618   : > { %4230 = vmatpush3.bf16.msra.mxu1 %v4939_v36  ;;  %4237 = vmatprep.subr.bf16.mxu0 %v4708_v13 }
 0x619   : > { %3874 = vmatprep.subr.mxu1 %v4710_v23 }
 0x61c   : > { %3875 = vmatpush3.msk.msra.mxu1 %vm460_vm0, %v4950_v37 }
 0x61d   : > { %4243 = vmatprep.subr.bf16.mxu1 %v4708_v13 }
 0x6e5   : > { %v1357_v19 = vpop.f32.mrb[12].mxu0 }
 0x6e6   : > { %v1361_v21 = vadd.f32 %v1357_v19, %v1288_v18  ;;  %v1254_v22 = vpop.f32.mrb[10].mxu1  ;;  %v3865_v24 = vpop.f32.mrb[13].mxu0 }
 0x6e7   : > { %v1255_v25 = vadd.f32 %v1254_v22, %v4979_v43  ;;  %v3854_v26 = vpop.f32.mrb[11].mxu1 }
 0x6e8   : > { %4439 = vtanh.f32 %v1361_v21  ;;  %v3489_v29 = vmul.f32 -1.442695, %v1361_v21 }
 0x6e9   : > { %4441 = vtanh.f32 %v1255_v25  ;;  %v3487_v30 = vmul.f32 -1.442695, %v1255_v25 }
 0x6ea   : > { %4443 = vpow2.f32 %v3489_v29 }
 0x6eb   : > { %4445 = vpow2.f32 %v3487_v30 }
 0x6f2   : > { %v4440_v27 = vpop.eup %4439 }
 0x6f3   : > { %v4442_v28 = vpop.eup %4441  ;;  %1371 = vrot.lane.b32.xlu1 %v4440_v27, %s4711_s12 }
 0x6f4   : > { %1267 = vrot.lane.b32.xlu0 %v4442_v28, %s4713_s21  ;;  %v4444_v31 = vpop.eup %4443 }
 0x6f5   : > { %v4446_v32 = vpop.eup %4445  ;;  %v1365_v33 = vadd.f32 1.0, %v4444_v31 }
 0x6f6   : > { %v1261_v35 = vadd.f32 1.0, %v4446_v32 }
 0x6f7   : > { %4447 = vrcp.f32 %v1365_v33 }
 0x6f8   : > { %4449 = vrcp.f32 %v1261_v35 }
 0x701   : > { %v4448_v38 = vpop.eup %4447 }
 0x702   : > { %v4450_v40 = vpop.eup %4449  ;;  %v1369_v45 = vmul.f32 %v4448_v38, %v1170_v6 }
 0x703   : > { %v1265_v47 = vmul.f32 %v4450_v40, %v4986_v3 }
 0x765   : > { %v1372_v39 = vpop.permute.xlu1 %1371 }
 0x766   : > { %v1374_v41 = vmul.f32 %v4448_v38, %v1372_v39  ;;  %v1268_v42 = vpop.permute.xlu0 %1267 }
 0x767   : > { %v1270_v44 = vmul.f32 %v4450_v40, %v1268_v42 }
 0x768   : > { %1376 = vrot.lane.b32.xlu1 %v1374_v41, %s4712_s13 }
 0x769   : > { %1272 = vrot.lane.b32.xlu0 %v1270_v44, %s4714_s22 }
 0x7da   : > { %v1377_v46 = vpop.permute.xlu1 %1376 }
 0x7db   : > { %v5021_v48 = vadd.f32 %v1377_v46, %v1369_v45  ;;  %v1273_v49 = vpop.permute.xlu0 %1272 }
 0x7dc   : > { %v5023_v50 = vadd.f32 %v1273_v49, %v1265_v47 }
 0x7dd   : > { %4451 = vtanh.f32 %v5021_v48 }
 0x7de   : > { %4453 = vtanh.f32 %v5023_v50 }
 0x7e7   : > { %v4452_v51 = vpop.eup %4451 }
 0x7e8   : > { %v4454_v52 = vpop.eup %4453  ;;  %1382 = vrot.lane.b32.xlu1 %v4452_v51, %s4711_s12 }
 0x7e9   : > { %1278 = vrot.lane.b32.xlu0 %v4454_v52, %s4715_s23 }
 0x85a   : > { %v1383_v53 = vpop.permute.xlu1 %1382 }
 0x85b   : > { %v1385_v54 = vmul.f32 %v4448_v38, %v1383_v53  ;;  %v1279_v55 = vpop.permute.xlu0 %1278 }
 0x85c   : > { %v5029_v56 = vmul.f32 %v4450_v40, %v1279_v55  ;;  %v1702_v40 = vld [vmem:[#allocation2 + $0x4] sm:$0x1] }
 0x85d   : > { %1387 = vrot.lane.b32.xlu0 %v1385_v54, %s4712_s13 }
 0x85e   : > { %1390 = vrot.lane.b32.xlu1 %v5029_v56, %s4716_s20 }
 0x8cf   : > { %v1388_v57 = vpop.permute.xlu0 %1387 }
 0x8d0   : > { %3888 = vmatmul.mubr.msk.f32.vlgmr.msra.gmra.mrb[14].mxu0 %vm868_vm4, %v1388_v57  ;;  %v1391_v58 = vpop.permute.xlu1 %1390 }
 0x8d1   : > { %v1393_v59 = vsel %vm868_vm4, %v1388_v57, %v1391_v58  ;;  %4239 = vmatpush3.bf16.msra.mxu0 %v4933_v34  ;;  %3900 = vmatprep.mubr.msk.f32.mxu0 %vm4709_vm3, %v4710_v23 }
 0x8d2   : > { %3877 = vmatmul.mubr.msk.f32.vlgmr.msra.gmra.mrb[12].mxu1 %vm972_vm5, %v1393_v59  ;;  %4240 = vmatprep.subr.bf16.mxu0 %v4708_v13 }
 0x8d3   : > { %4245 = vmatpush3.bf16.msra.mxu1 %v4888_v11  ;;  %3911 = vmatprep.mubr.msk.f32.mxu1 %vm4709_vm3, %v4710_v23 }
 0x8d4   : > { %4246 = vmatprep.subr.bf16.mxu1 %v4708_v13 }
 0x8d5   : > { %4242 = vmatpush3.bf16.msra.mxu0 %v4939_v36 }
 0x8d6   : > { %3898 = vmatprep.subr.mxu0 %v4710_v23 }
 0x8d7   : > { %4248 = vmatpush3.bf16.msra.mxu1 %v4900_v20 }
 0x8d8   : > { %4249 = vmatprep.subr.bf16.mxu1 %v4708_v13 }
 0x8d9   : > { %3899 = vmatpush3.msk.msra.mxu0 %vm460_vm0, %v4950_v37 }
 0x8da   : > { %4255 = vmatprep.subr.bf16.mxu0 %v4708_v13 }
 0x9a3   : > { %v1566_v61 = vpop.f32.mrb[14].mxu0 }
 0x9a4   : > { %v1570_v62 = vadd.f32 %v1566_v61, %v1497_v60  ;;  %v3889_v63 = vpop.f32.mrb[15].mxu0 }
 0x9a5   : > { %v1463_v0 = vpop.f32.mrb[12].mxu1 }
 0x9a6   : > { %4455 = vtanh.f32 %v1570_v62  ;;  %v1464_v1 = vadd.f32 %v1463_v0, %v4979_v43  ;;  %v3878_v2 = vpop.f32.mrb[13].mxu1  ;;  %v3494_v5 = vmul.f32 -1.442695, %v1570_v62 }
 0x9a8   : > { %4457 = vtanh.f32 %v1464_v1  ;;  %v3492_v6 = vmul.f32 -1.442695, %v1464_v1 }
 0x9a9   : > { %4459 = vpow2.f32 %v3494_v5 }
 0x9aa   : > { %4461 = vpow2.f32 %v3492_v6 }
 0x9b0   : > { %v4456_v3 = vpop.eup %4455 }
 0x9b1   : > { %1580 = vrot.lane.b32.xlu1 %v4456_v3, %s4711_s12 }
 0x9b2   : > { %v4458_v4 = vpop.eup %4457 }
 0x9b3   : > { %1476 = vrot.lane.b32.xlu0 %v4458_v4, %s4713_s21  ;;  %v4460_v7 = vpop.eup %4459 }
 0x9b4   : > { %v4462_v8 = vpop.eup %4461  ;;  %v1574_v9 = vadd.f32 1.0, %v4460_v7 }
 0x9b5   : > { %v1470_v12 = vadd.f32 1.0, %v4462_v8 }
 0x9b6   : > { %4463 = vrcp.f32 %v1574_v9 }
 0x9b7   : > { %4465 = vrcp.f32 %v1470_v12 }
 0x9c0   : > { %v4464_v14 = vpop.eup %4463 }
 0x9c1   : > { %v4466_v17 = vpop.eup %4465  ;;  %v1578_v21 = vmul.f32 %v4464_v14, %v5021_v48 }
 0x9c2   : > { %v1474_v25 = vmul.f32 %v4466_v17, %v5023_v50 }
 0xa23   : > { %v1581_v15 = vpop.permute.xlu1 %1580 }
 0xa24   : > { %v1583_v16 = vmul.f32 %v4464_v14, %v1581_v15 }
 0xa25   : > { %v1477_v18 = vpop.permute.xlu0 %1476 }
 0xa26   : > { %1585 = vrot.lane.b32.xlu1 %v1583_v16, %s4712_s13  ;;  %v1479_v19 = vmul.f32 %v4466_v17, %v1477_v18 }
 0xa28   : > { %1481 = vrot.lane.b32.xlu0 %v1479_v19, %s4714_s22 }
 0xa98   : > { %v1586_v22 = vpop.permute.xlu1 %1585 }
 0xa99   : > { %v5058_v24 = vadd.f32 %v1586_v22, %v1578_v21 }
 0xa9a   : > { %v1482_v26 = vpop.permute.xlu0 %1481 }
 0xa9b   : > { %4467 = vtanh.f32 %v5058_v24  ;;  %v5062_v27 = vadd.f32 %v1482_v26, %v1474_v25 }
 0xa9d   : > { %4469 = vtanh.f32 %v5062_v27 }
 0xaa5   : > { %v4468_v28 = vpop.eup %4467 }
 0xaa6   : > { %1591 = vrot.lane.b32.xlu1 %v4468_v28, %s4711_s12 }
 0xaa7   : > { %v4470_v29 = vpop.eup %4469 }
 0xaa8   : > { %1487 = vrot.lane.b32.xlu0 %v4470_v29, %s4715_s23 }
 0xb18   : > { %v1592_v30 = vpop.permute.xlu1 %1591 }
 0xb19   : > { %v1594_v31 = vmul.f32 %v4464_v14, %v1592_v30 }
 0xb1a   : > { %v1488_v32 = vpop.permute.xlu0 %1487 }
 0xb1b   : > { %1596 = vrot.lane.b32.xlu0 %v1594_v31, %s4712_s13  ;;  %v5068_v33 = vmul.f32 %v4466_v17, %v1488_v32  ;;  %v1912_v17 = vld [vmem:[#allocation2 + $0x5] sm:$0x1] }
 0xb1d   : > { %1599 = vrot.lane.b32.xlu1 %v5068_v33, %s4716_s20 }
 0xb8d   : > { %v1597_v35 = vpop.permute.xlu0 %1596 }
 0xb8e   : > { %3912 = vmatmul.mubr.msk.f32.vlgmr.msra.gmra.mrb[14].mxu1 %vm868_vm4, %v1597_v35 }
 0xb8f   : > { %4251 = vmatpush3.bf16.msra.mxu1 %v4933_v34  ;;  %3924 = vmatprep.mubr.msk.f32.mxu1 %vm4709_vm3, %v4710_v23  ;;  %v1600_v38 = vpop.permute.xlu1 %1599 }
 0xb90   : > { %4252 = vmatprep.subr.bf16.mxu1 %v4708_v13  ;;  %v1602_v39 = vsel %vm868_vm4, %v1597_v35, %v1600_v38 }
 0xb91   : > { %3901 = vmatmul.mubr.msk.f32.vlgmr.msra.gmra.mrb[16].mxu0 %vm972_vm5, %v1602_v39 }
 0xb92   : > { %4257 = vmatpush3.bf16.msra.mxu0 %v4888_v11  ;;  %3935 = vmatprep.mubr.msk.f32.mxu0 %vm4709_vm3, %v4710_v23 }
 0xb93   : > { %4254 = vmatpush3.bf16.msra.mxu1 %v4939_v36  ;;  %4258 = vmatprep.subr.bf16.mxu0 %v4708_v13 }
 0xb94   : > { %3922 = vmatprep.subr.mxu1 %v4710_v23 }
 0xb96   : > { %4260 = vmatpush3.bf16.msra.mxu0 %v4900_v20 }
 0xb97   : > { %3923 = vmatpush3.msk.msra.mxu1 %vm460_vm0, %v4950_v37  ;;  %4261 = vmatprep.subr.bf16.mxu0 %v4708_v13 }
 0xb98   : > { %4267 = vmatprep.subr.bf16.mxu1 %v4708_v13 }
 0xc61   : > { %v1771_v41 = vpop.f32.mrb[14].mxu1 }
 0xc62   : > { %v1775_v42 = vadd.f32 %v1771_v41, %v1702_v40  ;;  %v3913_v44 = vpop.f32.mrb[15].mxu1 }
 0xc64   : > { %4471 = vtanh.f32 %v1775_v42  ;;  %v1672_v45 = vpop.f32.mrb[16].mxu0  ;;  %v3499_v50 = vmul.f32 -1.442695, %v1775_v42 }
 0xc65   : > { %v1673_v46 = vadd.f32 %v1672_v45, %v4979_v43  ;;  %v3902_v47 = vpop.f32.mrb[17].mxu0 }
 0xc67   : > { %4473 = vtanh.f32 %v1673_v46  ;;  %v3497_v51 = vmul.f32 -1.442695, %v1673_v46 }
 0xc68   : > { %4475 = vpow2.f32 %v3499_v50 }
 0xc69   : > { %4477 = vpow2.f32 %v3497_v51 }
 0xc6e   : > { %v4472_v48 = vpop.eup %4471 }
 0xc6f   : > { %1785 = vrot.lane.b32.xlu1 %v4472_v48, %s4711_s12 }
 0xc71   : > { %v4474_v49 = vpop.eup %4473 }
 0xc72   : > { %1685 = vrot.lane.b32.xlu0 %v4474_v49, %s4713_s21  ;;  %v4476_v52 = vpop.eup %4475 }
 0xc73   : > { %v1779_v53 = vadd.f32 1.0, %v4476_v52  ;;  %v4478_v54 = vpop.eup %4477 }
 0xc74   : > { %v1679_v55 = vadd.f32 1.0, %v4478_v54 }
 0xc75   : > { %4479 = vrcp.f32 %v1779_v53 }
 0xc76   : > { %4481 = vrcp.f32 %v1679_v55 }
 0xc7f   : > { %v4480_v57 = vpop.eup %4479 }
 0xc80   : > { %v4482_v60 = vpop.eup %4481  ;;  %v1783_v63 = vmul.f32 %v4480_v57, %v5058_v24 }
 0xc81   : > { %v1683_v2 = vmul.f32 %v4482_v60, %v5062_v27 }
 0xce1   : > { %v1786_v58 = vpop.permute.xlu1 %1785 }
 0xce2   : > { %v1788_v59 = vmul.f32 %v4480_v57, %v1786_v58 }
 0xce4   : > { %1790 = vrot.lane.b32.xlu1 %v1788_v59, %s4712_s13  ;;  %v1686_v61 = vpop.permute.xlu0 %1685 }
 0xce5   : > { %v1688_v62 = vmul.f32 %v4482_v60, %v1686_v61  ;;  %v2121_v61 = vld [vmem:[#allocation2 + $0x6] sm:$0x1] }
 0xce7   : > { %1690 = vrot.lane.b32.xlu0 %v1688_v62, %s4714_s22 }
 0xd56   : > { %v1791_v0 = vpop.permute.xlu1 %1790 }
 0xd57   : > { %v5096_v1 = vadd.f32 %v1791_v0, %v1783_v63 }
 0xd59   : > { %4483 = vtanh.f32 %v5096_v1  ;;  %v1691_v3 = vpop.permute.xlu0 %1690 }
 0xd5a   : > { %v5100_v4 = vadd.f32 %v1691_v3, %v1683_v2 }
 0xd5c   : > { %4485 = vtanh.f32 %v5100_v4 }
 0xd63   : > { %v4484_v5 = vpop.eup %4483 }
 0xd64   : > { %1796 = vrot.lane.b32.xlu1 %v4484_v5, %s4711_s12 }
 0xd66   : > { %v4486_v6 = vpop.eup %4485 }
 0xd67   : > { %1696 = vrot.lane.b32.xlu0 %v4486_v6, %s4715_s23 }
 0xdd6   : > { %v1797_v7 = vpop.permute.xlu1 %1796 }
 0xdd7   : > { %v1799_v8 = vmul.f32 %v4480_v57, %v1797_v7 }
 0xdd9   : > { %1801 = vrot.lane.b32.xlu0 %v1799_v8, %s4712_s13  ;;  %v1697_v9 = vpop.permute.xlu0 %1696 }
 0xdda   : > { %v5106_v12 = vmul.f32 %v4482_v60, %v1697_v9 }
 0xddc   : > { %1805 = vrot.lane.b32.xlu1 %v5106_v12, %s4716_s20 }
 0xe4b   : > { %v1802_v14 = vpop.permute.xlu0 %1801 }
 0xe4c   : > { %3936 = vmatmul.mubr.msk.f32.vlgmr.msra.gmra.mrb[18].mxu0 %vm868_vm4, %v1802_v14 }
 0xe4d   : > { %4263 = vmatpush3.bf16.msra.mxu0 %v4933_v34  ;;  %3948 = vmatprep.mubr.msk.f32.mxu0 %vm4709_vm3, %v4710_v23 }
 0xe4e   : > { %4264 = vmatprep.subr.bf16.mxu0 %v4708_v13  ;;  %v1806_v15 = vpop.permute.xlu1 %1805 }
 0xe4f   : > { %v1808_v16 = vsel %vm868_vm4, %v1802_v14, %v1806_v15 }
 0xe50   : > { %3925 = vmatmul.mubr.msk.f32.vlgmr.msra.gmra.mrb[16].mxu1 %vm972_vm5, %v1808_v16 }
 0xe51   : > { %4266 = vmatpush3.bf16.msra.mxu0 %v4939_v36  ;;  %4269 = vmatpush3.bf16.msra.mxu1 %v4888_v11 }
 0xe52   : > { %3959 = vmatprep.mubr.msk.f32.mxu1 %vm4709_vm3, %v4710_v23  ;;  %4270 = vmatprep.subr.bf16.mxu1 %v4708_v13 }
 0xe53   : > { %3946 = vmatprep.subr.mxu0 %v4710_v23 }
 0xe55   : > { %3947 = vmatpush3.msk.msra.mxu0 %vm460_vm0, %v4950_v37  ;;  %4272 = vmatpush3.bf16.msra.mxu1 %v4900_v20 }
 0xe56   : > { %4279 = vmatprep.subr.bf16.mxu0 %v4708_v13  ;;  %4273 = vmatprep.subr.bf16.mxu1 %v4708_v13 }
 0xf1f   : > { %v1981_v18 = vpop.f32.mrb[18].mxu0 }
 0xf20   : > { %v1985_v19 = vadd.f32 %v1981_v18, %v1912_v17  ;;  %v3937_v21 = vpop.f32.mrb[19].mxu0 }
 0xf22   : > { %4487 = vtanh.f32 %v1985_v19  ;;  %v3504_v28 = vmul.f32 -1.442695, %v1985_v19 }
 0xf23   : > { %v1878_v22 = vpop.f32.mrb[16].mxu1 }
 0xf24   : > { %v1879_v24 = vadd.f32 %v1878_v22, %v4979_v43  ;;  %v3926_v25 = vpop.f32.mrb[17].mxu1 }
 0xf26   : > { %4489 = vtanh.f32 %v1879_v24  ;;  %v3502_v29 = vmul.f32 -1.442695, %v1879_v24 }
 0xf27   : > { %4491 = vpow2.f32 %v3504_v28 }
 0xf28   : > { %4493 = vpow2.f32 %v3502_v29 }
 0xf2c   : > { %v4488_v26 = vpop.eup %4487 }
 0xf2d   : > { %1995 = vrot.lane.b32.xlu1 %v4488_v26, %s4711_s12 }
 0xf30   : > { %v4490_v27 = vpop.eup %4489 }
 0xf31   : > { %1891 = vrot.lane.b32.xlu0 %v4490_v27, %s4713_s21  ;;  %v4492_v30 = vpop.eup %4491 }
 0xf32   : > { %v1989_v31 = vadd.f32 1.0, %v4492_v30  ;;  %v4494_v32 = vpop.eup %4493 }
 0xf33   : > { %v1885_v35 = vadd.f32 1.0, %v4494_v32 }
 0xf34   : > { %4495 = vrcp.f32 %v1989_v31 }
 0xf35   : > { %4497 = vrcp.f32 %v1885_v35 }
 0xf3e   : > { %v4496_v38 = vpop.eup %4495 }
 0xf3f   : > { %v4498_v41 = vpop.eup %4497  ;;  %v1993_v45 = vmul.f32 %v4496_v38, %v5096_v1 }
 0xf40   : > { %v1889_v48 = vmul.f32 %v4498_v41, %v5100_v4 }
 0xf9f   : > { %v1996_v39 = vpop.permute.xlu1 %1995 }
 0xfa0   : > { %v1998_v40 = vmul.f32 %v4496_v38, %v1996_v39 }
 0xfa2   : > { %2000 = vrot.lane.b32.xlu1 %v1998_v40, %s4712_s13 }
 0xfa3   : > { %v1892_v42 = vpop.permute.xlu0 %1891 }
 0xfa4   : > { %v1894_v44 = vmul.f32 %v4498_v41, %v1892_v42 }
 0xfa6   : > { %1896 = vrot.lane.b32.xlu0 %v1894_v44, %s4714_s22  ;;  %v2330_v44 = vld [vmem:[#allocation2 + $0x7] sm:$0x1] }
0x1014   : > { %v2001_v46 = vpop.permute.xlu1 %2000 }
0x1015   : > { %v5134_v47 = vadd.f32 %v2001_v46, %v1993_v45 }
0x1017   : > { %4499 = vtanh.f32 %v5134_v47 }
0x1018   : > { %v1897_v49 = vpop.permute.xlu0 %1896 }
0x1019   : > { %v5138_v50 = vadd.f32 %v1897_v49, %v1889_v48 }
0x101b   : > { %4501 = vtanh.f32 %v5138_v50 }
0x1021   : > { %v4500_v51 = vpop.eup %4499 }
0x1022   : > { %2006 = vrot.lane.b32.xlu1 %v4500_v51, %s4711_s12 }
0x1025   : > { %v4502_v52 = vpop.eup %4501 }
0x1026   : > { %1902 = vrot.lane.b32.xlu0 %v4502_v52, %s4715_s23 }
0x1094   : > { %v2007_v53 = vpop.permute.xlu1 %2006 }
0x1095   : > { %v2009_v54 = vmul.f32 %v4496_v38, %v2007_v53 }
0x1097   : > { %2011 = vrot.lane.b32.xlu0 %v2009_v54, %s4712_s13 }
0x1098   : > { %v1903_v55 = vpop.permute.xlu0 %1902 }
0x1099   : > { %v5144_v57 = vmul.f32 %v4498_v41, %v1903_v55 }
0x109b   : > { %2014 = vrot.lane.b32.xlu1 %v5144_v57, %s4716_s20 }
0x1109   : > { %v2012_v58 = vpop.permute.xlu0 %2011 }
0x110a   : > { %3960 = vmatmul.mubr.msk.f32.vlgmr.msra.gmra.mrb[18].mxu1 %vm868_vm4, %v2012_v58 }
0x110b   : > { %4275 = vmatpush3.bf16.msra.mxu1 %v4933_v34  ;;  %3972 = vmatprep.mubr.msk.f32.mxu1 %vm4709_vm3, %v4710_v23 }
0x110c   : > { %4276 = vmatprep.subr.bf16.mxu1 %v4708_v13 }
0x110d   : > { %v2015_v59 = vpop.permute.xlu1 %2014 }
0x110e   : > { %v2017_v60 = vsel %vm868_vm4, %v2012_v58, %v2015_v59 }
0x110f   : > { %4278 = vmatpush3.bf16.msra.mxu1 %v4939_v36  ;;  %3949 = vmatmul.mubr.msk.f32.vlgmr.msra.gmra.mrb[20].mxu0 %vm972_vm5, %v2017_v60 }
0x1110   : > { %3970 = vmatprep.subr.mxu1 %v4710_v23  ;;  %4281 = vmatpush3.bf16.msra.mxu0 %v4888_v11 }
0x1111   : > { %3983 = vmatprep.mubr.msk.f32.mxu0 %vm4709_vm3, %v4710_v23  ;;  %4282 = vmatprep.subr.bf16.mxu0 %v4708_v13 }
0x1113   : > { %3971 = vmatpush3.msk.msra.mxu1 %vm460_vm0, %v4950_v37 }
0x1114   : > { %4291 = vmatprep.subr.bf16.mxu1 %v4708_v13  ;;  %4284 = vmatpush3.bf16.msra.mxu0 %v4900_v20 }
0x1115   : > { %4285 = vmatprep.subr.bf16.mxu0 %v4708_v13 }
0x11dd   : > { %v2190_v62 = vpop.f32.mrb[18].mxu1 }
0x11de   : > { %v2194_v63 = vadd.f32 %v2190_v62, %v2121_v61  ;;  %v3961_v0 = vpop.f32.mrb[19].mxu1 }
0x11e0   : > { %4503 = vtanh.f32 %v2194_v63  ;;  %v3509_v6 = vmul.f32 -1.442695, %v2194_v63 }
0x11e2   : > { %v2087_v1 = vpop.f32.mrb[20].mxu0 }
0x11e3   : > { %v2088_v2 = vadd.f32 %v2087_v1, %v4979_v43  ;;  %v3950_v3 = vpop.f32.mrb[21].mxu0 }
0x11e5   : > { %4505 = vtanh.f32 %v2088_v2  ;;  %v3507_v7 = vmul.f32 -1.442695, %v2088_v2 }
0x11e6   : > { %4507 = vpow2.f32 %v3509_v6 }
0x11e7   : > { %4509 = vpow2.f32 %v3507_v7 }
0x11ea   : > { %v4504_v4 = vpop.eup %4503 }
0x11eb   : > { %2204 = vrot.lane.b32.xlu1 %v4504_v4, %s4711_s12 }
0x11ef   : > { %v4506_v5 = vpop.eup %4505 }
0x11f0   : > { %2100 = vrot.lane.b32.xlu0 %v4506_v5, %s4713_s21  ;;  %v4508_v8 = vpop.eup %4507 }
0x11f1   : > { %v2198_v9 = vadd.f32 1.0, %v4508_v8  ;;  %v4510_v14 = vpop.eup %4509 }
0x11f2   : > { %v2094_v15 = vadd.f32 1.0, %v4510_v14 }
0x11f3   : > { %4511 = vrcp.f32 %v2198_v9 }
0x11f4   : > { %4513 = vrcp.f32 %v2094_v15 }
0x11fd   : > { %v4512_v16 = vpop.eup %4511 }
0x11fe   : > { %v4514_v19 = vpop.eup %4513  ;;  %v2202_v24 = vmul.f32 %v4512_v16, %v5134_v47 }
0x11ff   : > { %v2098_v27 = vmul.f32 %v4514_v19, %v5138_v50 }
0x125d   : > { %v2205_v17 = vpop.permute.xlu1 %2204 }
0x125e   : > { %v2207_v18 = vmul.f32 %v4512_v16, %v2205_v17 }
0x1260   : > { %2209 = vrot.lane.b32.xlu1 %v2207_v18, %s4712_s13 }
0x1262   : > { %v2101_v21 = vpop.permute.xlu0 %2100 }
0x1263   : > { %v2103_v22 = vmul.f32 %v4514_v19, %v2101_v21 }
0x1265   : > { %2105 = vrot.lane.b32.xlu0 %v2103_v22, %s4714_s22 }
0x12d2   : > { %v2210_v25 = vpop.permute.xlu1 %2209 }
0x12d3   : > { %v5172_v26 = vadd.f32 %v2210_v25, %v2202_v24  ;;  %v2539_v24 = vld [vmem:[#allocation2 + $0x8] sm:$0x1] }
0x12d5   : > { %4515 = vtanh.f32 %v5172_v26 }
0x12d7   : > { %v2106_v28 = vpop.permute.xlu0 %2105 }
0x12d8   : > { %v5176_v29 = vadd.f32 %v2106_v28, %v2098_v27 }
0x12da   : > { %4517 = vtanh.f32 %v5176_v29 }
0x12df   : > { %v4516_v30 = vpop.eup %4515 }
0x12e0   : > { %2215 = vrot.lane.b32.xlu1 %v4516_v30, %s4711_s12 }
0x12e4   : > { %v4518_v31 = vpop.eup %4517 }
0x12e5   : > { %2111 = vrot.lane.b32.xlu0 %v4518_v31, %s4715_s23 }
0x1352   : > { %v2216_v32 = vpop.permute.xlu1 %2215 }
0x1353   : > { %v2218_v35 = vmul.f32 %v4512_v16, %v2216_v32 }
0x1355   : > { %2220 = vrot.lane.b32.xlu0 %v2218_v35, %s4712_s13 }
0x1357   : > { %v2112_v38 = vpop.permute.xlu0 %2111 }
0x1358   : > { %v5182_v39 = vmul.f32 %v4514_v19, %v2112_v38 }
0x135a   : > { %2223 = vrot.lane.b32.xlu1 %v5182_v39, %s4716_s20 }
0x13c7   : > { %v2221_v40 = vpop.permute.xlu0 %2220 }
0x13c8   : > { %3984 = vmatmul.mubr.msk.f32.vlgmr.msra.gmra.mrb[22].mxu0 %vm868_vm4, %v2221_v40 }
0x13c9   : > { %4287 = vmatpush3.bf16.msra.mxu0 %v4933_v34  ;;  %3996 = vmatprep.mubr.msk.f32.mxu0 %vm4709_vm3, %v4710_v23 }
0x13ca   : > { %4288 = vmatprep.subr.bf16.mxu0 %v4708_v13 }
0x13cc   : > { %v2224_v41 = vpop.permute.xlu1 %2223 }
0x13cd   : > { %4290 = vmatpush3.bf16.msra.mxu0 %v4939_v36  ;;  %v2226_v42 = vsel %vm868_vm4, %v2221_v40, %v2224_v41 }
0x13ce   : > { %3994 = vmatprep.subr.mxu0 %v4710_v23  ;;  %3973 = vmatmul.mubr.msk.f32.vlgmr.msra.gmra.mrb[20].mxu1 %vm972_vm5, %v2226_v42 }
0x13cf   : > { %4293 = vmatpush3.bf16.msra.mxu1 %v4888_v11  ;;  %4007 = vmatprep.mubr.msk.f32.mxu1 %vm4709_vm3, %v4710_v23 }
0x13d0   : > { %4294 = vmatprep.subr.bf16.mxu1 %v4708_v13 }
0x13d1   : > { %3995 = vmatpush3.msk.msra.mxu0 %vm460_vm0, %v4950_v37 }
0x13d2   : > { %4303 = vmatprep.subr.bf16.mxu0 %v4708_v13 }
0x13d3   : > { %4296 = vmatpush3.bf16.msra.mxu1 %v4900_v20 }
0x13d4   : > { %4297 = vmatprep.subr.bf16.mxu1 %v4708_v13 }
0x149b   : > { %v2399_v45 = vpop.f32.mrb[22].mxu0 }
0x149c   : > { %v2403_v46 = vadd.f32 %v2399_v45, %v2330_v44  ;;  %v3985_v47 = vpop.f32.mrb[23].mxu0 }
0x149e   : > { %4519 = vtanh.f32 %v2403_v46  ;;  %v3514_v53 = vmul.f32 -1.442695, %v2403_v46 }
0x14a1   : > { %v2296_v48 = vpop.f32.mrb[20].mxu1 }
0x14a2   : > { %v2297_v49 = vadd.f32 %v2296_v48, %v4979_v43  ;;  %v3974_v50 = vpop.f32.mrb[21].mxu1 }
0x14a4   : > { %4521 = vtanh.f32 %v2297_v49  ;;  %v3512_v54 = vmul.f32 -1.442695, %v2297_v49 }
0x14a5   : > { %4523 = vpow2.f32 %v3514_v53 }
0x14a6   : > { %4525 = vpow2.f32 %v3512_v54 }
0x14a8   : > { %v4520_v51 = vpop.eup %4519 }
0x14a9   : > { %2413 = vrot.lane.b32.xlu1 %v4520_v51, %s4711_s12 }
0x14ae   : > { %v4522_v52 = vpop.eup %4521 }
0x14af   : > { %2309 = vrot.lane.b32.xlu0 %v4522_v52, %s4713_s21  ;;  %v4524_v55 = vpop.eup %4523 }
0x14b0   : > { %v2407_v58 = vadd.f32 1.0, %v4524_v55  ;;  %v4526_v59 = vpop.eup %4525 }
0x14b1   : > { %v2303_v60 = vadd.f32 1.0, %v4526_v59 }
0x14b2   : > { %4527 = vrcp.f32 %v2407_v58 }
0x14b3   : > { %4529 = vrcp.f32 %v2303_v60 }
0x14bc   : > { %v4528_v61 = vpop.eup %4527 }
0x14bd   : > { %v4530_v0 = vpop.eup %4529  ;;  %v2411_v3 = vmul.f32 %v4528_v61, %v5172_v26 }
0x14be   : > { %v2307_v6 = vmul.f32 %v4530_v0, %v5176_v29 }
0x151b   : > { %v2414_v62 = vpop.permute.xlu1 %2413 }
0x151c   : > { %v2416_v63 = vmul.f32 %v4528_v61, %v2414_v62 }
0x151e   : > { %2418 = vrot.lane.b32.xlu1 %v2416_v63, %s4712_s13 }
0x1521   : > { %v2310_v1 = vpop.permute.xlu0 %2309 }
0x1522   : > { %v2312_v2 = vmul.f32 %v4530_v0, %v2310_v1 }
0x1524   : > { %2314 = vrot.lane.b32.xlu0 %v2312_v2, %s4714_s22  ;;  %v5274_v2 = vld [vmem:[%s5453_s6 + $0x20] sm:$0xf] }
0x1590   : > { %v2419_v4 = vpop.permute.xlu1 %2418 }
0x1591   : > { %v5210_v5 = vadd.f32 %v2419_v4, %v2411_v3  ;;  %v2748_v3 = vld [vmem:[#allocation2 + $0x9] sm:$0x1] }
0x1593   : > { %4531 = vtanh.f32 %v5210_v5 }
0x1596   : > { %v2315_v7 = vpop.permute.xlu0 %2314 }
0x1597   : > { %v5214_v8 = vadd.f32 %v2315_v7, %v2307_v6 }
0x1599   : > { %4533 = vtanh.f32 %v5214_v8 }
0x159d   : > { %v4532_v9 = vpop.eup %4531 }
0x159e   : > { %2424 = vrot.lane.b32.xlu1 %v4532_v9, %s4711_s12 }
0x15a3   : > { %v4534_v14 = vpop.eup %4533 }
0x15a4   : > { %2320 = vrot.lane.b32.xlu0 %v4534_v14, %s4715_s23 }
0x1610   : > { %v2425_v15 = vpop.permute.xlu1 %2424 }
0x1611   : > { %v2427_v16 = vmul.f32 %v4528_v61, %v2425_v15 }
0x1613   : > { %2429 = vrot.lane.b32.xlu0 %v2427_v16, %s4712_s13 }
0x1616   : > { %v2321_v17 = vpop.permute.xlu0 %2320 }
0x1617   : > { %v5220_v18 = vmul.f32 %v4530_v0, %v2321_v17 }
0x1619   : > { %2432 = vrot.lane.b32.xlu1 %v5220_v18, %s4716_s20 }
0x1685   : > { %v2430_v19 = vpop.permute.xlu0 %2429 }
0x1686   : > { %4008 = vmatmul.mubr.msk.f32.vlgmr.msra.gmra.mrb[22].mxu1 %vm868_vm4, %v2430_v19 }
0x1687   : > { %4299 = vmatpush3.bf16.msra.mxu1 %v4933_v34  ;;  %4020 = vmatprep.mubr.msk.f32.mxu1 %vm4709_vm3, %v4710_v23 }
0x1688   : > { %4300 = vmatprep.subr.bf16.mxu1 %v4708_v13 }
0x168b   : > { %4302 = vmatpush3.bf16.msra.mxu1 %v4939_v36  ;;  %v2433_v21 = vpop.permute.xlu1 %2432 }
0x168c   : > { %4018 = vmatprep.subr.mxu1 %v4710_v23  ;;  %v2435_v22 = vsel %vm868_vm4, %v2430_v19, %v2433_v21 }
0x168d   : > { %3997 = vmatmul.mubr.msk.f32.vlgmr.msra.gmra.mrb[24].mxu0 %vm972_vm5, %v2435_v22 }
0x168e   : > { %4305 = vmatpush3.bf16.msra.mxu0 %v4888_v11  ;;  %4031 = vmatprep.mubr.msk.f32.mxu0 %vm4709_vm3, %v4710_v23 }
0x168f   : > { %4306 = vmatprep.subr.bf16.mxu0 %v4708_v13  ;;  %4019 = vmatpush3.msk.msra.mxu1 %vm460_vm0, %v4950_v37 }
0x1690   : > { %4315 = vmatprep.subr.bf16.mxu1 %v4708_v13 }
0x1692   : > { %4308 = vmatpush3.bf16.msra.mxu0 %v4900_v20 }
0x1693   : > { %4309 = vmatprep.subr.bf16.mxu0 %v4708_v13 }
0x1759   : > { %v2608_v25 = vpop.f32.mrb[22].mxu1 }
0x175a   : > { %v2612_v26 = vadd.f32 %v2608_v25, %v2539_v24  ;;  %v4009_v27 = vpop.f32.mrb[23].mxu1 }
0x175c   : > { %4535 = vtanh.f32 %v2612_v26  ;;  %v3519_v32 = vmul.f32 -1.442695, %v2612_v26 }
0x1760   : > { %v2505_v28 = vpop.f32.mrb[24].mxu0 }
0x1761   : > { %v2506_v29 = vadd.f32 %v2505_v28, %v4979_v43  ;;  %v3998_v30 = vpop.f32.mrb[25].mxu0 }
0x1763   : > { %4537 = vtanh.f32 %v2506_v29  ;;  %v3517_v35 = vmul.f32 -1.442695, %v2506_v29 }
0x1764   : > { %4539 = vpow2.f32 %v3519_v32 }
0x1765   : > { %4541 = vpow2.f32 %v3517_v35 }
0x1766   : > { %v4536_v31 = vpop.eup %4535 }
0x1767   : > { %2622 = vrot.lane.b32.xlu1 %v4536_v31, %s4711_s12 }
0x176d   : > { %v4538_v37 = vpop.eup %4537 }
0x176e   : > { %2518 = vrot.lane.b32.xlu0 %v4538_v37, %s4713_s21  ;;  %v4540_v38 = vpop.eup %4539 }
0x176f   : > { %v2616_v40 = vadd.f32 1.0, %v4540_v38  ;;  %v4542_v41 = vpop.eup %4541 }
0x1770   : > { %v2512_v42 = vadd.f32 1.0, %v4542_v41 }
0x1771   : > { %4543 = vrcp.f32 %v2616_v40 }
0x1772   : > { %4545 = vrcp.f32 %v2512_v42 }
0x177b   : > { %v4544_v44 = vpop.eup %4543 }
0x177c   : > { %v4546_v46 = vpop.eup %4545  ;;  %v2620_v49 = vmul.f32 %v4544_v44, %v5210_v5 }
0x177d   : > { %v2516_v52 = vmul.f32 %v4546_v46, %v5214_v8  ;;  %v5288_v8 = vld [vmem:[%s5454_s7] sm:$0x1] }
0x17d9   : > { %v2623_v43 = vpop.permute.xlu1 %2622 }
0x17da   : > { %v2625_v45 = vmul.f32 %v4544_v44, %v2623_v43 }
0x17dc   : > { %2627 = vrot.lane.b32.xlu1 %v2625_v45, %s4712_s13 }
0x17e0   : > { %v2519_v47 = vpop.permute.xlu0 %2518 }
0x17e1   : > { %v2521_v48 = vmul.f32 %v4546_v46, %v2519_v47 }
0x17e3   : > { %2523 = vrot.lane.b32.xlu0 %v2521_v48, %s4714_s22 }
0x184e   : > { %v2628_v50 = vpop.permute.xlu1 %2627 }
0x184f   : > { %v5248_v51 = vadd.f32 %v2628_v50, %v2620_v49 }
0x1851   : > { %4547 = vtanh.f32 %v5248_v51 }
0x1855   : > { %v2524_v53 = vpop.permute.xlu0 %2523 }
0x1856   : > { %v5252_v54 = vadd.f32 %v2524_v53, %v2516_v52 }
0x1858   : > { %4549 = vtanh.f32 %v5252_v54 }
0x185b   : > { %v4548_v55 = vpop.eup %4547 }
0x185c   : > { %2633 = vrot.lane.b32.xlu1 %v4548_v55, %s4711_s12 }
0x1862   : > { %v4550_v58 = vpop.eup %4549 }
0x1863   : > { %2529 = vrot.lane.b32.xlu0 %v4550_v58, %s4715_s23 }
0x18ce   : > { %v2634_v59 = vpop.permute.xlu1 %2633 }
0x18cf   : > { %v2636_v60 = vmul.f32 %v4544_v44, %v2634_v59 }
0x18d1   : > { %2638 = vrot.lane.b32.xlu0 %v2636_v60, %s4712_s13 }
0x18d5   : > { %v2530_v61 = vpop.permute.xlu0 %2529 }
0x18d6   : > { %v5258_v62 = vmul.f32 %v4546_v46, %v2530_v61 }
0x18d8   : > { %2641 = vrot.lane.b32.xlu1 %v5258_v62, %s4716_s20 }
0x1943   : > { %v2639_v63 = vpop.permute.xlu0 %2638 }
0x1944   : > { %4032 = vmatmul.mubr.msk.f32.vlgmr.msra.gmra.mrb[26].mxu0 %vm868_vm4, %v2639_v63 }
0x1945   : > { %4311 = vmatpush3.bf16.msra.mxu0 %v4933_v34  ;;  %4044 = vmatprep.mubr.msk.f32.mxu0 %vm4709_vm3, %v4710_v23 }
0x1946   : > { %4312 = vmatprep.subr.bf16.mxu0 %v4708_v13 }
0x1949   : > { %4314 = vmatpush3.bf16.msra.mxu0 %v4939_v36 }
0x194a   : > { %4042 = vmatprep.subr.mxu0 %v4710_v23  ;;  %v2642_v0 = vpop.permute.xlu1 %2641 }
0x194b   : > { %v2644_v1 = vsel %vm868_vm4, %v2639_v63, %v2642_v0 }
0x194c   : > { %4021 = vmatmul.mubr.msk.f32.vlgmr.msra.gmra.mrb[24].mxu1 %vm972_vm5, %v2644_v1 }
0x194d   : > { %4043 = vmatpush3.msk.msra.mxu0 %vm460_vm0, %v5274_v2  ;;  %4317 = vmatpush3.bf16.msra.mxu1 %v4888_v11 }
0x194e   : > { %4055 = vmatprep.mubr.msk.f32.mxu1 %vm4709_vm3, %v4710_v23  ;;  %4318 = vmatprep.subr.bf16.mxu1 %v4708_v13 }
0x194f   : > { %4327 = vmatprep.subr.bf16.mxu0 %v4708_v13 }
0x1951   : > { %4320 = vmatpush3.bf16.msra.mxu1 %v4900_v20 }
0x1952   : > { %4321 = vmatprep.subr.bf16.mxu1 %v4708_v13 }
0x1a17   : > { %v2817_v4 = vpop.f32.mrb[26].mxu0 }
0x1a18   : > { %v2821_v5 = vadd.f32 %v2817_v4, %v2748_v3  ;;  %v4033_v6 = vpop.f32.mrb[27].mxu0 }
0x1a1a   : > { %4551 = vtanh.f32 %v2821_v5  ;;  %v3524_v17 = vmul.f32 -1.442695, %v2821_v5 }
0x1a1f   : > { %v2714_v7 = vpop.f32.mrb[24].mxu1 }
0x1a20   : > { %v2715_v9 = vadd.f32 %v5288_v8, %v2714_v7  ;;  %v4022_v14 = vpop.f32.mrb[25].mxu1 }
0x1a22   : > { %4553 = vtanh.f32 %v2715_v9  ;;  %v3522_v19 = vmul.f32 -1.442695, %v2715_v9 }
0x1a23   : > { %4555 = vpow2.f32 %v3524_v17 }
0x1a24   : > { %v4552_v15 = vpop.eup %4551  ;;  %4557 = vpow2.f32 %v3522_v19 }
0x1a25   : > { %2831 = vrot.lane.b32.xlu1 %v4552_v15, %s4711_s12 }
0x1a2c   : > { %v4554_v16 = vpop.eup %4553 }
0x1a2d   : > { %2727 = vrot.lane.b32.xlu0 %v4554_v16, %s4713_s21  ;;  %v4556_v21 = vpop.eup %4555 }
0x1a2e   : > { %v2825_v22 = vadd.f32 1.0, %v4556_v21  ;;  %v4558_v24 = vpop.eup %4557 }
0x1a2f   : > { %v2721_v25 = vadd.f32 1.0, %v4558_v24 }
0x1a30   : > { %4559 = vrcp.f32 %v2825_v22 }
0x1a31   : > { %4561 = vrcp.f32 %v2721_v25 }
0x1a3a   : > { %v4560_v26 = vpop.eup %4559 }
0x1a3b   : > { %v4562_v29 = vpop.eup %4561  ;;  %v2829_v37 = vmul.f32 %v4560_v26, %v5248_v51  ;;  %v2954_v51 = vld [vmem:[#allocation2 + $0xa] sm:$0x1] }
0x1a3c   : > { %v2725_v38 = vmul.f32 %v4562_v29, %v5252_v54 }
0x1a97   : > { %v2832_v27 = vpop.permute.xlu1 %2831 }
0x1a98   : > { %v2834_v28 = vmul.f32 %v4560_v26, %v2832_v27 }
0x1a9a   : > { %2836 = vrot.lane.b32.xlu1 %v2834_v28, %s4712_s13 }
0x1a9f   : > { %v2728_v30 = vpop.permute.xlu0 %2727 }
0x1aa0   : > { %v2730_v31 = vmul.f32 %v4562_v29, %v2728_v30 }
0x1aa2   : > { %2732 = vrot.lane.b32.xlu0 %v2730_v31, %s4714_s22 }
0x1b0c   : > { %v2837_v32 = vpop.permute.xlu1 %2836 }
0x1b0d   : > { %v5296_v35 = vadd.f32 %v2837_v32, %v2829_v37  ;;  %v3163_v32 = vld [vmem:[#allocation2 + $0xb] sm:$0x1] }
0x1b0f   : > { %4563 = vtanh.f32 %v5296_v35 }
0x1b14   : > { %v2733_v40 = vpop.permute.xlu0 %2732 }
0x1b15   : > { %v5300_v41 = vadd.f32 %v2733_v40, %v2725_v38 }
0x1b17   : > { %4565 = vtanh.f32 %v5300_v41 }
0x1b19   : > { %v4564_v42 = vpop.eup %4563 }
0x1b1a   : > { %2842 = vrot.lane.b32.xlu1 %v4564_v42, %s4711_s12 }
0x1b21   : > { %v4566_v44 = vpop.eup %4565 }
0x1b22   : > { %2738 = vrot.lane.b32.xlu0 %v4566_v44, %s4715_s23 }
0x1b8c   : > { %v2843_v43 = vpop.permute.xlu1 %2842 }
0x1b8d   : > { %v2845_v45 = vmul.f32 %v4560_v26, %v2843_v43 }
0x1b8f   : > { %2847 = vrot.lane.b32.xlu1 %v2845_v45, %s4712_s13 }
0x1b94   : > { %v2739_v46 = vpop.permute.xlu0 %2738 }
0x1b95   : > { %v2741_v47 = vmul.f32 %v4562_v29, %v2739_v46 }
0x1b97   : > { %2743 = vrot.lane.b32.xlu0 %v2741_v47, %s4716_s20 }
0x1c01   : > { %v2848_v48 = vpop.permute.xlu1 %2847 }
0x1c02   : > { %4056 = vmatmul.mubr.msk.f32.vlgmr.msra.gmra.mrb[26].mxu1 %vm868_vm4, %v2848_v48 }
0x1c03   : > { %4323 = vmatpush3.bf16.msra.mxu1 %v4933_v34  ;;  %4068 = vmatprep.mubr.msk.f32.mxu1 %vm4709_vm3, %v4710_v23 }
0x1c04   : > { %4324 = vmatprep.subr.bf16.mxu1 %v4708_v13 }
0x1c07   : > { %4326 = vmatpush3.bf16.msra.mxu1 %v4939_v36 }
0x1c08   : > { %4066 = vmatprep.subr.mxu1 %v4710_v23 }
0x1c09   : > { %v5314_v49 = vpop.permute.xlu0 %2743 }
0x1c0a   : > { %v2850_v50 = vsel %vm868_vm4, %v2848_v48, %v5314_v49 }
0x1c0b   : > { %4067 = vmatpush3.msk.msra.mxu1 %vm460_vm0, %v5274_v2  ;;  %4045 = vmatmul.mubr.msk.f32.vlgmr.msra.gmra.mrb[28].mxu0 %vm972_vm5, %v2850_v50 }
0x1c0c   : > { %4329 = vmatpush3.bf16.msra.mxu0 %v4888_v11  ;;  %4079 = vmatprep.mubr.msk.f32.mxu0 %vm4709_vm3, %v4710_v23 }
0x1c0d   : > { %4330 = vmatprep.subr.bf16.mxu0 %v4708_v13 }
0x1c10   : > { %4332 = vmatpush3.bf16.msra.mxu0 %v4900_v20 }
0x1c11   : > { %4333 = vmatprep.subr.bf16.mxu0 %v4708_v13 }
0x1cd5   : > { %v3023_v52 = vpop.f32.mrb[26].mxu1 }
0x1cd6   : > { %v3027_v53 = vadd.f32 %v3023_v52, %v2954_v51  ;;  %v4057_v54 = vpop.f32.mrb[27].mxu1 }
0x1cd8   : > { %4567 = vtanh.f32 %v3027_v53  ;;  %v3529_v61 = vmul.f32 -1.442695, %v3027_v53 }
0x1cde   : > { %v2920_v55 = vpop.f32.mrb[28].mxu0 }
0x1cdf   : > { %v2921_v58 = vadd.f32 %v5288_v8, %v2920_v55  ;;  %v4046_v59 = vpop.f32.mrb[29].mxu0 }
0x1ce1   : > { %4569 = vtanh.f32 %v2921_v58  ;;  %v3527_v20 = vmul.f32 -1.442695, %v2921_v58 }
0x1ce2   : > { %v4568_v60 = vpop.eup %4567  ;;  %4571 = vpow2.f32 %v3529_v61 }
0x1ce3   : > { %3037 = vrot.lane.b32.xlu1 %v4568_v60, %s4711_s12  ;;  %4573 = vpow2.f32 %v3527_v20 }
0x1ceb   : > { %v4570_v11 = vpop.eup %4569 }
0x1cec   : > { %2933 = vrot.lane.b32.xlu0 %v4570_v11, %s4713_s21  ;;  %v4572_v63 = vpop.eup %4571 }
0x1ced   : > { %v3031_v0 = vadd.f32 1.0, %v4572_v63  ;;  %v4574_v1 = vpop.eup %4573 }
0x1cee   : > { %v2927_v3 = vadd.f32 1.0, %v4574_v1 }
0x1cef   : > { %4575 = vrcp.f32 %v3031_v0 }
0x1cf0   : > { %4577 = vrcp.f32 %v2927_v3 }
0x1cf9   : > { %v4576_v4 = vpop.eup %4575 }
0x1cfa   : > { %v4578_v7 = vpop.eup %4577  ;;  %v3035_v15 = vmul.f32 %v4576_v4, %v5296_v35 }
0x1cfb   : > { %v2931_v19 = vmul.f32 %v4578_v7, %v5300_v41 }
0x1d55   : > { %v3038_v5 = vpop.permute.xlu1 %3037 }
0x1d56   : > { %v3040_v6 = vmul.f32 %v4576_v4, %v3038_v5 }
0x1d58   : > { %3042 = vrot.lane.b32.xlu1 %v3040_v6, %s4712_s13 }
0x1d5e   : > { %v2934_v9 = vpop.permute.xlu0 %2933 }
0x1d5f   : > { %v2936_v14 = vmul.f32 %v4578_v7, %v2934_v9 }
0x1d61   : > { %2938 = vrot.lane.b32.xlu0 %v2936_v14, %s4714_s22 }
0x1dca   : > { %v3043_v16 = vpop.permute.xlu1 %3042 }
0x1dcb   : > { %v3045_v17 = vadd.f32 %v3043_v16, %v3035_v15 }
0x1dcd   : > { %4579 = vtanh.f32 %v3045_v17 }
0x1dd3   : > { %v2939_v21 = vpop.permute.xlu0 %2938 }
0x1dd4   : > { %v2941_v22 = vadd.f32 %v2939_v21, %v2931_v19 }
0x1dd6   : > { %4581 = vtanh.f32 %v2941_v22 }
0x1dd7   : > { %v4580_v24 = vpop.eup %4579 }
0x1dd8   : > { %3048 = vrot.lane.b32.xlu1 %v4580_v24, %s4711_s12 }
0x1de0   : > { %v4582_v25 = vpop.eup %4581 }
0x1de1   : > { %2944 = vrot.lane.b32.xlu0 %v4582_v25, %s4715_s23 }
0x1e4a   : > { %v3049_v26 = vpop.permute.xlu1 %3048 }
0x1e4b   : > { %v3051_v27 = vmul.f32 %v4576_v4, %v3049_v26 }
0x1e4d   : > { %3053 = vrot.lane.b32.xlu0 %v3051_v27, %s4712_s13 }
0x1e53   : > { %v2945_v28 = vpop.permute.xlu0 %2944 }
0x1e54   : > { %v5337_v29 = vmul.f32 %v4578_v7, %v2945_v28 }
0x1e56   : > { %3056 = vrot.lane.b32.xlu1 %v5337_v29, %s4716_s20 }
0x1ebf   : > { %v3054_v30 = vpop.permute.xlu0 %3053 }
0x1ec0   : > { %4080 = vmatmul.mubr.msk.f32.vlgmr.msra.gmra.mrb[30].mxu0 %vm868_vm4, %v3054_v30 }
0x1ec1   : > { %4335 = vmatpush3.bf16.msra.mxu0 %v4933_v34  ;;  %4092 = vmatprep.mubr.msk.f32.mxu0 %vm4709_vm3, %v4710_v23 }
0x1ec2   : > { %4336 = vmatprep.subr.bf16.mxu0 %v4708_v13 }
0x1ec5   : > { %4338 = vmatpush3.bf16.msra.mxu0 %v4939_v36 }
0x1ec6   : > { %4090 = vmatprep.subr.mxu0 %v4710_v23 }
0x1ec8   : > { %v3057_v31 = vpop.permute.xlu1 %3056 }
0x1ec9   : > { %4091 = vmatpush3.msk.msra.mxu0 %vm460_vm0, %v5274_v2  ;;  %v3059_v37 = vsel %vm868_vm4, %v3054_v30, %v3057_v31  ;;  %vm3161_vm0 = vcmask 352576  }
0x1eca   : > { %4069 = vmatmul.mubr.msk.f32.vlgmr.msra.gmra.mrb[28].mxu1 %vm972_vm5, %v3059_v37 }
0x1f93   : > { %v3232_v35 = vpop.f32.mrb[30].mxu0 }
0x1f94   : > { %v3236_v34 = vadd.f32 %v3232_v35, %v3163_v32  ;;  %v4081_v38 = vpop.f32.mrb[31].mxu0 }
0x1f96   : > { %4583 = vtanh.f32 %v3236_v34  ;;  %v3534_v2 = vmul.f32 -1.442695, %v3236_v34 }
0x1f9d   : > { %v3129_v40 = vpop.f32.mrb[28].mxu1 }
0x1f9e   : > { %v3130_v13 = vadd.f32 %v5288_v8, %v3129_v40  ;;  %v4070_v41 = vpop.f32.mrb[29].mxu1 }
0x1fa0   : > { %v4584_v36 = vpop.eup %4583  ;;  %4585 = vtanh.f32 %v3130_v13  ;;  %v3532_v42 = vmul.f32 -1.442695, %v3130_v13 }
0x1fa1   : > { %3246 = vrot.lane.b32.xlu1 %v4584_v36, %s4711_s12  ;;  %4587 = vpow2.f32 %v3534_v2 }
0x1fa2   : > { %4589 = vpow2.f32 %v3532_v42 }
0x1faa   : > { %v4586_v23 = vpop.eup %4585 }
0x1fab   : > { %3142 = vrot.lane.b32.xlu0 %v4586_v23, %s4713_s21  ;;  %v4588_v44 = vpop.eup %4587 }
0x1fac   : > { %v3240_v43 = vadd.f32 1.0, %v4588_v44  ;;  %v4590_v45 = vpop.eup %4589 }
0x1fad   : > { %v3136_v46 = vadd.f32 1.0, %v4590_v45 }
0x1fae   : > { %4591 = vrcp.f32 %v3240_v43 }
0x1faf   : > { %4593 = vrcp.f32 %v3136_v46 }
0x1fb8   : > { %v4592_v47 = vpop.eup %4591 }
0x1fb9   : > { %v4594_v51 = vpop.eup %4593  ;;  %v3244_v54 = vmul.f32 %v4592_v47, %v3045_v17 }
0x1fba   : > { %v3140_v59 = vmul.f32 %v4594_v51, %v2941_v22 }
0x2013   : > { %v3247_v48 = vpop.permute.xlu1 %3246 }
0x2014   : > { %v3249_v50 = vmul.f32 %v4592_v47, %v3247_v48 }
0x2016   : > { %3251 = vrot.lane.b32.xlu1 %v3249_v50, %s4712_s13 }
0x201d   : > { %v3143_v52 = vpop.permute.xlu0 %3142 }
0x201e   : > { %v3145_v53 = vmul.f32 %v4594_v51, %v3143_v52 }
0x2020   : > { %3147 = vrot.lane.b32.xlu0 %v3145_v53, %s4714_s22 }
0x2088   : > { %v3252_v55 = vpop.permute.xlu1 %3251 }
0x2089   : > { %v3254_v58 = vadd.f32 %v3252_v55, %v3244_v54 }
0x208b   : > { %4595 = vtanh.f32 %v3254_v58 }
0x2092   : > { %v3148_v60 = vpop.permute.xlu0 %3147 }
0x2093   : > { %v3150_v11 = vadd.f32 %v3148_v60, %v3140_v59 }
0x2095   : > { %v4596_v61 = vpop.eup %4595  ;;  %4597 = vtanh.f32 %v3150_v11 }
0x2096   : > { %3257 = vrot.lane.b32.xlu1 %v4596_v61, %s4711_s12  ;;  %s4717_s12 = smov 116  }
0x209f   : > { %v4598_v20 = vpop.eup %4597 }
0x20a0   : > { %3153 = vrot.lane.b32.xlu0 %v4598_v20, %s4715_s23 }
0x2108   : > { %v3258_v63 = vpop.permute.xlu1 %3257 }
0x2109   : > { %v3260_v0 = vmul.f32 %v4592_v47, %v3258_v63 }
0x210b   : > { %3262 = vrot.lane.b32.xlu0 %v3260_v0, %s4712_s13 }
0x2112   : > { %v3154_v1 = vpop.permute.xlu0 %3153 }
0x2113   : > { %v3156_v3 = vmul.f32 %v4594_v51, %v3154_v1 }
0x2115   : > { %3265 = vrot.lane.b32.xlu1 %v3156_v3, %s4716_s20  ;;  %s326_s20 = sand.u32 1, %s4695_s28  }
0x2116   : > { %s5374_s24 = scalar_lea.vmem [#allocation6], %s326_s20 }
0x217d   : > { %v3263_v4 = vpop.permute.xlu0 %3262 }
0x2187   : > { %v3266_v5 = vpop.permute.xlu1 %3265 }
0x2188   : > { %v3268_v6 = vsel %vm868_vm4, %v3263_v4, %v3266_v5 }
0x2189   : > { %4093 = vmatmul.mubr.msk.f32.vlgmr.msra.gmra.mrb[32].mxu0 %vm972_vm5, %v3268_v6 }
0x225c   : > { %v3338_v7 = vpop.f32.mrb[32].mxu0 }
0x225d   : > { %v3339_v9 = vadd.f32 %v5288_v8, %v3338_v7  ;;  %v4094_v14 = vpop.f32.mrb[33].mxu0 }
0x225f   : > { %4599 = vtanh.f32 %v3339_v9  ;;  %v3537_v16 = vmul.f32 -1.442695, %v3339_v9 }
0x2261   : > { %4601 = vpow2.f32 %v3537_v16 }
0x2269   : > { %v4600_v15 = vpop.eup %4599 }
0x226a   : > { %3351 = vrot.lane.b32.xlu0 %v4600_v15, %s4713_s21 }
0x226b   : > { %v4602_v17 = vpop.eup %4601 }
0x226c   : > { %v3345_v19 = vadd.f32 1.0, %v4602_v17 }
0x226e   : > { %4603 = vrcp.f32 %v3345_v19 }
0x2278   : > { %v4604_v21 = vpop.eup %4603 }
0x2279   : > { %v3349_v8 = vmul.f32 %v4604_v21, %v3150_v11 }
0x22dc   : > { %v3352_v22 = vpop.permute.xlu0 %3351 }
0x22dd   : > { %v3354_v24 = vmul.f32 %v4604_v21, %v3352_v22 }
0x22df   : > { %3356 = vrot.lane.b32.xlu1 %v3354_v24, %s4714_s22 }
0x22e3   : > { %1074 = vrot.lane.b32.xlu1 %v4992_v10, %s4717_s12  ;;  %s3373_s12 = scalar_lea.sflag [#allocation5], %s326_s20 }
0x22e7   : > { %1492 = vrot.lane.b32.xlu1 %v5068_v33, %s4718_s26 }
0x22eb   : > { %2116 = vrot.lane.b32.xlu1 %v5182_v39, %s4715_s23 }
0x22ef   : > { %2534 = vrot.lane.b32.xlu1 %v5258_v62, %s4719_s10 }
0x22f3   : > { %3158 = vrot.lane.b32.xlu1 %v3156_v3, %s4720_s18 }
0x2351   : > { %v3357_v25 = vpop.permute.xlu1 %3356 }
0x2352   : > { %v3359_v26 = vadd.f32 %v3357_v25, %v3349_v8 }
0x2354   : > { %4605 = vtanh.f32 %v3359_v26 }
0x2355   : > { %v1075_v27 = vpop.permute.xlu1 %1074 }
0x2356   : > { %1078 = vst.msk [vmem:[%s5374_s24] sm:$0x1] %vm1077_vm6, %v1075_v27 }
0x2359   : > { %v1493_v33 = vpop.permute.xlu1 %1492 }
0x235e   : > { %v4606_v10 = vpop.eup %4605 }
0x235f   : > { %3362 = vrot.lane.b32.xlu0 %v4606_v10, %s4715_s23 }
0x2363   : > { %1283 = vrot.lane.b32.xlu0 %v5029_v56, %s4713_s21  ;;  %s3385_s21 = sshll.u32 %s5374_s24, 4  ;;  %s5404_s21 = int_to_ptr.vmem [resolvable:$true] %s3385_s21 }
0x2364   : > { %s4637_s26 = scalar_lea.vmem %s5404_s21, 16 }
0x2365   : > { %p4638_p6 = scmp.ne.s32.totalorder %s5404_s21, %s4637_s26 }
0x2367   : > { %1907 = vrot.lane.b32.xlu0 %v5144_v57, %s4714_s22  ;;  %v2117_v57 = vpop.permute.xlu1 %2116  ;;  %p4639_p10 = pnand %p4638_p6, %p5466_p9 }
0x2369   : > { %p4640_p12 = pneg %p4639_p10 }
0x236b   : > { %2325 = vrot.lane.b32.xlu0 %v5220_v18, %s4721_s25  ;;  %v2535_v28 = vpop.permute.xlu1 %2534 }
0x236f   : > { %2949 = vrot.lane.b32.xlu0 %v5337_v29, %s4722_s19  ;;  %v3159_v30 = vpop.permute.xlu1 %3158 }
0x23d1   : > { %v3363_v39 = vpop.permute.xlu0 %3362 }
0x23d2   : > { %v3365_v62 = vmul.f32 %v4604_v21, %v3363_v39 }
0x23d4   : > { %3367 = vrot.lane.b32.xlu0 %v3365_v62, %s4712_s13  ;;  %s3538_s13 = sshll.u32 %s4790_s9, 4  ;;  %s4723_s9 = smov [#allocation6]  }
0x23d5   : > { %v1284_v56 = vpop.permute.xlu0 %1283  ;;  %s5402_s17 = scalar_lea.hbm %s5455_s8, %s3538_s13  ;;  %s4641_s10 = sshll.u32 %s4723_s9, 4  ;;  %s4642_s10 = int_to_ptr.vmem [resolvable:$false] %s4641_s10 }
0x23d6   : > { %1287 = vst.msk [vmem:[%s5374_s24] sm:$0x1] %vm1286_vm7, %v1284_v56  ;;  %s4643_s18 = scalar_lea.vmem %s4642_s10, 32  ;;  %p4644_p2 = scmp.lt.s32.totalorder %s5404_s21, %s4642_s10 }
0x23d7   : > { %1496 = vst.msk [vmem:[%s5374_s24] sm:$0x1] %vm1495_vm8, %v1493_v33  ;;  %p4645_p3 = scmp.lt.s32.totalorder %s4643_s18, %s4637_s26 }
0x23d8   : > { %1701 = vst.msk [vmem:[%s5374_s24] sm:$0x1] %vm1700_vm9, %v5106_v12 }
0x23d9   : > { %v1908_v18 = vpop.permute.xlu0 %1907  ;;  %p4646_p4 = por %p4645_p3, %p4644_p2 }
0x23da   : > { %1911 = vst.msk [vmem:[%s5374_s24] sm:$0x1] %vm1910_vm10, %v1908_v18 }
0x23db   : > { %2120 = vst.msk [vmem:[%s5374_s24] sm:$0x1] %vm2119_vm11, %v2117_v57  ;;  %p4647_p7 = pnand %p4646_p4, %p4640_p12 }
0x23dd   : > { %v2326_v29 = vpop.permute.xlu0 %2325 }
0x23de   : > { %2329 = vst.msk [vmem:[%s5374_s24] sm:$0x1] %vm2328_vm12, %v2326_v29 }
0x23df   : > { %2538 = vst.msk [vmem:[%s5374_s24] sm:$0x1] %vm2537_vm13, %v2535_v28 }
0x23e0   : > { %2747 = vst.msk [vmem:[%s5374_s24] sm:$0x1] %vm2746_vm14, %v5314_v49 }
0x23e1   : > { %v2950_v12 = vpop.permute.xlu0 %2949 }
0x23e2   : > { %2953 = vst.msk [vmem:[%s5374_s24] sm:$0x1] %vm2952_vm15, %v2950_v12 }
0x23e3   : > { %3162 = vst.msk [vmem:[%s5374_s24] sm:$0x1] %vm3161_vm0, %v3159_v30 }
0x2446   : > { %v3368_v49 = vpop.permute.xlu0 %3367 }
0x2447   : > { %3371 = vst.msk [vmem:[%s5374_s24] sm:$0x1] %vm3370_vm1, %v3368_v49 }
0x2448   : > { %4650 = shalt.err (!%p4647_p7)
}
0x2449   : > { %s4651_s20 = scalar_lea.hbm %s5402_s17, 16  ;;  %s4655_s19 = scalar_lea.hbm %s5455_s8, 32 }
0x244a   : > { %p4652_p8 = scmp.ne.s32.totalorder %s5402_s17, %s4651_s20  ;;  %p4656_p1 = scmp.lt.u32.totalorder %s5402_s17, %s5455_s8 }
0x244b   : > { %p4657_p0 = scmp.lt.u32.totalorder %s4655_s19, %s4651_s20  ;;  %p4659_p6 = scmp.lt.u32.totalorder %s4651_s20, %s5402_s17 }
0x244c   : > { %p4653_p11 = pnand %p4652_p8, %p5466_p9 }
0x244d   : > { %p4658_p5 = por %p4657_p0, %p4656_p1 }
0x244e   : > { %p4654_p13 = pneg %p4653_p11 }
0x244f   : > { %p4660_p10 = por %p4659_p6, %p4658_p5 }
0x2451   : > { %p4661_p12 = pnand %p4660_p10, %p4654_p13 }
0x2453   : > { %4664 = shalt.err (!%p4661_p12)
}
0x2454   : > { %4352 = dma.vmem_to_hbm [thread:$0]  (%p5466_p9), %s5404_s21, 16, %s5402_s17, %s3373_s12  }
0x2455 PF: > { %p4364_p2 = scmp.ge.s32.totalorder %s4703_s30, 2  ;;  %s3397_s23 = sand.u32 1, %s4691_s27  }
0x2456   : > { %p5467_p3 = scmp.ne.s32.totalorder %s5460_s16, 0  ;;  %s3398_s26 = scalar_lea.sflag [#allocation5], %s3397_s23 }
0x2458   : > { %p4359_p4 = pnand %p4364_p2, %p5467_p3 }
0x245a   : > { %4686 = dma.done.wait (!%p4359_p4), %s3398_s26, 16  }
0x245b   : > { %4688 = vsyncadd (!%p4359_p4), %s3398_s26, 4294967280  ;;  %p19_p7 = scmp.ge.s32.totalorder %s4794_s11, 4   ;;  %s5468_s27 = smov %s4695_s28 }
0x245c   : > { %s5469_s28 = smov %s4699_s29  ;;  %s5470_s29 = smov %s4805_s14 }
0x245d   : > { %s5471_s30 = smov %s4794_s11  ;;  %21 = sbr.rel (!%p19_p7) target bundleno = 4 (0x4), region = 95 }
0x2464   :  { %3402 = vsyncpa [#allocation4], 1 }
0x2465   :  { %3404 = vsyncpa [#allocation4 + $0x1], 1 }
0x2466   :  { %3405 = vsyncpa [#allocation5], 1 }
0x2467   :  { %3407 = vsyncpa [#allocation5 + $0x1], 1 }

</bundles_post_ra>
